<compile_context>
chip_gen: v7x
topology: tpu7x:2x2x1
jax: 0.10.0
libtpu: 0.0.40
codegen_flags: <defaults>
</compile_context>

<pallas_src>
import jax
import jax.numpy as jnp
from jax import lax
from jax.experimental import pallas as pl
from jax.experimental.pallas import tpu as pltpu


# ------------------------------ kernel helpers -------------------------------

def _convt_relu_stride2(x, wp_ref, b_ref):
    """ConvTranspose1d(stride=2) + bias + ReLU on VMEM-resident values.

    x      : (L_in, Cin)   f32 value
    wp_ref : (Cin, K*Cout) bf16 packed weight, lane order = (tap k, cout)
    b_ref  : (1, Cout)     f32 bias
    returns (L_out, Cout)  f32 with L_out = 2*(L_in - 1) + K
    """
    L_in = x.shape[0]
    Cout = b_ref.shape[-1]
    K = wp_ref.shape[-1] // Cout
    L_out = 2 * (L_in - 1) + K

    # One wide MXU matmul covering all K taps (bf16 in, f32 accumulation).
    y = jnp.dot(x.astype(jnp.bfloat16), wp_ref[...],
                preferred_element_type=jnp.float32)              # (L_in, K*Cout)

    acc = jnp.zeros((L_out, Cout), jnp.float32)
    if L_in == 1:
        # out[k, :] == y[0, k*Cout:(k+1)*Cout]: assemble rows with one-hot selects.
        rows = lax.broadcasted_iota(jnp.int32, (L_out, 1), 0)
        for k in range(K):                                        # static unroll
            acc = jnp.where(rows == k, y[:, k * Cout:(k + 1) * Cout], acc)
    else:
        # Vectorized overlap-add: S_k[t, l] = 1 iff t == 2*l + k.
        # Iotas hoisted out of the tap loop; masks are exact 0/1 in bf16.
        t_idx = lax.broadcasted_iota(jnp.int32, (L_out, L_in), 0)
        src = 2 * lax.broadcasted_iota(jnp.int32, (L_out, L_in), 1)
        for k in range(K):                                        # static unroll
            sk = (t_idx == src + k).astype(jnp.bfloat16)          # (L_out, L_in)
            yk = y[:, k * Cout:(k + 1) * Cout].astype(jnp.bfloat16)
            acc = acc + jnp.dot(sk, yk, preferred_element_type=jnp.float32)

    return jnp.maximum(acc + b_ref[...], 0.0)                     # bias + ReLU


def _fused_kernel(alpha_ref, hpo_ref, w1_ref, b1_ref, w2_ref, b2_ref,
                  w3_ref, b3_ref, wd_ref, bd_ref, o_ref):
    f32 = jnp.float32
    tb = alpha_ref.shape[0]          # batch rows handled in this grid step

    for b in range(tb):              # static unroll over the batch tile
        # latent_prime = hpo^T @ sigmoid(alpha) -> (1, H), bf16 operands.
        s = jax.nn.sigmoid(alpha_ref[b].astype(f32)).astype(jnp.bfloat16)   # (1, N)
        xl = jnp.dot(s, hpo_ref[b].astype(jnp.bfloat16),
                     preferred_element_type=f32)                            # (1, H)

        a1 = _convt_relu_stride2(xl, w1_ref, b1_ref)       # (8,  C1)
        p1 = jnp.maximum(a1[:-1, :], a1[1:, :])            # (7,  C1)  MaxPool(2,1)

        a2 = _convt_relu_stride2(p1, w2_ref, b2_ref)       # (16, C2)
        p2 = jnp.maximum(a2[:-1, :], a2[1:, :])            # (15, C2)

        a3 = _convt_relu_stride2(p2, w3_ref, b3_ref)       # (32, C3)

        z = jnp.dot(a3.astype(jnp.bfloat16), wd_ref[...],
                    preferred_element_type=f32)            # (32, V)
        o_ref[b] = jnp.maximum(z + bd_ref[...], 0.0)


# -------------------------------- wrapper ------------------------------------

def prepare_params(raw):
    """One-time weight packing: (K, Cin, Cout) f32 -> (Cin, K*Cout) bf16.

    Done outside the per-call path so no HBM cast traffic is paid per forward.
    """
    def pack(w):
        K, Cin, Cout = w.shape
        return jnp.transpose(w, (1, 0, 2)).reshape(Cin, K * Cout).astype(jnp.bfloat16)

    return {
        "w1p": pack(raw["w1"]), "b1": raw["b1"].astype(jnp.float32),
        "w2p": pack(raw["w2"]), "b2": raw["b2"].astype(jnp.float32),
        "w3p": pack(raw["w3"]), "b3": raw["b3"].astype(jnp.float32),
        "wdp": raw["wd"].astype(jnp.bfloat16),
        "bd": raw["bd"].astype(jnp.float32),
    }


def generator_cnn_forward(packed, alpha, hpo, attention_mask=None):
    del attention_mask  # unused by the PyTorch forward as well
    B, N = alpha.shape
    H = hpo.shape[-1]

    w1p, b1 = packed["w1p"], packed["b1"]
    w2p, b2 = packed["w2p"], packed["b2"]
    w3p, b3 = packed["w3p"], packed["b3"]
    wdp, bd = packed["wdp"], packed["bd"]

    C1, C2, C3, V = b1.shape[-1], b2.shape[-1], b3.shape[-1], bd.shape[-1]
    K1 = w1p.shape[-1] // C1
    K2 = w2p.shape[-1] // C2
    K3 = w3p.shape[-1] // C3
    L1 = K1                     # (1 - 1)*2 + K1                      = 8
    L2 = 2 * (L1 - 2) + K2      # pool -> L1-1 rows, stride-2 conv    = 16
    L3 = 2 * (L2 - 2) + K3      # pool -> L2-1 rows, stride-2 conv    = 32

    # Whole (small) batch in one grid step: pays pipeline overhead once and
    # keeps all weights resident for a single DMA.  Tile TB for large B.
    TB = B
    assert B % TB == 0
    grid = (B // TB,)

    alpha3 = alpha.reshape(B, 1, N)

    return pl.pallas_call(
        _fused_kernel,
        out_shape=jax.ShapeDtypeStruct((B, L3, V), jnp.float32),
        grid_spec=pltpu.PrefetchScalarGridSpec(
            num_scalar_prefetch=0, grid=grid,
            in_specs=[
                pl.BlockSpec((TB, 1, N), lambda g: (g, 0, 0)),
                pl.BlockSpec((TB, N, H), lambda g: (g, 0, 0)),
                pl.BlockSpec((H, K1 * C1), lambda g: (0, 0)),
                pl.BlockSpec((1, C1), lambda g: (0, 0)),
                pl.BlockSpec((C1, K2 * C2), lambda g: (0, 0)),
                pl.BlockSpec((1, C2), lambda g: (0, 0)),
                pl.BlockSpec((C2, K3 * C3), lambda g: (0, 0)),
                pl.BlockSpec((1, C3), lambda g: (0, 0)),
                pl.BlockSpec((C3, V), lambda g: (0, 0)),
                pl.BlockSpec((1, V), lambda g: (0, 0)),
            ],
            out_specs=pl.BlockSpec((TB, L3, V), lambda g: (g, 0, 0))),
        compiler_params=pltpu.CompilerParams(
            dimension_semantics=("parallel",),
            vmem_limit_bytes=48 * 1024 * 1024),
    )(alpha3, hpo, w1p, b1, w2p, b2, w3p, b3, wdp, bd)


# --------------------------- pure-JAX reference ------------------------------

def _convt_ref(x, w, b, stride):
    B, L_in, Cin = x.shape
    K, _, Cout = w.shape
    L_out = (L_in - 1) * stride + K
    y = jnp.broadcast_to(b, (B, L_out, Cout)).astype(jnp.float32)
    for l in range(L_in):
        xl = x[:, l, :]
        for k in range(K):
            y = y.at[:, l * stride + k, :].add(xl @ w[k])
    return y


def reference_forward(raw, alpha, hpo):
    s = jax.nn.sigmoid(alpha)
    x = jnp.einsum("bn,bnh->bh", s, hpo)[:, None, :]
    y = jnp.maximum(_convt_ref(x, raw["w1"], raw["b1"], 2), 0.0)
    y = jnp.maximum(y[:, :-1, :], y[:, 1:, :])
    y = jnp.maximum(_convt_ref(y, raw["w2"], raw["b2"], 2), 0.0)
    y = jnp.maximum(y[:, :-1, :], y[:, 1:, :])
    y = jnp.maximum(_convt_ref(y, raw["w3"], raw["b3"], 2), 0.0)
    z = y @ raw["wd"] + raw["bd"]
    return jnp.maximum(z, 0.0)


# --------------------------------- main ---------------------------------------

if __name__ == "__main__":
    # Scaled-down synthetic CNNConfig: num_hpo_node=8, hpo_hidden_size=32,
    # vocab_size=128; conv channels 1024/2048/4096 scaled to 128/256/512
    # (keeps every lane slice 128-aligned).
    B, N, H = 2, 8, 32
    C1, C2, C3 = 128, 256, 512
    V = 128

    key = jax.random.PRNGKey(0)
    ks = jax.random.split(key, 10)
    raw = {
        "w1": jax.random.normal(ks[0], (8, H, C1), jnp.float32) * 0.05,
        "b1": jax.random.normal(ks[1], (1, C1), jnp.float32) * 0.05,
        "w2": jax.random.normal(ks[2], (4, C1, C2), jnp.float32) * 0.05,
        "b2": jax.random.normal(ks[3], (1, C2), jnp.float32) * 0.05,
        "w3": jax.random.normal(ks[4], (4, C2, C3), jnp.float32) * 0.05,
        "b3": jax.random.normal(ks[5], (1, C3), jnp.float32) * 0.05,
        "wd": jax.random.normal(ks[6], (C3, V), jnp.float32) * 0.05,
        "bd": jax.random.normal(ks[7], (1, V), jnp.float32) * 0.05,
    }
    alpha = jax.random.normal(ks[8], (B, N), jnp.float32)
    hpo = jax.random.normal(ks[9], (B, N, H), jnp.float32)

    packed = prepare_params(raw)   # one-time pack/cast (not on the call path)

    out = jax.block_until_ready(generator_cnn_forward(packed, alpha, hpo))
    ref = jax.block_until_ready(reference_forward(raw, alpha, hpo))

    assert out.shape == (B, 32, V), out.shape
    max_err = float(jnp.max(jnp.abs(out - ref)))
    assert jnp.allclose(out, ref, rtol=2e-2, atol=2e-2), max_err
    print("KERNEL_OK")
</pallas_src>

<mosaic_0001>
module attributes {stable_mosaic.version = 11 : i64} {
  func.func @_fused_kernel(%arg0: i32, %arg1: memref<2x1x8xf32, #tpu.memory_space<vmem>>, %arg2: memref<2x8x32xf32, #tpu.memory_space<vmem>>, %arg3: memref<32x1024xbf16, #tpu.memory_space<vmem>>, %arg4: memref<1x128xf32, #tpu.memory_space<vmem>>, %arg5: memref<128x1024xbf16, #tpu.memory_space<vmem>>, %arg6: memref<1x256xf32, #tpu.memory_space<vmem>>, %arg7: memref<256x2048xbf16, #tpu.memory_space<vmem>>, %arg8: memref<1x512xf32, #tpu.memory_space<vmem>>, %arg9: memref<512x128xbf16, #tpu.memory_space<vmem>>, %arg10: memref<1x128xf32, #tpu.memory_space<vmem>>, %arg11: memref<2x32x128xf32, #tpu.memory_space<vmem>>) attributes {dimension_semantics = [#tpu.dimension_semantics<parallel>], iteration_bounds = array<i64: 1>, scalar_prefetch = 0 : i64, scratch_operands = 0 : i64, tpu.core_type = #tpu.core_type<tc>, window_params = [{transform_indices = @transform_0, window_bounds = array<i64: 2, 1, 8>}, {transform_indices = @transform_1, window_bounds = array<i64: 2, 8, 32>}, {pipeline_mode = #tpu.pipeline_mode<synchronous>, transform_indices = @transform_2, window_bounds = array<i64: 32, 1024>}, {pipeline_mode = #tpu.pipeline_mode<synchronous>, transform_indices = @transform_3, window_bounds = array<i64: 1, 128>}, {pipeline_mode = #tpu.pipeline_mode<synchronous>, transform_indices = @transform_4, window_bounds = array<i64: 128, 1024>}, {pipeline_mode = #tpu.pipeline_mode<synchronous>, transform_indices = @transform_5, window_bounds = array<i64: 1, 256>}, {pipeline_mode = #tpu.pipeline_mode<synchronous>, transform_indices = @transform_6, window_bounds = array<i64: 256, 2048>}, {pipeline_mode = #tpu.pipeline_mode<synchronous>, transform_indices = @transform_7, window_bounds = array<i64: 1, 512>}, {pipeline_mode = #tpu.pipeline_mode<synchronous>, transform_indices = @transform_8, window_bounds = array<i64: 512, 128>}, {pipeline_mode = #tpu.pipeline_mode<synchronous>, transform_indices = @transform_9, window_bounds = array<i64: 1, 128>}, {transform_indices = @transform_10, window_bounds = array<i64: 2, 32, 128>}]} {
    %c0 = arith.constant 0 : index
    %c0_0 = arith.constant 0 : index
    %c0_1 = arith.constant 0 : index
    %0 = vector.load %arg1[%c0, %c0_0, %c0_1] : memref<2x1x8xf32, #tpu.memory_space<vmem>>, vector<1x1x8xf32>
    %1 = vector.shape_cast %0 : vector<1x1x8xf32> to vector<1x8xf32>
    %2 = arith.negf %1 : vector<1x8xf32>
    %3 = math.exp %2 : vector<1x8xf32>
    %cst = arith.constant 1.000000e+00 : f32
    %4 = vector.broadcast %cst : f32 to vector<1x8xf32>
    %5 = arith.addf %4, %3 : vector<1x8xf32>
    %6 = arith.divf %4, %5 : vector<1x8xf32>
    %7 = arith.truncf %6 : vector<1x8xf32> to vector<1x8xbf16>
    %c0_2 = arith.constant 0 : index
    %c0_3 = arith.constant 0 : index
    %c0_4 = arith.constant 0 : index
    %8 = vector.load %arg2[%c0_2, %c0_3, %c0_4] : memref<2x8x32xf32, #tpu.memory_space<vmem>>, vector<1x8x32xf32>
    %9 = vector.shape_cast %8 : vector<1x8x32xf32> to vector<8x32xf32>
    %10 = arith.truncf %9 : vector<8x32xf32> to vector<8x32xbf16>
    %cst_5 = arith.constant dense<0.000000e+00> : vector<1x32xf32>
    %11 = tpu.matmul %7, %10, %cst_5 {dimension_numbers = #tpu.dot_dimension_numbers<[1], [0], [0], [1], [0, 0, 1, 1], [], []>} : vector<1x8xbf16>, vector<8x32xbf16>, vector<1x32xf32> -> vector<1x32xf32>
    %12 = arith.truncf %11 : vector<1x32xf32> to vector<1x32xbf16>
    %c0_6 = arith.constant 0 : index
    %c0_7 = arith.constant 0 : index
    %13 = vector.load %arg3[%c0_6, %c0_7] : memref<32x1024xbf16, #tpu.memory_space<vmem>>, vector<32x1024xbf16>
    %cst_8 = arith.constant dense<0.000000e+00> : vector<1x1024xf32>
    %14 = tpu.matmul %12, %13, %cst_8 {dimension_numbers = #tpu.dot_dimension_numbers<[1], [0], [0], [1], [0, 0, 1, 1], [], []>} : vector<1x32xbf16>, vector<32x1024xbf16>, vector<1x1024xf32> -> vector<1x1024xf32>
    %cst_9 = arith.constant 0.000000e+00 : f32
    %15 = vector.broadcast %cst_9 : f32 to vector<8x128xf32>
    %16 = tpu.iota {dimensions = array<i32: 0>} : vector<8x1xi32>
    %c0_i32 = arith.constant 0 : i32
    %17 = vector.broadcast %c0_i32 : i32 to vector<8x1xi32>
    %18 = arith.cmpi eq, %16, %17 : vector<8x1xi32>
    %19 = vector.extract_strided_slice %14 {offsets = [0, 0], sizes = [1, 128], strides = [1, 1]} : vector<1x1024xf32> to vector<1x128xf32>
    %20 = vector.shape_cast %18 : vector<8x1xi1> to vector<8x1xi1>
    %21 = vector.broadcast %20 : vector<8x1xi1> to vector<8x128xi1>
    %22 = vector.shape_cast %19 : vector<1x128xf32> to vector<1x128xf32>
    %23 = vector.broadcast %22 : vector<1x128xf32> to vector<8x128xf32>
    %24 = arith.select %21, %23, %15 : vector<8x128xi1>, vector<8x128xf32>
    %c1_i32 = arith.constant 1 : i32
    %25 = vector.broadcast %c1_i32 : i32 to vector<8x1xi32>
    %26 = arith.cmpi eq, %16, %25 : vector<8x1xi32>
    %27 = vector.extract_strided_slice %14 {offsets = [0, 128], sizes = [1, 128], strides = [1, 1]} : vector<1x1024xf32> to vector<1x128xf32>
    %28 = vector.shape_cast %26 : vector<8x1xi1> to vector<8x1xi1>
    %29 = vector.broadcast %28 : vector<8x1xi1> to vector<8x128xi1>
    %30 = vector.shape_cast %27 : vector<1x128xf32> to vector<1x128xf32>
    %31 = vector.broadcast %30 : vector<1x128xf32> to vector<8x128xf32>
    %32 = arith.select %29, %31, %24 : vector<8x128xi1>, vector<8x128xf32>
    %c2_i32 = arith.constant 2 : i32
    %33 = vector.broadcast %c2_i32 : i32 to vector<8x1xi32>
    %34 = arith.cmpi eq, %16, %33 : vector<8x1xi32>
    %35 = vector.extract_strided_slice %14 {offsets = [0, 256], sizes = [1, 128], strides = [1, 1]} : vector<1x1024xf32> to vector<1x128xf32>
    %36 = vector.shape_cast %34 : vector<8x1xi1> to vector<8x1xi1>
    %37 = vector.broadcast %36 : vector<8x1xi1> to vector<8x128xi1>
    %38 = vector.shape_cast %35 : vector<1x128xf32> to vector<1x128xf32>
    %39 = vector.broadcast %38 : vector<1x128xf32> to vector<8x128xf32>
    %40 = arith.select %37, %39, %32 : vector<8x128xi1>, vector<8x128xf32>
    %c3_i32 = arith.constant 3 : i32
    %41 = vector.broadcast %c3_i32 : i32 to vector<8x1xi32>
    %42 = arith.cmpi eq, %16, %41 : vector<8x1xi32>
    %43 = vector.extract_strided_slice %14 {offsets = [0, 384], sizes = [1, 128], strides = [1, 1]} : vector<1x1024xf32> to vector<1x128xf32>
    %44 = vector.shape_cast %42 : vector<8x1xi1> to vector<8x1xi1>
    %45 = vector.broadcast %44 : vector<8x1xi1> to vector<8x128xi1>
    %46 = vector.shape_cast %43 : vector<1x128xf32> to vector<1x128xf32>
    %47 = vector.broadcast %46 : vector<1x128xf32> to vector<8x128xf32>
    %48 = arith.select %45, %47, %40 : vector<8x128xi1>, vector<8x128xf32>
    %c4_i32 = arith.constant 4 : i32
    %49 = vector.broadcast %c4_i32 : i32 to vector<8x1xi32>
    %50 = arith.cmpi eq, %16, %49 : vector<8x1xi32>
    %51 = vector.extract_strided_slice %14 {offsets = [0, 512], sizes = [1, 128], strides = [1, 1]} : vector<1x1024xf32> to vector<1x128xf32>
    %52 = vector.shape_cast %50 : vector<8x1xi1> to vector<8x1xi1>
    %53 = vector.broadcast %52 : vector<8x1xi1> to vector<8x128xi1>
    %54 = vector.shape_cast %51 : vector<1x128xf32> to vector<1x128xf32>
    %55 = vector.broadcast %54 : vector<1x128xf32> to vector<8x128xf32>
    %56 = arith.select %53, %55, %48 : vector<8x128xi1>, vector<8x128xf32>
    %c5_i32 = arith.constant 5 : i32
    %57 = vector.broadcast %c5_i32 : i32 to vector<8x1xi32>
    %58 = arith.cmpi eq, %16, %57 : vector<8x1xi32>
    %59 = vector.extract_strided_slice %14 {offsets = [0, 640], sizes = [1, 128], strides = [1, 1]} : vector<1x1024xf32> to vector<1x128xf32>
    %60 = vector.shape_cast %58 : vector<8x1xi1> to vector<8x1xi1>
    %61 = vector.broadcast %60 : vector<8x1xi1> to vector<8x128xi1>
    %62 = vector.shape_cast %59 : vector<1x128xf32> to vector<1x128xf32>
    %63 = vector.broadcast %62 : vector<1x128xf32> to vector<8x128xf32>
    %64 = arith.select %61, %63, %56 : vector<8x128xi1>, vector<8x128xf32>
    %c6_i32 = arith.constant 6 : i32
    %65 = vector.broadcast %c6_i32 : i32 to vector<8x1xi32>
    %66 = arith.cmpi eq, %16, %65 : vector<8x1xi32>
    %67 = vector.extract_strided_slice %14 {offsets = [0, 768], sizes = [1, 128], strides = [1, 1]} : vector<1x1024xf32> to vector<1x128xf32>
    %68 = vector.shape_cast %66 : vector<8x1xi1> to vector<8x1xi1>
    %69 = vector.broadcast %68 : vector<8x1xi1> to vector<8x128xi1>
    %70 = vector.shape_cast %67 : vector<1x128xf32> to vector<1x128xf32>
    %71 = vector.broadcast %70 : vector<1x128xf32> to vector<8x128xf32>
    %72 = arith.select %69, %71, %64 : vector<8x128xi1>, vector<8x128xf32>
    %c7_i32 = arith.constant 7 : i32
    %73 = vector.broadcast %c7_i32 : i32 to vector<8x1xi32>
    %74 = arith.cmpi eq, %16, %73 : vector<8x1xi32>
    %75 = vector.extract_strided_slice %14 {offsets = [0, 896], sizes = [1, 128], strides = [1, 1]} : vector<1x1024xf32> to vector<1x128xf32>
    %76 = vector.shape_cast %74 : vector<8x1xi1> to vector<8x1xi1>
    %77 = vector.broadcast %76 : vector<8x1xi1> to vector<8x128xi1>
    %78 = vector.shape_cast %75 : vector<1x128xf32> to vector<1x128xf32>
    %79 = vector.broadcast %78 : vector<1x128xf32> to vector<8x128xf32>
    %80 = arith.select %77, %79, %72 : vector<8x128xi1>, vector<8x128xf32>
    %c0_10 = arith.constant 0 : index
    %c0_11 = arith.constant 0 : index
    %81 = vector.load %arg4[%c0_10, %c0_11] : memref<1x128xf32, #tpu.memory_space<vmem>>, vector<1x128xf32>
    %82 = vector.broadcast %81 : vector<1x128xf32> to vector<8x128xf32>
    %83 = arith.addf %80, %82 : vector<8x128xf32>
    %cst_12 = arith.constant 0.000000e+00 : f32
    %84 = vector.broadcast %cst_12 : f32 to vector<8x128xf32>
    %85 = arith.maximumf %83, %84 : vector<8x128xf32>
    %86 = vector.extract_strided_slice %85 {offsets = [0, 0], sizes = [7, 128], strides = [1, 1]} : vector<8x128xf32> to vector<7x128xf32>
    %87 = vector.extract_strided_slice %85 {offsets = [1, 0], sizes = [7, 128], strides = [1, 1]} : vector<8x128xf32> to vector<7x128xf32>
    %88 = arith.maximumf %86, %87 : vector<7x128xf32>
    %89 = arith.truncf %88 : vector<7x128xf32> to vector<7x128xbf16>
    %c0_13 = arith.constant 0 : index
    %c0_14 = arith.constant 0 : index
    %90 = vector.load %arg5[%c0_13, %c0_14] : memref<128x1024xbf16, #tpu.memory_space<vmem>>, vector<128x1024xbf16>
    %cst_15 = arith.constant dense<0.000000e+00> : vector<7x1024xf32>
    %91 = tpu.matmul %89, %90, %cst_15 {dimension_numbers = #tpu.dot_dimension_numbers<[1], [0], [0], [1], [0, 0, 1, 1], [], []>} : vector<7x128xbf16>, vector<128x1024xbf16>, vector<7x1024xf32> -> vector<7x1024xf32>
    %cst_16 = arith.constant 0.000000e+00 : f32
    %92 = vector.broadcast %cst_16 : f32 to vector<16x256xf32>
    %93 = tpu.iota {dimensions = array<i32: 0>} : vector<16x7xi32>
    %94 = tpu.iota {dimensions = array<i32: 1>} : vector<16x7xi32>
    %c2_i32_17 = arith.constant 2 : i32
    %95 = vector.broadcast %c2_i32_17 : i32 to vector<16x7xi32>
    %96 = arith.muli %95, %94 : vector<16x7xi32>
    %c0_i32_18 = arith.constant 0 : i32
    %97 = vector.broadcast %c0_i32_18 : i32 to vector<16x7xi32>
    %98 = arith.addi %96, %97 : vector<16x7xi32>
    %99 = arith.cmpi eq, %93, %98 : vector<16x7xi32>
    %100 = arith.extui %99 : vector<16x7xi1> to vector<16x7xi32>
    %101 = arith.sitofp %100 : vector<16x7xi32> to vector<16x7xf32>
    %102 = arith.truncf %101 : vector<16x7xf32> to vector<16x7xbf16>
    %103 = vector.extract_strided_slice %91 {offsets = [0, 0], sizes = [7, 256], strides = [1, 1]} : vector<7x1024xf32> to vector<7x256xf32>
    %104 = arith.truncf %103 : vector<7x256xf32> to vector<7x256xbf16>
    %cst_19 = arith.constant dense<0.000000e+00> : vector<16x256xf32>
    %105 = tpu.matmul %102, %104, %cst_19 {dimension_numbers = #tpu.dot_dimension_numbers<[1], [0], [0], [1], [0, 0, 1, 1], [], []>} : vector<16x7xbf16>, vector<7x256xbf16>, vector<16x256xf32> -> vector<16x256xf32>
    %106 = arith.addf %92, %105 : vector<16x256xf32>
    %c1_i32_20 = arith.constant 1 : i32
    %107 = vector.broadcast %c1_i32_20 : i32 to vector<16x7xi32>
    %108 = arith.addi %96, %107 : vector<16x7xi32>
    %109 = arith.cmpi eq, %93, %108 : vector<16x7xi32>
    %110 = arith.extui %109 : vector<16x7xi1> to vector<16x7xi32>
    %111 = arith.sitofp %110 : vector<16x7xi32> to vector<16x7xf32>
    %112 = arith.truncf %111 : vector<16x7xf32> to vector<16x7xbf16>
    %113 = vector.extract_strided_slice %91 {offsets = [0, 256], sizes = [7, 256], strides = [1, 1]} : vector<7x1024xf32> to vector<7x256xf32>
    %114 = arith.truncf %113 : vector<7x256xf32> to vector<7x256xbf16>
    %cst_21 = arith.constant dense<0.000000e+00> : vector<16x256xf32>
    %115 = tpu.matmul %112, %114, %cst_21 {dimension_numbers = #tpu.dot_dimension_numbers<[1], [0], [0], [1], [0, 0, 1, 1], [], []>} : vector<16x7xbf16>, vector<7x256xbf16>, vector<16x256xf32> -> vector<16x256xf32>
    %116 = arith.addf %106, %115 : vector<16x256xf32>
    %c2_i32_22 = arith.constant 2 : i32
    %117 = vector.broadcast %c2_i32_22 : i32 to vector<16x7xi32>
    %118 = arith.addi %96, %117 : vector<16x7xi32>
    %119 = arith.cmpi eq, %93, %118 : vector<16x7xi32>
    %120 = arith.extui %119 : vector<16x7xi1> to vector<16x7xi32>
    %121 = arith.sitofp %120 : vector<16x7xi32> to vector<16x7xf32>
    %122 = arith.truncf %121 : vector<16x7xf32> to vector<16x7xbf16>
    %123 = vector.extract_strided_slice %91 {offsets = [0, 512], sizes = [7, 256], strides = [1, 1]} : vector<7x1024xf32> to vector<7x256xf32>
    %124 = arith.truncf %123 : vector<7x256xf32> to vector<7x256xbf16>
    %cst_23 = arith.constant dense<0.000000e+00> : vector<16x256xf32>
    %125 = tpu.matmul %122, %124, %cst_23 {dimension_numbers = #tpu.dot_dimension_numbers<[1], [0], [0], [1], [0, 0, 1, 1], [], []>} : vector<16x7xbf16>, vector<7x256xbf16>, vector<16x256xf32> -> vector<16x256xf32>
    %126 = arith.addf %116, %125 : vector<16x256xf32>
    %c3_i32_24 = arith.constant 3 : i32
    %127 = vector.broadcast %c3_i32_24 : i32 to vector<16x7xi32>
    %128 = arith.addi %96, %127 : vector<16x7xi32>
    %129 = arith.cmpi eq, %93, %128 : vector<16x7xi32>
    %130 = arith.extui %129 : vector<16x7xi1> to vector<16x7xi32>
    %131 = arith.sitofp %130 : vector<16x7xi32> to vector<16x7xf32>
    %132 = arith.truncf %131 : vector<16x7xf32> to vector<16x7xbf16>
    %133 = vector.extract_strided_slice %91 {offsets = [0, 768], sizes = [7, 256], strides = [1, 1]} : vector<7x1024xf32> to vector<7x256xf32>
    %134 = arith.truncf %133 : vector<7x256xf32> to vector<7x256xbf16>
    %cst_25 = arith.constant dense<0.000000e+00> : vector<16x256xf32>
    %135 = tpu.matmul %132, %134, %cst_25 {dimension_numbers = #tpu.dot_dimension_numbers<[1], [0], [0], [1], [0, 0, 1, 1], [], []>} : vector<16x7xbf16>, vector<7x256xbf16>, vector<16x256xf32> -> vector<16x256xf32>
    %136 = arith.addf %126, %135 : vector<16x256xf32>
    %c0_26 = arith.constant 0 : index
    %c0_27 = arith.constant 0 : index
    %137 = vector.load %arg6[%c0_26, %c0_27] : memref<1x256xf32, #tpu.memory_space<vmem>>, vector<1x256xf32>
    %138 = vector.broadcast %137 : vector<1x256xf32> to vector<16x256xf32>
    %139 = arith.addf %136, %138 : vector<16x256xf32>
    %cst_28 = arith.constant 0.000000e+00 : f32
    %140 = vector.broadcast %cst_28 : f32 to vector<16x256xf32>
    %141 = arith.maximumf %139, %140 : vector<16x256xf32>
    %142 = vector.extract_strided_slice %141 {offsets = [0, 0], sizes = [15, 256], strides = [1, 1]} : vector<16x256xf32> to vector<15x256xf32>
    %143 = vector.extract_strided_slice %141 {offsets = [1, 0], sizes = [15, 256], strides = [1, 1]} : vector<16x256xf32> to vector<15x256xf32>
    %144 = arith.maximumf %142, %143 : vector<15x256xf32>
    %145 = arith.truncf %144 : vector<15x256xf32> to vector<15x256xbf16>
    %c0_29 = arith.constant 0 : index
    %c0_30 = arith.constant 0 : index
    %146 = vector.load %arg7[%c0_29, %c0_30] : memref<256x2048xbf16, #tpu.memory_space<vmem>>, vector<256x2048xbf16>
    %cst_31 = arith.constant dense<0.000000e+00> : vector<15x2048xf32>
    %147 = tpu.matmul %145, %146, %cst_31 {dimension_numbers = #tpu.dot_dimension_numbers<[1], [0], [0], [1], [0, 0, 1, 1], [], []>} : vector<15x256xbf16>, vector<256x2048xbf16>, vector<15x2048xf32> -> vector<15x2048xf32>
    %cst_32 = arith.constant 0.000000e+00 : f32
    %148 = vector.broadcast %cst_32 : f32 to vector<32x512xf32>
    %149 = tpu.iota {dimensions = array<i32: 0>} : vector<32x15xi32>
    %150 = tpu.iota {dimensions = array<i32: 1>} : vector<32x15xi32>
    %c2_i32_33 = arith.constant 2 : i32
    %151 = vector.broadcast %c2_i32_33 : i32 to vector<32x15xi32>
    %152 = arith.muli %151, %150 : vector<32x15xi32>
    %c0_i32_34 = arith.constant 0 : i32
    %153 = vector.broadcast %c0_i32_34 : i32 to vector<32x15xi32>
    %154 = arith.addi %152, %153 : vector<32x15xi32>
    %155 = arith.cmpi eq, %149, %154 : vector<32x15xi32>
    %156 = arith.extui %155 : vector<32x15xi1> to vector<32x15xi32>
    %157 = arith.sitofp %156 : vector<32x15xi32> to vector<32x15xf32>
    %158 = arith.truncf %157 : vector<32x15xf32> to vector<32x15xbf16>
    %159 = vector.extract_strided_slice %147 {offsets = [0, 0], sizes = [15, 512], strides = [1, 1]} : vector<15x2048xf32> to vector<15x512xf32>
    %160 = arith.truncf %159 : vector<15x512xf32> to vector<15x512xbf16>
    %cst_35 = arith.constant dense<0.000000e+00> : vector<32x512xf32>
    %161 = tpu.matmul %158, %160, %cst_35 {dimension_numbers = #tpu.dot_dimension_numbers<[1], [0], [0], [1], [0, 0, 1, 1], [], []>} : vector<32x15xbf16>, vector<15x512xbf16>, vector<32x512xf32> -> vector<32x512xf32>
    %162 = arith.addf %148, %161 : vector<32x512xf32>
    %c1_i32_36 = arith.constant 1 : i32
    %163 = vector.broadcast %c1_i32_36 : i32 to vector<32x15xi32>
    %164 = arith.addi %152, %163 : vector<32x15xi32>
    %165 = arith.cmpi eq, %149, %164 : vector<32x15xi32>
    %166 = arith.extui %165 : vector<32x15xi1> to vector<32x15xi32>
    %167 = arith.sitofp %166 : vector<32x15xi32> to vector<32x15xf32>
    %168 = arith.truncf %167 : vector<32x15xf32> to vector<32x15xbf16>
    %169 = vector.extract_strided_slice %147 {offsets = [0, 512], sizes = [15, 512], strides = [1, 1]} : vector<15x2048xf32> to vector<15x512xf32>
    %170 = arith.truncf %169 : vector<15x512xf32> to vector<15x512xbf16>
    %cst_37 = arith.constant dense<0.000000e+00> : vector<32x512xf32>
    %171 = tpu.matmul %168, %170, %cst_37 {dimension_numbers = #tpu.dot_dimension_numbers<[1], [0], [0], [1], [0, 0, 1, 1], [], []>} : vector<32x15xbf16>, vector<15x512xbf16>, vector<32x512xf32> -> vector<32x512xf32>
    %172 = arith.addf %162, %171 : vector<32x512xf32>
    %c2_i32_38 = arith.constant 2 : i32
    %173 = vector.broadcast %c2_i32_38 : i32 to vector<32x15xi32>
    %174 = arith.addi %152, %173 : vector<32x15xi32>
    %175 = arith.cmpi eq, %149, %174 : vector<32x15xi32>
    %176 = arith.extui %175 : vector<32x15xi1> to vector<32x15xi32>
    %177 = arith.sitofp %176 : vector<32x15xi32> to vector<32x15xf32>
    %178 = arith.truncf %177 : vector<32x15xf32> to vector<32x15xbf16>
    %179 = vector.extract_strided_slice %147 {offsets = [0, 1024], sizes = [15, 512], strides = [1, 1]} : vector<15x2048xf32> to vector<15x512xf32>
    %180 = arith.truncf %179 : vector<15x512xf32> to vector<15x512xbf16>
    %cst_39 = arith.constant dense<0.000000e+00> : vector<32x512xf32>
    %181 = tpu.matmul %178, %180, %cst_39 {dimension_numbers = #tpu.dot_dimension_numbers<[1], [0], [0], [1], [0, 0, 1, 1], [], []>} : vector<32x15xbf16>, vector<15x512xbf16>, vector<32x512xf32> -> vector<32x512xf32>
    %182 = arith.addf %172, %181 : vector<32x512xf32>
    %c3_i32_40 = arith.constant 3 : i32
    %183 = vector.broadcast %c3_i32_40 : i32 to vector<32x15xi32>
    %184 = arith.addi %152, %183 : vector<32x15xi32>
    %185 = arith.cmpi eq, %149, %184 : vector<32x15xi32>
    %186 = arith.extui %185 : vector<32x15xi1> to vector<32x15xi32>
    %187 = arith.sitofp %186 : vector<32x15xi32> to vector<32x15xf32>
    %188 = arith.truncf %187 : vector<32x15xf32> to vector<32x15xbf16>
    %189 = vector.extract_strided_slice %147 {offsets = [0, 1536], sizes = [15, 512], strides = [1, 1]} : vector<15x2048xf32> to vector<15x512xf32>
    %190 = arith.truncf %189 : vector<15x512xf32> to vector<15x512xbf16>
    %cst_41 = arith.constant dense<0.000000e+00> : vector<32x512xf32>
    %191 = tpu.matmul %188, %190, %cst_41 {dimension_numbers = #tpu.dot_dimension_numbers<[1], [0], [0], [1], [0, 0, 1, 1], [], []>} : vector<32x15xbf16>, vector<15x512xbf16>, vector<32x512xf32> -> vector<32x512xf32>
    %192 = arith.addf %182, %191 : vector<32x512xf32>
    %c0_42 = arith.constant 0 : index
    %c0_43 = arith.constant 0 : index
    %193 = vector.load %arg8[%c0_42, %c0_43] : memref<1x512xf32, #tpu.memory_space<vmem>>, vector<1x512xf32>
    %194 = vector.broadcast %193 : vector<1x512xf32> to vector<32x512xf32>
    %195 = arith.addf %192, %194 : vector<32x512xf32>
    %cst_44 = arith.constant 0.000000e+00 : f32
    %196 = vector.broadcast %cst_44 : f32 to vector<32x512xf32>
    %197 = arith.maximumf %195, %196 : vector<32x512xf32>
    %198 = arith.truncf %197 : vector<32x512xf32> to vector<32x512xbf16>
    %c0_45 = arith.constant 0 : index
    %c0_46 = arith.constant 0 : index
    %199 = vector.load %arg9[%c0_45, %c0_46] : memref<512x128xbf16, #tpu.memory_space<vmem>>, vector<512x128xbf16>
    %cst_47 = arith.constant dense<0.000000e+00> : vector<32x128xf32>
    %200 = tpu.matmul %198, %199, %cst_47 {dimension_numbers = #tpu.dot_dimension_numbers<[1], [0], [0], [1], [0, 0, 1, 1], [], []>} : vector<32x512xbf16>, vector<512x128xbf16>, vector<32x128xf32> -> vector<32x128xf32>
    %c0_48 = arith.constant 0 : index
    %c0_49 = arith.constant 0 : index
    %201 = vector.load %arg10[%c0_48, %c0_49] : memref<1x128xf32, #tpu.memory_space<vmem>>, vector<1x128xf32>
    %202 = vector.broadcast %201 : vector<1x128xf32> to vector<32x128xf32>
    %203 = arith.addf %200, %202 : vector<32x128xf32>
    %cst_50 = arith.constant 0.000000e+00 : f32
    %204 = vector.broadcast %cst_50 : f32 to vector<32x128xf32>
    %205 = arith.maximumf %203, %204 : vector<32x128xf32>
    %c0_51 = arith.constant 0 : index
    %c0_52 = arith.constant 0 : index
    %c0_53 = arith.constant 0 : index
    %206 = vector.load %arg11[%c0_51, %c0_52, %c0_53] : memref<2x32x128xf32, #tpu.memory_space<vmem>>, vector<1x32x128xf32>
    %207 = vector.shape_cast %206 : vector<1x32x128xf32> to vector<32x128xf32>
    %208 = vector.shape_cast %205 : vector<32x128xf32> to vector<1x32x128xf32>
    tpu.vector_store %arg11[%c0_51, %c0_52, %c0_53], %208 {strides = array<i32>} : memref<2x32x128xf32, #tpu.memory_space<vmem>>, vector<1x32x128xf32>,
    %c1 = arith.constant 1 : index
    %c0_54 = arith.constant 0 : index
    %c0_55 = arith.constant 0 : index
    %209 = vector.load %arg1[%c1, %c0_54, %c0_55] : memref<2x1x8xf32, #tpu.memory_space<vmem>>, vector<1x1x8xf32>
    %210 = vector.shape_cast %209 : vector<1x1x8xf32> to vector<1x8xf32>
    %211 = arith.negf %210 : vector<1x8xf32>
    %212 = math.exp %211 : vector<1x8xf32>
    %cst_56 = arith.constant 1.000000e+00 : f32
    %213 = vector.broadcast %cst_56 : f32 to vector<1x8xf32>
    %214 = arith.addf %213, %212 : vector<1x8xf32>
    %215 = arith.divf %213, %214 : vector<1x8xf32>
    %216 = arith.truncf %215 : vector<1x8xf32> to vector<1x8xbf16>
    %c1_57 = arith.constant 1 : index
    %c0_58 = arith.constant 0 : index
    %c0_59 = arith.constant 0 : index
    %217 = vector.load %arg2[%c1_57, %c0_58, %c0_59] : memref<2x8x32xf32, #tpu.memory_space<vmem>>, vector<1x8x32xf32>
    %218 = vector.shape_cast %217 : vector<1x8x32xf32> to vector<8x32xf32>
    %219 = arith.truncf %218 : vector<8x32xf32> to vector<8x32xbf16>
    %cst_60 = arith.constant dense<0.000000e+00> : vector<1x32xf32>
    %220 = tpu.matmul %216, %219, %cst_60 {dimension_numbers = #tpu.dot_dimension_numbers<[1], [0], [0], [1], [0, 0, 1, 1], [], []>} : vector<1x8xbf16>, vector<8x32xbf16>, vector<1x32xf32> -> vector<1x32xf32>
    %221 = arith.truncf %220 : vector<1x32xf32> to vector<1x32xbf16>
    %c0_61 = arith.constant 0 : index
    %c0_62 = arith.constant 0 : index
    %222 = vector.load %arg3[%c0_61, %c0_62] : memref<32x1024xbf16, #tpu.memory_space<vmem>>, vector<32x1024xbf16>
    %cst_63 = arith.constant dense<0.000000e+00> : vector<1x1024xf32>
    %223 = tpu.matmul %221, %222, %cst_63 {dimension_numbers = #tpu.dot_dimension_numbers<[1], [0], [0], [1], [0, 0, 1, 1], [], []>} : vector<1x32xbf16>, vector<32x1024xbf16>, vector<1x1024xf32> -> vector<1x1024xf32>
    %cst_64 = arith.constant 0.000000e+00 : f32
    %224 = vector.broadcast %cst_64 : f32 to vector<8x128xf32>
    %225 = tpu.iota {dimensions = array<i32: 0>} : vector<8x1xi32>
    %c0_i32_65 = arith.constant 0 : i32
    %226 = vector.broadcast %c0_i32_65 : i32 to vector<8x1xi32>
    %227 = arith.cmpi eq, %225, %226 : vector<8x1xi32>
    %228 = vector.extract_strided_slice %223 {offsets = [0, 0], sizes = [1, 128], strides = [1, 1]} : vector<1x1024xf32> to vector<1x128xf32>
    %229 = vector.shape_cast %227 : vector<8x1xi1> to vector<8x1xi1>
    %230 = vector.broadcast %229 : vector<8x1xi1> to vector<8x128xi1>
    %231 = vector.shape_cast %228 : vector<1x128xf32> to vector<1x128xf32>
    %232 = vector.broadcast %231 : vector<1x128xf32> to vector<8x128xf32>
    %233 = arith.select %230, %232, %224 : vector<8x128xi1>, vector<8x128xf32>
    %c1_i32_66 = arith.constant 1 : i32
    %234 = vector.broadcast %c1_i32_66 : i32 to vector<8x1xi32>
    %235 = arith.cmpi eq, %225, %234 : vector<8x1xi32>
    %236 = vector.extract_strided_slice %223 {offsets = [0, 128], sizes = [1, 128], strides = [1, 1]} : vector<1x1024xf32> to vector<1x128xf32>
    %237 = vector.shape_cast %235 : vector<8x1xi1> to vector<8x1xi1>
    %238 = vector.broadcast %237 : vector<8x1xi1> to vector<8x128xi1>
    %239 = vector.shape_cast %236 : vector<1x128xf32> to vector<1x128xf32>
    %240 = vector.broadcast %239 : vector<1x128xf32> to vector<8x128xf32>
    %241 = arith.select %238, %240, %233 : vector<8x128xi1>, vector<8x128xf32>
    %c2_i32_67 = arith.constant 2 : i32
    %242 = vector.broadcast %c2_i32_67 : i32 to vector<8x1xi32>
    %243 = arith.cmpi eq, %225, %242 : vector<8x1xi32>
    %244 = vector.extract_strided_slice %223 {offsets = [0, 256], sizes = [1, 128], strides = [1, 1]} : vector<1x1024xf32> to vector<1x128xf32>
    %245 = vector.shape_cast %243 : vector<8x1xi1> to vector<8x1xi1>
    %246 = vector.broadcast %245 : vector<8x1xi1> to vector<8x128xi1>
    %247 = vector.shape_cast %244 : vector<1x128xf32> to vector<1x128xf32>
    %248 = vector.broadcast %247 : vector<1x128xf32> to vector<8x128xf32>
    %249 = arith.select %246, %248, %241 : vector<8x128xi1>, vector<8x128xf32>
    %c3_i32_68 = arith.constant 3 : i32
    %250 = vector.broadcast %c3_i32_68 : i32 to vector<8x1xi32>
    %251 = arith.cmpi eq, %225, %250 : vector<8x1xi32>
    %252 = vector.extract_strided_slice %223 {offsets = [0, 384], sizes = [1, 128], strides = [1, 1]} : vector<1x1024xf32> to vector<1x128xf32>
    %253 = vector.shape_cast %251 : vector<8x1xi1> to vector<8x1xi1>
    %254 = vector.broadcast %253 : vector<8x1xi1> to vector<8x128xi1>
    %255 = vector.shape_cast %252 : vector<1x128xf32> to vector<1x128xf32>
    %256 = vector.broadcast %255 : vector<1x128xf32> to vector<8x128xf32>
    %257 = arith.select %254, %256, %249 : vector<8x128xi1>, vector<8x128xf32>
    %c4_i32_69 = arith.constant 4 : i32
    %258 = vector.broadcast %c4_i32_69 : i32 to vector<8x1xi32>
    %259 = arith.cmpi eq, %225, %258 : vector<8x1xi32>
    %260 = vector.extract_strided_slice %223 {offsets = [0, 512], sizes = [1, 128], strides = [1, 1]} : vector<1x1024xf32> to vector<1x128xf32>
    %261 = vector.shape_cast %259 : vector<8x1xi1> to vector<8x1xi1>
    %262 = vector.broadcast %261 : vector<8x1xi1> to vector<8x128xi1>
    %263 = vector.shape_cast %260 : vector<1x128xf32> to vector<1x128xf32>
    %264 = vector.broadcast %263 : vector<1x128xf32> to vector<8x128xf32>
    %265 = arith.select %262, %264, %257 : vector<8x128xi1>, vector<8x128xf32>
    %c5_i32_70 = arith.constant 5 : i32
    %266 = vector.broadcast %c5_i32_70 : i32 to vector<8x1xi32>
    %267 = arith.cmpi eq, %225, %266 : vector<8x1xi32>
    %268 = vector.extract_strided_slice %223 {offsets = [0, 640], sizes = [1, 128], strides = [1, 1]} : vector<1x1024xf32> to vector<1x128xf32>
    %269 = vector.shape_cast %267 : vector<8x1xi1> to vector<8x1xi1>
    %270 = vector.broadcast %269 : vector<8x1xi1> to vector<8x128xi1>
    %271 = vector.shape_cast %268 : vector<1x128xf32> to vector<1x128xf32>
    %272 = vector.broadcast %271 : vector<1x128xf32> to vector<8x128xf32>
    %273 = arith.select %270, %272, %265 : vector<8x128xi1>, vector<8x128xf32>
    %c6_i32_71 = arith.constant 6 : i32
    %274 = vector.broadcast %c6_i32_71 : i32 to vector<8x1xi32>
    %275 = arith.cmpi eq, %225, %274 : vector<8x1xi32>
    %276 = vector.extract_strided_slice %223 {offsets = [0, 768], sizes = [1, 128], strides = [1, 1]} : vector<1x1024xf32> to vector<1x128xf32>
    %277 = vector.shape_cast %275 : vector<8x1xi1> to vector<8x1xi1>
    %278 = vector.broadcast %277 : vector<8x1xi1> to vector<8x128xi1>
    %279 = vector.shape_cast %276 : vector<1x128xf32> to vector<1x128xf32>
    %280 = vector.broadcast %279 : vector<1x128xf32> to vector<8x128xf32>
    %281 = arith.select %278, %280, %273 : vector<8x128xi1>, vector<8x128xf32>
    %c7_i32_72 = arith.constant 7 : i32
    %282 = vector.broadcast %c7_i32_72 : i32 to vector<8x1xi32>
    %283 = arith.cmpi eq, %225, %282 : vector<8x1xi32>
    %284 = vector.extract_strided_slice %223 {offsets = [0, 896], sizes = [1, 128], strides = [1, 1]} : vector<1x1024xf32> to vector<1x128xf32>
    %285 = vector.shape_cast %283 : vector<8x1xi1> to vector<8x1xi1>
    %286 = vector.broadcast %285 : vector<8x1xi1> to vector<8x128xi1>
    %287 = vector.shape_cast %284 : vector<1x128xf32> to vector<1x128xf32>
    %288 = vector.broadcast %287 : vector<1x128xf32> to vector<8x128xf32>
    %289 = arith.select %286, %288, %281 : vector<8x128xi1>, vector<8x128xf32>
    %c0_73 = arith.constant 0 : index
    %c0_74 = arith.constant 0 : index
    %290 = vector.load %arg4[%c0_73, %c0_74] : memref<1x128xf32, #tpu.memory_space<vmem>>, vector<1x128xf32>
    %291 = vector.broadcast %290 : vector<1x128xf32> to vector<8x128xf32>
    %292 = arith.addf %289, %291 : vector<8x128xf32>
    %cst_75 = arith.constant 0.000000e+00 : f32
    %293 = vector.broadcast %cst_75 : f32 to vector<8x128xf32>
    %294 = arith.maximumf %292, %293 : vector<8x128xf32>
    %295 = vector.extract_strided_slice %294 {offsets = [0, 0], sizes = [7, 128], strides = [1, 1]} : vector<8x128xf32> to vector<7x128xf32>
    %296 = vector.extract_strided_slice %294 {offsets = [1, 0], sizes = [7, 128], strides = [1, 1]} : vector<8x128xf32> to vector<7x128xf32>
    %297 = arith.maximumf %295, %296 : vector<7x128xf32>
    %298 = arith.truncf %297 : vector<7x128xf32> to vector<7x128xbf16>
    %c0_76 = arith.constant 0 : index
    %c0_77 = arith.constant 0 : index
    %299 = vector.load %arg5[%c0_76, %c0_77] : memref<128x1024xbf16, #tpu.memory_space<vmem>>, vector<128x1024xbf16>
    %cst_78 = arith.constant dense<0.000000e+00> : vector<7x1024xf32>
    %300 = tpu.matmul %298, %299, %cst_78 {dimension_numbers = #tpu.dot_dimension_numbers<[1], [0], [0], [1], [0, 0, 1, 1], [], []>} : vector<7x128xbf16>, vector<128x1024xbf16>, vector<7x1024xf32> -> vector<7x1024xf32>
    %cst_79 = arith.constant 0.000000e+00 : f32
    %301 = vector.broadcast %cst_79 : f32 to vector<16x256xf32>
    %302 = tpu.iota {dimensions = array<i32: 0>} : vector<16x7xi32>
    %303 = tpu.iota {dimensions = array<i32: 1>} : vector<16x7xi32>
    %c2_i32_80 = arith.constant 2 : i32
    %304 = vector.broadcast %c2_i32_80 : i32 to vector<16x7xi32>
    %305 = arith.muli %304, %303 : vector<16x7xi32>
    %c0_i32_81 = arith.constant 0 : i32
    %306 = vector.broadcast %c0_i32_81 : i32 to vector<16x7xi32>
    %307 = arith.addi %305, %306 : vector<16x7xi32>
    %308 = arith.cmpi eq, %302, %307 : vector<16x7xi32>
    %309 = arith.extui %308 : vector<16x7xi1> to vector<16x7xi32>
    %310 = arith.sitofp %309 : vector<16x7xi32> to vector<16x7xf32>
    %311 = arith.truncf %310 : vector<16x7xf32> to vector<16x7xbf16>
    %312 = vector.extract_strided_slice %300 {offsets = [0, 0], sizes = [7, 256], strides = [1, 1]} : vector<7x1024xf32> to vector<7x256xf32>
    %313 = arith.truncf %312 : vector<7x256xf32> to vector<7x256xbf16>
    %cst_82 = arith.constant dense<0.000000e+00> : vector<16x256xf32>
    %314 = tpu.matmul %311, %313, %cst_82 {dimension_numbers = #tpu.dot_dimension_numbers<[1], [0], [0], [1], [0, 0, 1, 1], [], []>} : vector<16x7xbf16>, vector<7x256xbf16>, vector<16x256xf32> -> vector<16x256xf32>
    %315 = arith.addf %301, %314 : vector<16x256xf32>
    %c1_i32_83 = arith.constant 1 : i32
    %316 = vector.broadcast %c1_i32_83 : i32 to vector<16x7xi32>
    %317 = arith.addi %305, %316 : vector<16x7xi32>
    %318 = arith.cmpi eq, %302, %317 : vector<16x7xi32>
    %319 = arith.extui %318 : vector<16x7xi1> to vector<16x7xi32>
    %320 = arith.sitofp %319 : vector<16x7xi32> to vector<16x7xf32>
    %321 = arith.truncf %320 : vector<16x7xf32> to vector<16x7xbf16>
    %322 = vector.extract_strided_slice %300 {offsets = [0, 256], sizes = [7, 256], strides = [1, 1]} : vector<7x1024xf32> to vector<7x256xf32>
    %323 = arith.truncf %322 : vector<7x256xf32> to vector<7x256xbf16>
    %cst_84 = arith.constant dense<0.000000e+00> : vector<16x256xf32>
    %324 = tpu.matmul %321, %323, %cst_84 {dimension_numbers = #tpu.dot_dimension_numbers<[1], [0], [0], [1], [0, 0, 1, 1], [], []>} : vector<16x7xbf16>, vector<7x256xbf16>, vector<16x256xf32> -> vector<16x256xf32>
    %325 = arith.addf %315, %324 : vector<16x256xf32>
    %c2_i32_85 = arith.constant 2 : i32
    %326 = vector.broadcast %c2_i32_85 : i32 to vector<16x7xi32>
    %327 = arith.addi %305, %326 : vector<16x7xi32>
    %328 = arith.cmpi eq, %302, %327 : vector<16x7xi32>
    %329 = arith.extui %328 : vector<16x7xi1> to vector<16x7xi32>
    %330 = arith.sitofp %329 : vector<16x7xi32> to vector<16x7xf32>
    %331 = arith.truncf %330 : vector<16x7xf32> to vector<16x7xbf16>
    %332 = vector.extract_strided_slice %300 {offsets = [0, 512], sizes = [7, 256], strides = [1, 1]} : vector<7x1024xf32> to vector<7x256xf32>
    %333 = arith.truncf %332 : vector<7x256xf32> to vector<7x256xbf16>
    %cst_86 = arith.constant dense<0.000000e+00> : vector<16x256xf32>
    %334 = tpu.matmul %331, %333, %cst_86 {dimension_numbers = #tpu.dot_dimension_numbers<[1], [0], [0], [1], [0, 0, 1, 1], [], []>} : vector<16x7xbf16>, vector<7x256xbf16>, vector<16x256xf32> -> vector<16x256xf32>
    %335 = arith.addf %325, %334 : vector<16x256xf32>
    %c3_i32_87 = arith.constant 3 : i32
    %336 = vector.broadcast %c3_i32_87 : i32 to vector<16x7xi32>
    %337 = arith.addi %305, %336 : vector<16x7xi32>
    %338 = arith.cmpi eq, %302, %337 : vector<16x7xi32>
    %339 = arith.extui %338 : vector<16x7xi1> to vector<16x7xi32>
    %340 = arith.sitofp %339 : vector<16x7xi32> to vector<16x7xf32>
    %341 = arith.truncf %340 : vector<16x7xf32> to vector<16x7xbf16>
    %342 = vector.extract_strided_slice %300 {offsets = [0, 768], sizes = [7, 256], strides = [1, 1]} : vector<7x1024xf32> to vector<7x256xf32>
    %343 = arith.truncf %342 : vector<7x256xf32> to vector<7x256xbf16>
    %cst_88 = arith.constant dense<0.000000e+00> : vector<16x256xf32>
    %344 = tpu.matmul %341, %343, %cst_88 {dimension_numbers = #tpu.dot_dimension_numbers<[1], [0], [0], [1], [0, 0, 1, 1], [], []>} : vector<16x7xbf16>, vector<7x256xbf16>, vector<16x256xf32> -> vector<16x256xf32>
    %345 = arith.addf %335, %344 : vector<16x256xf32>
    %c0_89 = arith.constant 0 : index
    %c0_90 = arith.constant 0 : index
    %346 = vector.load %arg6[%c0_89, %c0_90] : memref<1x256xf32, #tpu.memory_space<vmem>>, vector<1x256xf32>
    %347 = vector.broadcast %346 : vector<1x256xf32> to vector<16x256xf32>
    %348 = arith.addf %345, %347 : vector<16x256xf32>
    %cst_91 = arith.constant 0.000000e+00 : f32
    %349 = vector.broadcast %cst_91 : f32 to vector<16x256xf32>
    %350 = arith.maximumf %348, %349 : vector<16x256xf32>
    %351 = vector.extract_strided_slice %350 {offsets = [0, 0], sizes = [15, 256], strides = [1, 1]} : vector<16x256xf32> to vector<15x256xf32>
    %352 = vector.extract_strided_slice %350 {offsets = [1, 0], sizes = [15, 256], strides = [1, 1]} : vector<16x256xf32> to vector<15x256xf32>
    %353 = arith.maximumf %351, %352 : vector<15x256xf32>
    %354 = arith.truncf %353 : vector<15x256xf32> to vector<15x256xbf16>
    %c0_92 = arith.constant 0 : index
    %c0_93 = arith.constant 0 : index
    %355 = vector.load %arg7[%c0_92, %c0_93] : memref<256x2048xbf16, #tpu.memory_space<vmem>>, vector<256x2048xbf16>
    %cst_94 = arith.constant dense<0.000000e+00> : vector<15x2048xf32>
    %356 = tpu.matmul %354, %355, %cst_94 {dimension_numbers = #tpu.dot_dimension_numbers<[1], [0], [0], [1], [0, 0, 1, 1], [], []>} : vector<15x256xbf16>, vector<256x2048xbf16>, vector<15x2048xf32> -> vector<15x2048xf32>
    %cst_95 = arith.constant 0.000000e+00 : f32
    %357 = vector.broadcast %cst_95 : f32 to vector<32x512xf32>
    %358 = tpu.iota {dimensions = array<i32: 0>} : vector<32x15xi32>
    %359 = tpu.iota {dimensions = array<i32: 1>} : vector<32x15xi32>
    %c2_i32_96 = arith.constant 2 : i32
    %360 = vector.broadcast %c2_i32_96 : i32 to vector<32x15xi32>
    %361 = arith.muli %360, %359 : vector<32x15xi32>
    %c0_i32_97 = arith.constant 0 : i32
    %362 = vector.broadcast %c0_i32_97 : i32 to vector<32x15xi32>
    %363 = arith.addi %361, %362 : vector<32x15xi32>
    %364 = arith.cmpi eq, %358, %363 : vector<32x15xi32>
    %365 = arith.extui %364 : vector<32x15xi1> to vector<32x15xi32>
    %366 = arith.sitofp %365 : vector<32x15xi32> to vector<32x15xf32>
    %367 = arith.truncf %366 : vector<32x15xf32> to vector<32x15xbf16>
    %368 = vector.extract_strided_slice %356 {offsets = [0, 0], sizes = [15, 512], strides = [1, 1]} : vector<15x2048xf32> to vector<15x512xf32>
    %369 = arith.truncf %368 : vector<15x512xf32> to vector<15x512xbf16>
    %cst_98 = arith.constant dense<0.000000e+00> : vector<32x512xf32>
    %370 = tpu.matmul %367, %369, %cst_98 {dimension_numbers = #tpu.dot_dimension_numbers<[1], [0], [0], [1], [0, 0, 1, 1], [], []>} : vector<32x15xbf16>, vector<15x512xbf16>, vector<32x512xf32> -> vector<32x512xf32>
    %371 = arith.addf %357, %370 : vector<32x512xf32>
    %c1_i32_99 = arith.constant 1 : i32
    %372 = vector.broadcast %c1_i32_99 : i32 to vector<32x15xi32>
    %373 = arith.addi %361, %372 : vector<32x15xi32>
    %374 = arith.cmpi eq, %358, %373 : vector<32x15xi32>
    %375 = arith.extui %374 : vector<32x15xi1> to vector<32x15xi32>
    %376 = arith.sitofp %375 : vector<32x15xi32> to vector<32x15xf32>
    %377 = arith.truncf %376 : vector<32x15xf32> to vector<32x15xbf16>
    %378 = vector.extract_strided_slice %356 {offsets = [0, 512], sizes = [15, 512], strides = [1, 1]} : vector<15x2048xf32> to vector<15x512xf32>
    %379 = arith.truncf %378 : vector<15x512xf32> to vector<15x512xbf16>
    %cst_100 = arith.constant dense<0.000000e+00> : vector<32x512xf32>
    %380 = tpu.matmul %377, %379, %cst_100 {dimension_numbers = #tpu.dot_dimension_numbers<[1], [0], [0], [1], [0, 0, 1, 1], [], []>} : vector<32x15xbf16>, vector<15x512xbf16>, vector<32x512xf32> -> vector<32x512xf32>
    %381 = arith.addf %371, %380 : vector<32x512xf32>
    %c2_i32_101 = arith.constant 2 : i32
    %382 = vector.broadcast %c2_i32_101 : i32 to vector<32x15xi32>
    %383 = arith.addi %361, %382 : vector<32x15xi32>
    %384 = arith.cmpi eq, %358, %383 : vector<32x15xi32>
    %385 = arith.extui %384 : vector<32x15xi1> to vector<32x15xi32>
    %386 = arith.sitofp %385 : vector<32x15xi32> to vector<32x15xf32>
    %387 = arith.truncf %386 : vector<32x15xf32> to vector<32x15xbf16>
    %388 = vector.extract_strided_slice %356 {offsets = [0, 1024], sizes = [15, 512], strides = [1, 1]} : vector<15x2048xf32> to vector<15x512xf32>
    %389 = arith.truncf %388 : vector<15x512xf32> to vector<15x512xbf16>
    %cst_102 = arith.constant dense<0.000000e+00> : vector<32x512xf32>
    %390 = tpu.matmul %387, %389, %cst_102 {dimension_numbers = #tpu.dot_dimension_numbers<[1], [0], [0], [1], [0, 0, 1, 1], [], []>} : vector<32x15xbf16>, vector<15x512xbf16>, vector<32x512xf32> -> vector<32x512xf32>
    %391 = arith.addf %381, %390 : vector<32x512xf32>
    %c3_i32_103 = arith.constant 3 : i32
    %392 = vector.broadcast %c3_i32_103 : i32 to vector<32x15xi32>
    %393 = arith.addi %361, %392 : vector<32x15xi32>
    %394 = arith.cmpi eq, %358, %393 : vector<32x15xi32>
    %395 = arith.extui %394 : vector<32x15xi1> to vector<32x15xi32>
    %396 = arith.sitofp %395 : vector<32x15xi32> to vector<32x15xf32>
    %397 = arith.truncf %396 : vector<32x15xf32> to vector<32x15xbf16>
    %398 = vector.extract_strided_slice %356 {offsets = [0, 1536], sizes = [15, 512], strides = [1, 1]} : vector<15x2048xf32> to vector<15x512xf32>
    %399 = arith.truncf %398 : vector<15x512xf32> to vector<15x512xbf16>
    %cst_104 = arith.constant dense<0.000000e+00> : vector<32x512xf32>
    %400 = tpu.matmul %397, %399, %cst_104 {dimension_numbers = #tpu.dot_dimension_numbers<[1], [0], [0], [1], [0, 0, 1, 1], [], []>} : vector<32x15xbf16>, vector<15x512xbf16>, vector<32x512xf32> -> vector<32x512xf32>
    %401 = arith.addf %391, %400 : vector<32x512xf32>
    %c0_105 = arith.constant 0 : index
    %c0_106 = arith.constant 0 : index
    %402 = vector.load %arg8[%c0_105, %c0_106] : memref<1x512xf32, #tpu.memory_space<vmem>>, vector<1x512xf32>
    %403 = vector.broadcast %402 : vector<1x512xf32> to vector<32x512xf32>
    %404 = arith.addf %401, %403 : vector<32x512xf32>
    %cst_107 = arith.constant 0.000000e+00 : f32
    %405 = vector.broadcast %cst_107 : f32 to vector<32x512xf32>
    %406 = arith.maximumf %404, %405 : vector<32x512xf32>
    %407 = arith.truncf %406 : vector<32x512xf32> to vector<32x512xbf16>
    %c0_108 = arith.constant 0 : index
    %c0_109 = arith.constant 0 : index
    %408 = vector.load %arg9[%c0_108, %c0_109] : memref<512x128xbf16, #tpu.memory_space<vmem>>, vector<512x128xbf16>
    %cst_110 = arith.constant dense<0.000000e+00> : vector<32x128xf32>
    %409 = tpu.matmul %407, %408, %cst_110 {dimension_numbers = #tpu.dot_dimension_numbers<[1], [0], [0], [1], [0, 0, 1, 1], [], []>} : vector<32x512xbf16>, vector<512x128xbf16>, vector<32x128xf32> -> vector<32x128xf32>
    %c0_111 = arith.constant 0 : index
    %c0_112 = arith.constant 0 : index
    %410 = vector.load %arg10[%c0_111, %c0_112] : memref<1x128xf32, #tpu.memory_space<vmem>>, vector<1x128xf32>
    %411 = vector.broadcast %410 : vector<1x128xf32> to vector<32x128xf32>
    %412 = arith.addf %409, %411 : vector<32x128xf32>
    %cst_113 = arith.constant 0.000000e+00 : f32
    %413 = vector.broadcast %cst_113 : f32 to vector<32x128xf32>
    %414 = arith.maximumf %412, %413 : vector<32x128xf32>
    %c1_114 = arith.constant 1 : index
    %c0_115 = arith.constant 0 : index
    %c0_116 = arith.constant 0 : index
    %415 = vector.load %arg11[%c1_114, %c0_115, %c0_116] : memref<2x32x128xf32, #tpu.memory_space<vmem>>, vector<1x32x128xf32>
    %416 = vector.shape_cast %415 : vector<1x32x128xf32> to vector<32x128xf32>
    %417 = vector.shape_cast %414 : vector<32x128xf32> to vector<1x32x128xf32>
    tpu.vector_store %arg11[%c1_114, %c0_115, %c0_116], %417 {strides = array<i32>} : memref<2x32x128xf32, #tpu.memory_space<vmem>>, vector<1x32x128xf32>,
    return
  }
  func.func @transform_0(%arg0: i32) -> (i32, i32, i32) {
    %c0_i32 = arith.constant 0 : i32
    %c0_i32_0 = arith.constant 0 : i32
    %c0_i32_1 = arith.constant 0 : i32
    return %arg0, %c0_i32, %c0_i32_0 : i32, i32, i32
  }
  func.func @transform_1(%arg0: i32) -> (i32, i32, i32) {
    %c0_i32 = arith.constant 0 : i32
    %c0_i32_0 = arith.constant 0 : i32
    %c0_i32_1 = arith.constant 0 : i32
    return %arg0, %c0_i32, %c0_i32_0 : i32, i32, i32
  }
  func.func @transform_2(%arg0: i32) -> (i32, i32) {
    %c0_i32 = arith.constant 0 : i32
    %c0_i32_0 = arith.constant 0 : i32
    %c0_i32_1 = arith.constant 0 : i32
    return %c0_i32, %c0_i32_0 : i32, i32
  }
  func.func @transform_3(%arg0: i32) -> (i32, i32) {
    %c0_i32 = arith.constant 0 : i32
    %c0_i32_0 = arith.constant 0 : i32
    %c0_i32_1 = arith.constant 0 : i32
    return %c0_i32, %c0_i32_0 : i32, i32
  }
  func.func @transform_4(%arg0: i32) -> (i32, i32) {
    %c0_i32 = arith.constant 0 : i32
    %c0_i32_0 = arith.constant 0 : i32
    %c0_i32_1 = arith.constant 0 : i32
    return %c0_i32, %c0_i32_0 : i32, i32
  }
  func.func @transform_5(%arg0: i32) -> (i32, i32) {
    %c0_i32 = arith.constant 0 : i32
    %c0_i32_0 = arith.constant 0 : i32
    %c0_i32_1 = arith.constant 0 : i32
    return %c0_i32, %c0_i32_0 : i32, i32
  }
  func.func @transform_6(%arg0: i32) -> (i32, i32) {
    %c0_i32 = arith.constant 0 : i32
    %c0_i32_0 = arith.constant 0 : i32
    %c0_i32_1 = arith.constant 0 : i32
    return %c0_i32, %c0_i32_0 : i32, i32
  }
  func.func @transform_7(%arg0: i32) -> (i32, i32) {
    %c0_i32 = arith.constant 0 : i32
    %c0_i32_0 = arith.constant 0 : i32
    %c0_i32_1 = arith.constant 0 : i32
    return %c0_i32, %c0_i32_0 : i32, i32
  }
  func.func @transform_8(%arg0: i32) -> (i32, i32) {
    %c0_i32 = arith.constant 0 : i32
    %c0_i32_0 = arith.constant 0 : i32
    %c0_i32_1 = arith.constant 0 : i32
    return %c0_i32, %c0_i32_0 : i32, i32
  }
  func.func @transform_9(%arg0: i32) -> (i32, i32) {
    %c0_i32 = arith.constant 0 : i32
    %c0_i32_0 = arith.constant 0 : i32
    %c0_i32_1 = arith.constant 0 : i32
    return %c0_i32, %c0_i32_0 : i32, i32
  }
  func.func @transform_10(%arg0: i32) -> (i32, i32, i32) {
    %c0_i32 = arith.constant 0 : i32
    %c0_i32_0 = arith.constant 0 : i32
    %c0_i32_1 = arith.constant 0 : i32
    return %arg0, %c0_i32, %c0_i32_0 : i32, i32, i32
  }
}

</mosaic_0001>

<bundles_post_ra>
// kernel: tpu_custom_call.1
= control target key start
LH: loop header
LB: loop body
LE: loop exit
PB: predicated region body
PF: predicated region fallthrough
CT: control target
= control target key end

     0   :  { %15 = vsyncpa [#allocation3], 0  ;;  %s10266_s0 = inlined_call_operand.hbm [shape: f32[2,1,8], index: 0, kind: input, shape index: {}]   ;;  %s10267_s1 = inlined_call_operand.hbm [shape: f32[2,8,32], index: 1, kind: input, shape index: {}]   ;;  %s10268_s2 = inlined_call_operand.hbm [shape: bf16[32,1024], index: 2, kind: input, shape index: {}]   ;;  %s10269_s3 = inlined_call_operand.vmem [shape: f32[1,128], index: 3, kind: input, shape index: {}]   ;;  %s10270_s4 = inlined_call_operand.hbm [shape: bf16[128,1024], index: 4, kind: input, shape index: {}]   ;;  %s10271_s5 = inlined_call_operand.vmem [shape: f32[1,256], index: 5, kind: input, shape index: {}]   ;;  %s10272_s6 = inlined_call_operand.hbm [shape: bf16[256,2048], index: 6, kind: input, shape index: {}]   ;;  %s10273_s7 = inlined_call_operand.vmem [shape: f32[1,512], index: 7, kind: input, shape index: {}]   ;;  %s10274_s8 = inlined_call_operand.hbm [shape: bf16[512,128], index: 8, kind: input, shape index: {}]   ;;  %s10275_s9 = inlined_call_operand.vmem [shape: f32[1,128], index: 9, kind: input, shape index: {}]   ;;  %s10276_s10 = inlined_call_operand.hbm [shape: f32[2,32,128], index: 10, kind: output, shape index: {}]  }
   0x1   :  { %16 = vsyncpa [#allocation6], 0 }
   0x2   :  { %17 = vsyncpa [#allocation9], 0 }
   0x3   :  { %18 = vsyncpa [#allocation12], 0 }
   0x4   :  { %19 = vsyncpa [#allocation4], 0  ;;  %s9599_s13 = smov [#allocation5]   ;;  %s9435_s17 = scalar_lea.hbm %s10267_s1, 256 }
   0x5   :  { %s37_s14 = sshll.u32 %s9599_s13, 4  ;;  %p9436_p0 = scmp.ne.s32.totalorder %s10267_s1, %s9435_s17  ;;  %s38_s14 = int_to_ptr.vmem [resolvable:$true] %s37_s14 }
   0x6   :  { %p9439_p1 = scmp.lt.u32.totalorder %s9435_s17, %s10267_s1 }
   0x8   :  { %p9441_p2 = pnand %p9439_p1, %p9436_p0 }
   0xa   :  { %9444 = shalt.err (!%p9441_p2)
}
   0xb   :  { %s9445_s22 = scalar_lea.vmem %s38_s14, 256  ;;  %p9450_p4 = scmp.lt.s32.totalorder %s38_s14, %s38_s14 }
   0xc   :  { %p9446_p3 = scmp.ne.s32.totalorder %s38_s14, %s9445_s22  ;;  %p9451_p5 = scmp.lt.s32.totalorder %s9445_s22, %s9445_s22 }
   0xe   :  { %p9452_p6 = por %p9451_p5, %p9450_p4 }
  0x10   :  { %p9453_p7 = pnand %p9452_p6, %p9446_p3 }
  0x12   :  { %9456 = shalt.err (!%p9453_p7)
}
  0x13   :  { %s9600_s23 = smov 128   ;;  %s9601_s24 = smov 8  }
  0x14   :  { %43 = dma.hbm_to_vmem [thread:$0]  %s10267_s1, 256, %s38_s14, [#allocation6], %s9600_s23, %s9600_s23, %s9601_s24  }
  0x15   :  { %s9602_s27 = smov [#allocation8]   ;;  %s9603_s29 = smov [#allocation2]  }
  0x16   :  { %s63_s28 = sshll.u32 %s9602_s27, 4  ;;  %s25_s30 = sshll.u32 %s9603_s29, 4  ;;  %s64_s28 = int_to_ptr.vmem [resolvable:$true] %s63_s28  ;;  %s26_s30 = int_to_ptr.vmem [resolvable:$true] %s25_s30 }
  0x17   :  { %s9457_s13 = scalar_lea.hbm %s10270_s4, 8192 }
  0x18   :  { %p9458_p8 = scmp.ne.s32.totalorder %s10270_s4, %s9457_s13  ;;  %p9461_p9 = scmp.lt.u32.totalorder %s9457_s13, %s10270_s4 }
  0x1a   :  { %p9463_p10 = pnand %p9461_p9, %p9458_p8 }
  0x1c   :  { %9466 = shalt.err (!%p9463_p10)
}
  0x1d   :  { %s9467_s1 = scalar_lea.vmem %s64_s28, 8192  ;;  %p9472_p12 = scmp.lt.s32.totalorder %s64_s28, %s64_s28 }
  0x1e   :  { %p9468_p11 = scmp.ne.s32.totalorder %s64_s28, %s9467_s1  ;;  %p9473_p13 = scmp.lt.s32.totalorder %s9467_s1, %s9467_s1 }
  0x20   :  { %p9474_p0 = por %p9473_p13, %p9472_p12 }
  0x22   :  { %p9475_p1 = pnand %p9474_p0, %p9468_p11 }
  0x24   :  { %9478 = shalt.err (!%p9475_p1)
}
  0x25   :  { %s9604_s14 = smov 512   ;;  %s9605_s19 = smov 32  }
  0x26   :  { %69 = dma.hbm_to_vmem [thread:$0]  %s10270_s4, 8192, %s64_s28, [#allocation9], %s9604_s14, %s9604_s14, %s9605_s19  }
  0x27   :  { %s9479_s26 = scalar_lea.hbm %s10266_s0, 32 }
  0x28   :  { %p9480_p2 = scmp.ne.s32.totalorder %s10266_s0, %s9479_s26  ;;  %p9483_p3 = scmp.lt.u32.totalorder %s9479_s26, %s10266_s0 }
  0x2a   :  { %p9485_p4 = pnand %p9483_p3, %p9480_p2 }
  0x2c   :  { %9488 = shalt.err (!%p9485_p4)
}
  0x2d   :  { %s9489_s13 = scalar_lea.vmem %s26_s30, 32  ;;  %p9494_p6 = scmp.lt.s32.totalorder %s26_s30, %s26_s30 }
  0x2e   :  { %p9490_p5 = scmp.ne.s32.totalorder %s26_s30, %s9489_s13  ;;  %p9495_p7 = scmp.lt.s32.totalorder %s9489_s13, %s9489_s13 }
  0x30   :  { %p9496_p8 = por %p9495_p7, %p9494_p6 }
  0x32   :  { %p9497_p9 = pnand %p9496_p8, %p9490_p5 }
  0x34   :  { %9500 = shalt.err (!%p9497_p9)
}
  0x35   :  { %s9606_s4 = smov 16   ;;  %s9607_s28 = smov 1  }
  0x36   :  { %31 = dma.hbm_to_vmem [thread:$0]  %s10266_s0, 32, %s26_s30, [#allocation3], %s9606_s4, %s9606_s4, %s9607_s28  }
  0x37   :  { %s9608_s17 = smov [#allocation7]   ;;  %s9609_s1 = smov [#allocation10]  }
  0x38   :  { %s49_s18 = sshll.u32 %s9608_s17, 4  ;;  %s77_s20 = sshll.u32 %s9609_s1, 4  ;;  %s50_s18 = int_to_ptr.vmem [resolvable:$true] %s49_s18  ;;  %s78_s20 = int_to_ptr.vmem [resolvable:$true] %s77_s20 }
  0x39   :  { %s9501_s25 = scalar_lea.hbm %s10268_s2, 2048 }
  0x3a   :  { %p9502_p10 = scmp.ne.s32.totalorder %s10268_s2, %s9501_s25  ;;  %p9505_p11 = scmp.lt.u32.totalorder %s9501_s25, %s10268_s2 }
  0x3c   :  { %p9507_p12 = pnand %p9505_p11, %p9502_p10 }
  0x3e   :  { %9510 = shalt.err (!%p9507_p12)
}
  0x3f   :  { %s9511_s0 = scalar_lea.vmem %s50_s18, 2048  ;;  %p9516_p0 = scmp.lt.s32.totalorder %s50_s18, %s50_s18 }
  0x40   :  { %p9512_p13 = scmp.ne.s32.totalorder %s50_s18, %s9511_s0  ;;  %p9517_p1 = scmp.lt.s32.totalorder %s9511_s0, %s9511_s0 }
  0x42   :  { %p9518_p2 = por %p9517_p1, %p9516_p0 }
  0x44   :  { %p9519_p3 = pnand %p9518_p2, %p9512_p13 }
  0x46   :  { %9522 = shalt.err (!%p9519_p3)
}
  0x47   :  { %55 = dma.hbm_to_vmem [thread:$0]  %s10268_s2, 2048, %s50_s18, [#allocation6], %s9604_s14, %s9604_s14, %s9605_s19  }
  0x48   :  { %s9523_s28 = scalar_lea.hbm %s10272_s6, 32768 }
  0x49   :  { %p9524_p4 = scmp.ne.s32.totalorder %s10272_s6, %s9523_s28  ;;  %p9527_p5 = scmp.lt.u32.totalorder %s9523_s28, %s10272_s6 }
  0x4b   :  { %p9529_p6 = pnand %p9527_p5, %p9524_p4 }
  0x4d   :  { %9532 = shalt.err (!%p9529_p6)
}
  0x4e   :  { %s9533_s21 = scalar_lea.vmem %s78_s20, 32768  ;;  %p9538_p8 = scmp.lt.s32.totalorder %s78_s20, %s78_s20 }
  0x4f   :  { %p9534_p7 = scmp.ne.s32.totalorder %s78_s20, %s9533_s21  ;;  %p9539_p9 = scmp.lt.s32.totalorder %s9533_s21, %s9533_s21 }
  0x51   :  { %p9540_p10 = por %p9539_p9, %p9538_p8 }
  0x53   :  { %p9541_p11 = pnand %p9540_p10, %p9534_p7 }
  0x55   :  { %9544 = shalt.err (!%p9541_p11)
}
  0x56   :  { %s9610_s2 = smov 1024   ;;  %s9611_s14 = smov 64  }
  0x57   :  { %83 = dma.hbm_to_vmem [thread:$0]  %s10272_s6, 32768, %s78_s20, [#allocation9], %s9610_s2, %s9610_s2, %s9611_s14  }
  0x58   :  { %s9612_s22 = smov [#allocation11]   ;;  %s9545_s29 = scalar_lea.hbm %s10274_s8, 4096 }
  0x59   :  { %s91_s25 = sshll.u32 %s9612_s22, 4  ;;  %p9546_p12 = scmp.ne.s32.totalorder %s10274_s8, %s9545_s29  ;;  %s92_s25 = int_to_ptr.vmem [resolvable:$true] %s91_s25 }
  0x5a   :  { %p9549_p13 = scmp.lt.u32.totalorder %s9545_s29, %s10274_s8 }
  0x5c   :  { %p9551_p0 = pnand %p9549_p13, %p9546_p12 }
  0x5e   :  { %9554 = shalt.err (!%p9551_p0)
}
  0x5f   :  { %s9555_s13 = scalar_lea.vmem %s92_s25, 4096  ;;  %p9560_p2 = scmp.lt.s32.totalorder %s92_s25, %s92_s25 }
  0x60   :  { %p9556_p1 = scmp.ne.s32.totalorder %s92_s25, %s9555_s13  ;;  %p9561_p3 = scmp.lt.s32.totalorder %s9555_s13, %s9555_s13 }
  0x62   :  { %p9562_p4 = por %p9561_p3, %p9560_p2 }
  0x64   :  { %p9563_p5 = pnand %p9562_p4, %p9556_p1 }
  0x66   :  { %9566 = shalt.err (!%p9563_p5)
}
  0x67   :  { %s9613_s6 = smov 4  }
  0x68   :  { %97 = dma.hbm_to_vmem [thread:$0]  %s10274_s8, 4096, %s92_s25, [#allocation12], %s9611_s14, %s9611_s14, %s9613_s6  }
  0x69   :  { %9589 = dma.done.wait [#allocation3], 32  }
  0x6a   :  { %9590 = vsyncadd [#allocation3], 4294967264 }
  0x6b   :  { %9591 = dma.done.wait [#allocation6], 2304  }
  0x6c   :  { %9592 = vsyncadd [#allocation6], 4294964992 }
  0x6d   :  { %9593 = dma.done.wait [#allocation9], 40960  }
  0x6e   :  { %9594 = vsyncadd [#allocation9], 4294926336 }
  0x6f   :  { %9595 = dma.done.wait [#allocation12], 4096  }
  0x70   :  { %9596 = vsyncadd [#allocation12], 4294963200  ;;  %v9614_v0 = vmov 0.0   ;;  %vm9615_vm0 = vmmov 0   ;;  %v127_v1 = vld [vmem:[#allocation5] sm:$0xff]  ;;  %vm133_vm1 = vcmask 1043456  }
  0x71   :  { %9211 = vmatprep.subr.bf16.mxu0 %v9614_v0  ;;  %9213 = vmatprep.mubr.msk.bf16.mxu0 %vm9615_vm0, %v9614_v0  ;;  %v119_v2 = vld [vmem:[#allocation2] sm:$0x1]  ;;  %v178_v3 = vld [vmem:[#allocation7] sm:$0xff]  ;;  %v128_v4 = vpack.c.bf16 %v127_v1, %v127_v1  ;;  %vm129_vm2 = vcmask 64512   ;;  %v180_v26 = vld [vmem:[#allocation7 + $0x10] sm:$0xff]  ;;  %v9616_v31 = vmov 0  }
  0x72   :  { %v8287_v5 = vmul.f32 -1.442695, %v119_v2  ;;  %v182_v6 = vld [vmem:[#allocation7 + $0x20] sm:$0xff]  ;;  %v179_v7 = vld [vmem:[#allocation7 + $0x8] sm:$0xff]  ;;  %v184_v27 = vld [vmem:[#allocation7 + $0x30] sm:$0xff]  ;;  %310 = vmatprep.mubr.bf16.mxu1 %v9616_v31  ;;  %vm274_vm3 = vcmask 261120  }
  0x73   :  { %v183_v8 = vld [vmem:[#allocation7 + $0x28] sm:$0xff]  ;;  %v8290_v9 = vcombine.high %v178_v3, %v182_v6  ;;  %v8289_v11 = vcombine.low %v178_v3, %v182_v6  ;;  %v186_v12 = vld [vmem:[#allocation7 + $0x40] sm:$0xff]  ;;  %v135_v14 = vsel %vm133_vm1, %v128_v4, 0  ;;  %v181_v28 = vld [vmem:[#allocation7 + $0x18] sm:$0xff]  ;;  %v8294_v29 = vcombine.high %v180_v26, %v184_v27 }
  0x74   :  { %v8292_v10 = vcombine.high %v179_v7, %v183_v8  ;;  %v190_v13 = vld [vmem:[#allocation7 + $0x60] sm:$0xff]  ;;  %9427 = vpow2.f32 %v8287_v5  ;;  %9212 = vmatpush3.bf16.msra.mxu0 %v135_v14  ;;  %v187_v18 = vld [vmem:[#allocation7 + $0x48] sm:$0xff]  ;;  %v8291_v21 = vcombine.low %v179_v7, %v183_v8  ;;  %v185_v30 = vld [vmem:[#allocation7 + $0x38] sm:$0xff]  ;;  %v8293_v32 = vcombine.low %v180_v26, %v184_v27 }
  0x75   :  { %v8298_v15 = vcombine.high %v186_v12, %v190_v13  ;;  %278 = vmatprep.subr.bf16.mxu1 %v8290_v9  ;;  %v191_v19 = vld [vmem:[#allocation7 + $0x68] sm:$0xff]  ;;  %v8297_v25 = vcombine.low %v186_v12, %v190_v13  ;;  %v8295_v33 = vcombine.low %v181_v28, %v185_v30  ;;  %v8296_v34 = vcombine.high %v181_v28, %v185_v30  ;;  %v188_v35 = vld [vmem:[#allocation7 + $0x50] sm:$0xff]  ;;  %v189_v37 = vld [vmem:[#allocation7 + $0x58] sm:$0xff] }
  0x76   :  { %319 = vmatprep.subr.bf16.mxu0 %v8292_v10  ;;  %279 = vmatpush1.bf16.msra.mxu1 %v8289_v11  ;;  %v8300_v23 = vcombine.high %v187_v18, %v191_v19  ;;  %v8299_v24 = vcombine.low %v187_v18, %v191_v19  ;;  %v192_v36 = vld [vmem:[#allocation7 + $0x70] sm:$0xff]  ;;  %v193_v38 = vld [vmem:[#allocation7 + $0x78] sm:$0xff]  ;;  %v522_v44 = vld [vmem:[#allocation8] sm:$0xff]  ;;  %vm1097_vm12 = vcmask 1042432   ;;  %vm10278_vm15 = vcmask 56320  }
  0x77   :  { %280 = vmatprep.subr.bf16.mxu1 %v8298_v15  ;;  %v8302_v42 = vcombine.high %v188_v35, %v192_v36  ;;  %v8304_v43 = vcombine.high %v189_v37, %v193_v38  ;;  %v526_v46 = vld [vmem:[#allocation8 + $0x20] sm:$0xff]  ;;  %v523_v47 = vld [vmem:[#allocation8 + $0x8] sm:$0xff]  ;;  %v8301_v50 = vcombine.low %v188_v35, %v192_v36  ;;  %v8303_v51 = vcombine.low %v189_v37, %v193_v38 }
  0x78   :  { %v527_v48 = vld [vmem:[#allocation8 + $0x28] sm:$0xff]  ;;  %v8311_v52 = vcombine.high %v522_v44, %v526_v46  ;;  %v530_v54 = vld [vmem:[#allocation8 + $0x40] sm:$0xff]  ;;  %v8310_v58 = vcombine.low %v522_v44, %v526_v46 }
  0x79   :  { %v8313_v53 = vcombine.high %v523_v47, %v527_v48  ;;  %v534_v55 = vld [vmem:[#allocation8 + $0x60] sm:$0xff]  ;;  %v531_v56 = vld [vmem:[#allocation8 + $0x48] sm:$0xff]  ;;  %v8312_v59 = vcombine.low %v523_v47, %v527_v48 }
  0x7a   :  { %281 = vmatpush1.bf16.msra.mxu1 %v8297_v25  ;;  %v535_v57 = vld [vmem:[#allocation8 + $0x68] sm:$0xff]  ;;  %v8319_v60 = vcombine.high %v530_v54, %v534_v55  ;;  %v8318_v62 = vcombine.low %v530_v54, %v534_v55  ;;  %v538_v1 = vld [vmem:[#allocation8 + $0x80] sm:$0xff]  ;;  %v9780_v55 = vld [vmem:[#allocation8 + $0x38] sm:$0xff] }
  0x7b   :  { %360 = vmatprep.subr.bf16.mxu1 %v8294_v29  ;;  %v8321_v61 = vcombine.high %v531_v56, %v535_v57  ;;  %v8320_v63 = vcombine.low %v531_v56, %v535_v57  ;;  %v542_v2 = vld [vmem:[#allocation8 + $0xa0] sm:$0xff]  ;;  %v539_v3 = vld [vmem:[#allocation8 + $0x88] sm:$0xff] }
  0x7c   :  { %v8327_v4 = vcombine.high %v538_v1, %v542_v2  ;;  %v543_v5 = vld [vmem:[#allocation8 + $0xa8] sm:$0xff]  ;;  %v8326_v6 = vcombine.low %v538_v1, %v542_v2  ;;  %v546_v9 = vld [vmem:[#allocation8 + $0xc0] sm:$0xff] }
  0x7d   :  { %v8328_v7 = vcombine.low %v539_v3, %v543_v5  ;;  %v8329_v8 = vcombine.high %v539_v3, %v543_v5  ;;  %v550_v10 = vld [vmem:[#allocation8 + $0xe0] sm:$0xff]  ;;  %v547_v11 = vld [vmem:[#allocation8 + $0xc8] sm:$0xff] }
  0x7e   :  { %v9428_v16 = vpop.eup %9427  ;;  %v8335_v12 = vcombine.high %v546_v9, %v550_v10  ;;  %v551_v13 = vld [vmem:[#allocation8 + $0xe8] sm:$0xff]  ;;  %v8334_v14 = vcombine.low %v546_v9, %v550_v10  ;;  %v558_v18 = vld [vmem:[#allocation8 + $0x120] sm:$0xff] }
  0x7f   :  { %v123_v17 = vadd.f32 1.0, %v9428_v16  ;;  %v8336_v15 = vcombine.low %v547_v11, %v551_v13  ;;  %v8337_v16 = vcombine.high %v547_v11, %v551_v13  ;;  %v555_v19 = vld [vmem:[#allocation8 + $0x108] sm:$0xff]  ;;  %v562_v25 = vld [vmem:[#allocation8 + $0x140] sm:$0xff] }
  0x80   :  { %v566_v26 = vld [vmem:[#allocation8 + $0x160] sm:$0xff]  ;;  %v563_v27 = vld [vmem:[#allocation8 + $0x148] sm:$0xff] }
  0x81   :  { %9429 = vrcp.f32 %v123_v17  ;;  %v554_v17 = vld [vmem:[#allocation8 + $0x100] sm:$0xff]  ;;  %v8351_v28 = vcombine.high %v562_v25, %v566_v26  ;;  %v567_v29 = vld [vmem:[#allocation8 + $0x168] sm:$0xff]  ;;  %v8350_v30 = vcombine.low %v562_v25, %v566_v26 }
  0x82   :  { %v574_v35 = vld [vmem:[#allocation8 + $0x1a0] sm:$0xff]  ;;  %v571_v36 = vld [vmem:[#allocation8 + $0x188] sm:$0xff] }
  0x83   :  { %v575_v38 = vld [vmem:[#allocation8 + $0x1a8] sm:$0xff] }
  0x84   :  { %v579_v44 = vld [vmem:[#allocation8 + $0x1c8] sm:$0xff] }
  0x85   :  { %v583_v46 = vld [vmem:[#allocation8 + $0x1e8] sm:$0xff] }
  0x86   :  { %v8368_v48 = vcombine.low %v579_v44, %v583_v46 }
  0x8b   :  { %v9430_v20 = vpop.eup %9429 }
  0x8c   :  { %v126_v22 = vpack.c.bf16 %v9430_v20, %v9430_v20  ;;  %v8343_v20 = vcombine.high %v554_v17, %v558_v18 }
  0x8e   :  { %9214 = vmatmul.mubr.msk.bf16.vlgmr.msra.gmra.mrb[0].mxu0 %vm129_vm2, %v126_v22  ;;  %v8342_v22 = vcombine.low %v554_v17, %v558_v18 }
  0x8f   :  { %320 = vmatpush1.bf16.msra.mxu0 %v8291_v21  ;;  %351 = vmatprep.mubr.bf16.mxu0 %v9616_v31  ;;  %v559_v21 = vld [vmem:[#allocation8 + $0x128] sm:$0xff] }
  0x90   :  { %321 = vmatprep.subr.bf16.mxu0 %v8300_v23  ;;  %v8344_v23 = vcombine.low %v555_v19, %v559_v21 }
  0x93   :  { %322 = vmatpush1.bf16.msra.mxu0 %v8299_v24  ;;  %v8345_v24 = vcombine.high %v555_v19, %v559_v21 }
  0x94   :  { %401 = vmatprep.subr.bf16.mxu0 %v8296_v34  ;;  %v570_v34 = vld [vmem:[#allocation8 + $0x180] sm:$0xff] }
  0x95   :  { %v8359_v37 = vcombine.high %v570_v34, %v574_v35 }
 0x161   :  { %v171_v39 = vpop.f32.mrb[0].mxu0 }
 0x162   :  { %v177_v40 = vpack.c.bf16 %v171_v39, %v171_v39  ;;  %v9215_v41 = vpop.f32.mrb[1].mxu0  ;;  %v8358_v39 = vcombine.low %v570_v34, %v574_v35  ;;  %v532_v35 = vld [vmem:[#allocation8 + $0x50] sm:$0xff] }
 0x163   :  { %v174_v45 = vpop.f32.mrb[2].mxu0  ;;  %v8361_v41 = vcombine.high %v571_v36, %v575_v38 }
 0x164   :  { %v9216_v49 = vpop.f32.mrb[3].mxu0  ;;  %8305 = vmatmul.mubr.msk.bf16.vlgmr.msra.gmra.mrb[0].mxu1 %vm274_vm3, %v177_v40  ;;  %8306 = vmatmul.mubr.msk.bf16.vlgmr.msra.gmra.mrb[4].mxu0 %vm274_vm3, %v177_v40 }
 0x165   :  { %361 = vmatpush1.bf16.msra.mxu1 %v8293_v32  ;;  %402 = vmatpush1.bf16.msra.mxu0 %v8295_v33  ;;  %v8352_v32 = vcombine.low %v563_v27, %v567_v29  ;;  %v8353_v33 = vcombine.high %v563_v27, %v567_v29  ;;  %v8369_v49 = vcombine.high %v579_v44, %v583_v46  ;;  %v544_v44 = vld [vmem:[#allocation8 + $0xb0] sm:$0xff]  ;;  %v545_v46 = vld [vmem:[#allocation8 + $0xb8] sm:$0xff] }
 0x166   :  { %362 = vmatprep.subr.bf16.mxu1 %v8302_v42  ;;  %403 = vmatprep.subr.bf16.mxu0 %v8304_v43  ;;  %v578_v42 = vld [vmem:[#allocation8 + $0x1c0] sm:$0xff] }
 0x167   :  { %392 = vmatprep.mubr.bf16.mxu1 %v9616_v31  ;;  %433 = vmatprep.mubr.bf16.mxu0 %v9616_v31  ;;  %v582_v43 = vld [vmem:[#allocation8 + $0x1e0] sm:$0xff] }
 0x168   :  { %v8367_v45 = vcombine.high %v578_v42, %v582_v43  ;;  %v8366_v47 = vcombine.low %v578_v42, %v582_v43  ;;  %v540_v43 = vld [vmem:[#allocation8 + $0x90] sm:$0xff] }
 0x169   :  { %363 = vmatpush1.bf16.msra.mxu1 %v8301_v50  ;;  %404 = vmatpush1.bf16.msra.mxu0 %v8303_v51  ;;  %v9770_v50 = vld [vmem:[#allocation8 + $0x10] sm:$0xff] }
 0x16a   :  { %906 = vmatprep.subr.bf16.mxu1 %v8311_v52  ;;  %947 = vmatprep.subr.bf16.mxu0 %v8313_v53  ;;  %v9772_v51 = vld [vmem:[#allocation8 + $0x30] sm:$0xff]  ;;  %v9774_v52 = vld [vmem:[#allocation8 + $0x18] sm:$0xff] }
 0x16b   :  { %v8314_v53 = vcombine.low %v9770_v50, %v9772_v51  ;;  %v8315_v54 = vcombine.high %v9770_v50, %v9772_v51  ;;  %v8316_v56 = vcombine.low %v9774_v52, %v9780_v55  ;;  %v8317_v57 = vcombine.high %v9774_v52, %v9780_v55  ;;  %v556_v55 = vld [vmem:[#allocation8 + $0x110] sm:$0xff] }
 0x16c   :  { %8307 = vmatmul.mubr.msk.bf16.vlgmr.msra.gmra.mrb[4].mxu1 %vm274_vm3, %v177_v40  ;;  %8308 = vmatmul.mubr.msk.bf16.vlgmr.msra.gmra.mrb[8].mxu0 %vm274_vm3, %v177_v40  ;;  %v8360_v40 = vcombine.low %v571_v36, %v575_v38  ;;  %v536_v36 = vld [vmem:[#allocation8 + $0x70] sm:$0xff]  ;;  %v537_v38 = vld [vmem:[#allocation8 + $0x78] sm:$0xff]  ;;  %v8330_v50 = vcombine.low %v540_v43, %v544_v44 }
 0x16d   :  { %907 = vmatpush1.bf16.msra.mxu1 %v8310_v58  ;;  %948 = vmatpush1.bf16.msra.mxu0 %v8312_v59  ;;  %v442_v58 = vlaneseq }
 0x16e   :  { %908 = vmatprep.subr.bf16.mxu1 %v8319_v60  ;;  %949 = vmatprep.subr.bf16.mxu0 %v8321_v61 }
 0x16f   :  { %938 = vmatprep.mubr.bf16.mxu1 %v9616_v31  ;;  %979 = vmatprep.mubr.bf16.mxu0 %v9616_v31  ;;  %v9787_v59 = vshrl.u32 %v442_v58, 7 }
 0x171   :  { %909 = vmatpush1.bf16.msra.mxu1 %v8318_v62  ;;  %950 = vmatpush1.bf16.msra.mxu0 %v8320_v63  ;;  %v9790_v60 = vsub.s32 0, %v9787_v59  ;;  %vm444_vm4 = vcmp.eq.s32.totalorder %v9787_v59, 0  ;;  %vm452_vm5 = vcmp.eq.s32.totalorder %v9787_v59, 1  ;;  %vm460_vm6 = vcmp.eq.s32.totalorder %v9787_v59, 2 }
 0x172   :  { %910 = vmatprep.subr.bf16.mxu1 %v8327_v4  ;;  %951 = vmatprep.subr.bf16.mxu0 %v8329_v8  ;;  %vm468_vm7 = vcmp.eq.s32.totalorder %v9787_v59, 3  ;;  %vm476_vm8 = vcmp.eq.s32.totalorder %v9787_v59, 4  ;;  %vm484_vm9 = vcmp.eq.s32.totalorder %v9787_v59, 5  ;;  %vm492_vm10 = vcmp.eq.s32.totalorder %v9787_v59, 6 }
 0x173   :  { %vm500_vm11 = vcmp.eq.s32.totalorder %v9787_v59, 7 }
 0x175   :  { %911 = vmatpush1.bf16.msra.mxu1 %v8326_v6  ;;  %952 = vmatpush1.bf16.msra.mxu0 %v8328_v7 }
 0x176   :  { %912 = vmatprep.subr.bf16.mxu1 %v8335_v12  ;;  %953 = vmatprep.subr.bf16.mxu0 %v8337_v16 }
 0x179   :  { %913 = vmatpush1.bf16.msra.mxu1 %v8334_v14  ;;  %954 = vmatpush1.bf16.msra.mxu0 %v8336_v15 }
 0x17a   :  { %914 = vmatprep.subr.bf16.mxu1 %v8343_v20  ;;  %955 = vmatprep.subr.bf16.mxu0 %v8345_v24 }
 0x17d   :  { %915 = vmatpush1.bf16.msra.mxu1 %v8342_v22  ;;  %956 = vmatpush1.bf16.msra.mxu0 %v8344_v23 }
 0x17e   :  { %916 = vmatprep.subr.bf16.mxu1 %v8351_v28  ;;  %957 = vmatprep.subr.bf16.mxu0 %v8353_v33  ;;  %v8309_v28 = vld [vmem:[%s10269_s3] ss:$0 sm:$0xff] }
 0x181   :  { %917 = vmatpush1.bf16.msra.mxu1 %v8350_v30  ;;  %958 = vmatpush1.bf16.msra.mxu0 %v8352_v32 }
 0x182   :  { %918 = vmatprep.subr.bf16.mxu1 %v8359_v37  ;;  %959 = vmatprep.subr.bf16.mxu0 %v8361_v41  ;;  %v533_v37 = vld [vmem:[#allocation8 + $0x58] sm:$0xff]  ;;  %v8323_v41 = vcombine.high %v532_v35, %v536_v36 }
 0x183   :  { %v8325_v42 = vcombine.high %v533_v37, %v537_v38 }
 0x185   :  { %919 = vmatpush1.bf16.msra.mxu1 %v8358_v39  ;;  %960 = vmatpush1.bf16.msra.mxu0 %v8360_v40 }
 0x186   :  { %920 = vmatprep.subr.bf16.mxu1 %v8367_v45  ;;  %961 = vmatprep.subr.bf16.mxu0 %v8369_v49  ;;  %v541_v45 = vld [vmem:[#allocation8 + $0x98] sm:$0xff]  ;;  %v8331_v49 = vcombine.high %v540_v43, %v544_v44  ;;  %v1406_v43 = vld [vmem:[#allocation10 + $0x100] sm:$0xff] }
 0x187   :  { %v8332_v51 = vcombine.low %v541_v45, %v545_v46  ;;  %v1414_v44 = vld [vmem:[#allocation10 + $0x140] sm:$0xff] }
 0x189   :  { %921 = vmatpush1.bf16.msra.mxu1 %v8366_v47  ;;  %962 = vmatpush1.bf16.msra.mxu0 %v8368_v48  ;;  %v8322_v47 = vcombine.low %v532_v35, %v536_v36  ;;  %v8324_v48 = vcombine.low %v533_v37, %v537_v38  ;;  %v1382_v35 = vld [vmem:[#allocation10 + $0x40] sm:$0xff] }
 0x18a   :  { %988 = vmatprep.subr.bf16.mxu1 %v8315_v54  ;;  %1029 = vmatprep.subr.bf16.mxu0 %v8317_v57  ;;  %v8333_v54 = vcombine.high %v541_v45, %v545_v46  ;;  %v548_v57 = vld [vmem:[#allocation8 + $0xd0] sm:$0xff]  ;;  %v1390_v38 = vld [vmem:[#allocation10 + $0x80] sm:$0xff]  ;;  %v8419_v45 = vcombine.high %v1406_v43, %v1414_v44  ;;  %v8418_v46 = vcombine.low %v1406_v43, %v1414_v44 }
 0x237   :  { %v312_v61 = vpop.f32.mrb[0].mxu1  ;;  %v353_v62 = vpop.f32.mrb[4].mxu0 }
 0x238   :  { %v450_v63 = vrot.slane %v312_v61, %v9790_v60  ;;  %v314_v1 = vpop.f32.mrb[1].mxu1  ;;  %v355_v2 = vpop.f32.mrb[5].mxu0  ;;  %v466_v7 = vrot.slane %v353_v62, %v9790_v60  ;;  %v552_v61 = vld [vmem:[#allocation8 + $0xf0] sm:$0xff]  ;;  %v549_v62 = vld [vmem:[#allocation8 + $0xd8] sm:$0xff] }
 0x239   :  { %v458_v3 = vrot.slane %v314_v1, %v9790_v60  ;;  %v316_v4 = vpop.f32.mrb[2].mxu1  ;;  %v357_v5 = vpop.f32.mrb[6].mxu0  ;;  %v474_v11 = vrot.slane %v355_v2, %v9790_v60  ;;  %v8339_v52 = vcombine.high %v548_v57, %v552_v61  ;;  %v557_v1 = vld [vmem:[#allocation8 + $0x118] sm:$0xff] }
 0x23a   :  { %v451_v6 = vsel %vm444_vm4, %v450_v63, 0.0  ;;  %v317_v8 = vpop.f32.mrb[3].mxu1  ;;  %v358_v9 = vpop.f32.mrb[7].mxu0  ;;  %v553_v63 = vld [vmem:[#allocation8 + $0xf8] sm:$0xff] }
 0x23b   :  { %v459_v10 = vsel %vm452_vm5, %v458_v3, %v451_v6  ;;  %v561_v2 = vld [vmem:[#allocation8 + $0x138] sm:$0xff]  ;;  %v8338_v3 = vcombine.low %v548_v57, %v552_v61  ;;  %v8340_v4 = vcombine.low %v549_v62, %v553_v63  ;;  %v568_v8 = vld [vmem:[#allocation8 + $0x170] sm:$0xff]  ;;  %v1446_v57 = vld [vmem:[#allocation10 + $0x240] sm:$0xff] }
 0x23c   :  { %v467_v12 = vsel %vm460_vm6, %v466_v7, %v459_v10  ;;  %v8349_v6 = vcombine.high %v557_v1, %v561_v2  ;;  %v564_v7 = vld [vmem:[#allocation8 + $0x150] sm:$0xff]  ;;  %v565_v9 = vld [vmem:[#allocation8 + $0x158] sm:$0xff] }
 0x23d   :  { %v475_v13 = vsel %vm468_vm7, %v474_v11, %v467_v12  ;;  %v569_v10 = vld [vmem:[#allocation8 + $0x178] sm:$0xff]  ;;  %v8348_v12 = vcombine.low %v557_v1, %v561_v2  ;;  %v1486_v2 = vld [vmem:[#allocation10 + $0x380] sm:$0xff] }
 0x23f   :  { %v394_v14 = vpop.f32.mrb[4].mxu1  ;;  %v435_v15 = vpop.f32.mrb[8].mxu0 }
 0x240   :  { %v482_v16 = vrot.slane %v394_v14, %v9790_v60  ;;  %v396_v17 = vpop.f32.mrb[5].mxu1  ;;  %v437_v18 = vpop.f32.mrb[9].mxu0  ;;  %v498_v23 = vrot.slane %v435_v15, %v9790_v60  ;;  %v8357_v14 = vcombine.high %v565_v9, %v569_v10  ;;  %v572_v15 = vld [vmem:[#allocation8 + $0x190] sm:$0xff] }
 0x241   :  { %v490_v19 = vrot.slane %v396_v17, %v9790_v60  ;;  %v398_v20 = vpop.f32.mrb[6].mxu1  ;;  %v439_v21 = vpop.f32.mrb[10].mxu0  ;;  %v506_v27 = vrot.slane %v437_v18, %v9790_v60  ;;  %v573_v17 = vld [vmem:[#allocation8 + $0x198] sm:$0xff] }
 0x242   :  { %v483_v22 = vsel %vm476_vm8, %v482_v16, %v475_v13  ;;  %v399_v24 = vpop.f32.mrb[7].mxu1  ;;  %v440_v25 = vpop.f32.mrb[11].mxu0  ;;  %v8355_v13 = vcombine.high %v564_v7, %v568_v8  ;;  %v576_v16 = vld [vmem:[#allocation8 + $0x1b0] sm:$0xff]  ;;  %v577_v18 = vld [vmem:[#allocation8 + $0x1b8] sm:$0xff]  ;;  %v8356_v20 = vcombine.low %v565_v9, %v569_v10  ;;  %v1518_v10 = vld [vmem:[#allocation10 + $0x480] sm:$0xff] }
 0x243   :  { %v491_v26 = vsel %vm484_vm9, %v490_v19, %v483_v22  ;;  %v8354_v19 = vcombine.low %v564_v7, %v568_v8  ;;  %v8363_v21 = vcombine.high %v572_v15, %v576_v16  ;;  %v8365_v22 = vcombine.high %v573_v17, %v577_v18  ;;  %v584_v24 = vld [vmem:[#allocation8 + $0x1f0] sm:$0xff]  ;;  %v581_v25 = vld [vmem:[#allocation8 + $0x1d8] sm:$0xff]  ;;  %v1510_v7 = vld [vmem:[#allocation10 + $0x440] sm:$0xff] }
 0x244   :  { %v499_v29 = vsel %vm492_vm10, %v498_v23, %v491_v26  ;;  %v580_v23 = vld [vmem:[#allocation8 + $0x1d0] sm:$0xff]  ;;  %v585_v26 = vld [vmem:[#allocation8 + $0x1f8] sm:$0xff] }
 0x245   :  { %v507_v30 = vsel %vm500_vm11, %v506_v27, %v499_v29  ;;  %v8362_v27 = vcombine.low %v572_v15, %v576_v16  ;;  %v8371_v29 = vcombine.high %v580_v23, %v584_v24  ;;  %v1542_v15 = vld [vmem:[#allocation10 + $0x540] sm:$0xff] }
 0x246   :  { %v515_v32 = vadd.f32 %v8309_v28, %v507_v30  ;;  %v8364_v28 = vcombine.low %v573_v17, %v577_v18  ;;  %v8373_v30 = vcombine.high %v581_v25, %v585_v26  ;;  %v1550_v18 = vld [vmem:[#allocation10 + $0x580] sm:$0xff] }
 0x248   :  { %v516_v33 = vmax.f32 %v515_v32, 0.0  ;;  %v8370_v32 = vcombine.low %v580_v23, %v584_v24  ;;  %v1574_v23 = vld [vmem:[#allocation10 + $0x640] sm:$0xff] }
 0x24a   :  { %v518_v34 = vrot.slane %v516_v33, 1 }
 0x24c   :  { %v520_v39 = vmax.f32 %v516_v33, %v518_v34  ;;  %v8372_v33 = vcombine.low %v581_v25, %v585_v26  ;;  %v1374_v34 = vld [vmem:[#allocation10] sm:$0xff]  ;;  %v1072_v26 = vand.u32 127, %v442_v58 }
 0x24d   :  { %v8386_v36 = vcombine.low %v1374_v34, %v1382_v35  ;;  %v8387_v37 = vcombine.high %v1374_v34, %v1382_v35 }
 0x24e   :  { %v9827_v40 = vpack.c.bf16 %v520_v39, %v520_v39  ;;  %v1398_v39 = vld [vmem:[#allocation10 + $0xc0] sm:$0xff] }
 0x250   :  { %939 = vmatmul.mubr.bf16.vlgmr.msra.gmra.mrb[8].mxu1 %v9827_v40  ;;  %980 = vmatmul.mubr.bf16.vlgmr.msra.gmra.mrb[12].mxu0 %v9827_v40 }
 0x251   :  { %989 = vmatpush1.bf16.msra.mxu1 %v8314_v53  ;;  %1030 = vmatpush1.bf16.msra.mxu0 %v8316_v56  ;;  %v8341_v53 = vcombine.high %v549_v62, %v553_v63  ;;  %v560_v56 = vld [vmem:[#allocation8 + $0x130] sm:$0xff]  ;;  %v1454_v63 = vld [vmem:[#allocation10 + $0x280] sm:$0xff] }
 0x252   :  { %990 = vmatprep.subr.bf16.mxu1 %v8323_v41  ;;  %1031 = vmatprep.subr.bf16.mxu0 %v8325_v42  ;;  %v8347_v5 = vcombine.high %v556_v55, %v560_v56  ;;  %v8346_v11 = vcombine.low %v556_v55, %v560_v56  ;;  %v8403_v41 = vcombine.high %v1390_v38, %v1398_v39  ;;  %v1478_v55 = vld [vmem:[#allocation10 + $0x340] sm:$0xff] }
 0x253   :  { %1020 = vmatprep.mubr.bf16.mxu1 %v9616_v31  ;;  %1061 = vmatprep.mubr.bf16.mxu0 %v9616_v31  ;;  %v8402_v42 = vcombine.low %v1390_v38, %v1398_v39 }
 0x255   :  { %991 = vmatpush1.bf16.msra.mxu1 %v8322_v47  ;;  %1032 = vmatpush1.bf16.msra.mxu0 %v8324_v48  ;;  %v1430_v47 = vld [vmem:[#allocation10 + $0x1c0] sm:$0xff] }
 0x256   :  { %992 = vmatprep.subr.bf16.mxu1 %v8331_v49  ;;  %1033 = vmatprep.subr.bf16.mxu0 %v8333_v54  ;;  %v1438_v54 = vld [vmem:[#allocation10 + $0x200] sm:$0xff] }
 0x257   :  { %v8451_v61 = vcombine.high %v1438_v54, %v1446_v57  ;;  %v8450_v62 = vcombine.low %v1438_v54, %v1446_v57 }
 0x259   :  { %993 = vmatpush1.bf16.msra.mxu1 %v8330_v50  ;;  %1034 = vmatpush1.bf16.msra.mxu0 %v8332_v51  ;;  %v1462_v50 = vld [vmem:[#allocation10 + $0x2c0] sm:$0xff] }
 0x25a   :  { %994 = vmatprep.subr.bf16.mxu1 %v8339_v52  ;;  %1035 = vmatprep.subr.bf16.mxu0 %v8341_v53  ;;  %v8467_v51 = vcombine.high %v1454_v63, %v1462_v50  ;;  %v8466_v52 = vcombine.low %v1454_v63, %v1462_v50  ;;  %v1470_v53 = vld [vmem:[#allocation10 + $0x300] sm:$0xff] }
 0x25b   :  { %v8483_v56 = vcombine.high %v1470_v53, %v1478_v55  ;;  %v8482_v1 = vcombine.low %v1470_v53, %v1478_v55 }
 0x25d   :  { %995 = vmatpush1.bf16.msra.mxu1 %v8338_v3  ;;  %1036 = vmatpush1.bf16.msra.mxu0 %v8340_v4  ;;  %v1494_v3 = vld [vmem:[#allocation10 + $0x3c0] sm:$0xff] }
 0x25e   :  { %996 = vmatprep.subr.bf16.mxu1 %v8347_v5  ;;  %1037 = vmatprep.subr.bf16.mxu0 %v8349_v6  ;;  %v8499_v4 = vcombine.high %v1486_v2, %v1494_v3  ;;  %v8498_v5 = vcombine.low %v1486_v2, %v1494_v3  ;;  %v1502_v6 = vld [vmem:[#allocation10 + $0x400] sm:$0xff] }
 0x25f   :  { %v8515_v8 = vcombine.high %v1502_v6, %v1510_v7  ;;  %v8514_v9 = vcombine.low %v1502_v6, %v1510_v7 }
 0x261   :  { %997 = vmatpush1.bf16.msra.mxu1 %v8346_v11  ;;  %1038 = vmatpush1.bf16.msra.mxu0 %v8348_v12  ;;  %v1526_v11 = vld [vmem:[#allocation10 + $0x4c0] sm:$0xff] }
 0x262   :  { %998 = vmatprep.subr.bf16.mxu1 %v8355_v13  ;;  %1039 = vmatprep.subr.bf16.mxu0 %v8357_v14  ;;  %v8531_v12 = vcombine.high %v1518_v10, %v1526_v11  ;;  %v8530_v13 = vcombine.low %v1518_v10, %v1526_v11  ;;  %v1534_v14 = vld [vmem:[#allocation10 + $0x500] sm:$0xff] }
 0x263   :  { %v8547_v16 = vcombine.high %v1534_v14, %v1542_v15  ;;  %v8546_v17 = vcombine.low %v1534_v14, %v1542_v15 }
 0x265   :  { %999 = vmatpush1.bf16.msra.mxu1 %v8354_v19  ;;  %1040 = vmatpush1.bf16.msra.mxu0 %v8356_v20  ;;  %v1558_v19 = vld [vmem:[#allocation10 + $0x5c0] sm:$0xff] }
 0x266   :  { %1000 = vmatprep.subr.bf16.mxu1 %v8363_v21  ;;  %1041 = vmatprep.subr.bf16.mxu0 %v8365_v22  ;;  %v8563_v20 = vcombine.high %v1550_v18, %v1558_v19  ;;  %v8562_v21 = vcombine.low %v1550_v18, %v1558_v19  ;;  %v1566_v22 = vld [vmem:[#allocation10 + $0x600] sm:$0xff] }
 0x267   :  { %v8579_v24 = vcombine.high %v1566_v22, %v1574_v23  ;;  %v8578_v25 = vcombine.low %v1566_v22, %v1574_v23  ;;  %v1399_v22 = vld [vmem:[#allocation10 + $0xc8] sm:$0xff] }
 0x269   :  { %1001 = vmatpush1.bf16.msra.mxu1 %v8362_v27  ;;  %1042 = vmatpush1.bf16.msra.mxu0 %v8364_v28  ;;  %v9843_v27 = vmul.u32 2, %v1072_v26  ;;  %v9846_v28 = vadd.s32 8, %v9787_v59  ;;  %v1407_v26 = vld [vmem:[#allocation10 + $0x108] sm:$0xff] }
 0x26a   :  { %1002 = vmatprep.subr.bf16.mxu1 %v8371_v29  ;;  %1043 = vmatprep.subr.bf16.mxu0 %v8373_v30  ;;  %v9617_v30 = vmov 65535  }
 0x26b   :  { %v9849_v29 = vadd.s32 1, %v9843_v27  ;;  %v9882_v50 = vadd.s32 2, %v9843_v27 }
 0x26d   :  { %1003 = vmatpush1.bf16.msra.mxu1 %v8370_v32  ;;  %1044 = vmatpush1.bf16.msra.mxu0 %v8372_v33  ;;  %v1098_v32 = vsel %vm1097_vm12, 4294967295, %v9617_v30  ;;  %vm1084_vm13 = vcmp.eq.s32.totalorder %v9787_v59, %v9849_v29  ;;  %vm1085_vm14 = vcmp.eq.s32.totalorder %v9846_v28, %v9849_v29  ;;  %vm1074_vm12 = vcmp.eq.s32.totalorder %v9787_v59, %v9843_v27 }
 0x26e   :  { %2910 = vmatprep.subr.bf16.mxu0 %v8387_v37  ;;  %v9857_v58 = vsel %vm133_vm1, %v1098_v32, 0  ;;  %v1415_v32 = vld [vmem:[#allocation10 + $0x148] sm:$0xff] }
 0x270   :  { %1021 = vmatmul.mubr.bf16.vlgmr.msra.gmra.mrb[12].mxu1 %v9827_v40  ;;  %1062 = vmatmul.mubr.bf16.vlgmr.msra.gmra.mrb[16].mxu0 %v9827_v40  ;;  %v1422_v40 = vld [vmem:[#allocation10 + $0x180] sm:$0xff] }
 0x271   :  { %1138 = vmatprep.mubr.bf16.mxu1 %v9616_v31  ;;  %2911 = vmatpush1.bf16.msra.mxu0 %v8386_v36  ;;  %v8435_v48 = vcombine.high %v1422_v40, %v1430_v47  ;;  %v8434_v49 = vcombine.low %v1422_v40, %v1430_v47 }
 0x272   :  { %2912 = vmatprep.subr.bf16.mxu0 %v8403_v41 }
 0x275   :  { %2913 = vmatpush1.bf16.msra.mxu0 %v8402_v42 }
 0x276   :  { %2914 = vmatprep.subr.bf16.mxu0 %v8419_v45  ;;  %v8376_v45 = vsel %vm1084_vm13, 1.0, %v9614_v0  ;;  %vm1075_vm13 = vcmp.eq.s32.totalorder %v9846_v28, %v9843_v27 }
 0x279   :  { %2915 = vmatpush1.bf16.msra.mxu0 %v8418_v46  ;;  %v8377_v46 = vsel %vm1085_vm14, 1.0, %v9614_v0  ;;  %vm1202_vm14 = vcmp.eq.s32.totalorder %v9787_v59, %v9882_v50 }
 0x27a   :  { %2916 = vmatprep.subr.bf16.mxu0 %v8435_v48  ;;  %v9864_v54 = vpack.c.bf16 %v8377_v46, %v8376_v45  ;;  %v8380_v7 = vsel %vm1202_vm14, 1.0, %v9614_v0 }
 0x27d   :  { %2917 = vmatpush1.bf16.msra.mxu0 %v8434_v49 }
 0x27e   :  { %2918 = vmatprep.subr.bf16.mxu0 %v8451_v61  ;;  %v8374_v61 = vsel %vm1074_vm12, 1.0, %v9614_v0  ;;  %vm1203_vm12 = vcmp.eq.s32.totalorder %v9846_v28, %v9882_v50 }
 0x281   :  { %2919 = vmatpush1.bf16.msra.mxu0 %v8450_v62  ;;  %v8375_v62 = vsel %vm1075_vm13, 1.0, %v9614_v0 }
 0x282   :  { %2920 = vmatprep.subr.bf16.mxu0 %v8467_v51  ;;  %v9876_v63 = vpack.c.bf16 %v8375_v62, %v8374_v61  ;;  %v1495_v61 = vld [vmem:[#allocation10 + $0x3c8] sm:$0xff] }
 0x285   :  { %2921 = vmatpush1.bf16.msra.mxu0 %v8466_v52 }
 0x286   :  { %2922 = vmatprep.subr.bf16.mxu0 %v8483_v56 }
 0x289   :  { %2923 = vmatpush1.bf16.msra.mxu0 %v8482_v1 }
 0x28a   :  { %2924 = vmatprep.subr.bf16.mxu0 %v8499_v4 }
 0x28d   :  { %2925 = vmatpush1.bf16.msra.mxu0 %v8498_v5 }
 0x28e   :  { %2926 = vmatprep.subr.bf16.mxu0 %v8515_v8  ;;  %v8381_v8 = vsel %vm1203_vm12, 1.0, %v9614_v0  ;;  %vm10277_vm12 = vcmask 1046528  }
 0x28f   :  { %v9893_v15 = vpack.c.bf16 %v8381_v8, %v8380_v7 }
 0x291   :  { %2927 = vmatpush1.bf16.msra.mxu0 %v8514_v9 }
 0x292   :  { %2928 = vmatprep.subr.bf16.mxu0 %v8531_v12  ;;  %v1375_v12 = vld [vmem:[#allocation10 + $0x8] sm:$0xff] }
 0x295   :  { %2929 = vmatpush1.bf16.msra.mxu0 %v8530_v13  ;;  %v1383_v13 = vld [vmem:[#allocation10 + $0x48] sm:$0xff] }
 0x296   :  { %2930 = vmatprep.subr.bf16.mxu0 %v8547_v16  ;;  %v9896_v16 = vadd.s32 3, %v9843_v27 }
 0x298   :  { %vm1268_vm13 = vcmp.eq.s32.totalorder %v9787_v59, %v9896_v16  ;;  %vm1269_vm14 = vcmp.eq.s32.totalorder %v9846_v28, %v9896_v16  ;;  %v8421_v28 = vcombine.high %v1407_v26, %v1415_v32 }
 0x299   :  { %2931 = vmatpush1.bf16.msra.mxu0 %v8546_v17  ;;  %v8389_v17 = vcombine.high %v1375_v12, %v1383_v13  ;;  %v8383_v19 = vsel %vm1268_vm13, 1.0, %v9614_v0  ;;  %vm3284_vm13 = vcmask 1047552  }
 0x29a   :  { %2932 = vmatprep.subr.bf16.mxu0 %v8563_v20  ;;  %v8384_v20 = vsel %vm1269_vm14, 1.0, %v9614_v0  ;;  %vm3278_vm14 = vcmask 121856  }
 0x29b   :  { %v9908_v23 = vpack.c.bf16 %v8384_v20, %v8383_v19  ;;  %v1582_v20 = vld [vmem:[#allocation10 + $0x680] sm:$0xff] }
 0x29d   :  { %2933 = vmatpush1.bf16.msra.mxu0 %v8562_v21  ;;  %v1391_v21 = vld [vmem:[#allocation10 + $0x88] sm:$0xff] }
 0x29e   :  { %2934 = vmatprep.subr.bf16.mxu0 %v8579_v24  ;;  %v8388_v24 = vcombine.low %v1375_v12, %v1383_v13  ;;  %v1567_v13 = vld [vmem:[#allocation10 + $0x608] sm:$0xff] }
 0x2a1   :  { %2935 = vmatpush1.bf16.msra.mxu0 %v8578_v25  ;;  %v8405_v25 = vcombine.high %v1391_v21, %v1399_v22 }
 0x323   :  { %v940_v33 = vpop.f32.mrb[8].mxu1  ;;  %v981_v34 = vpop.f32.mrb[12].mxu0 }
 0x324   :  { %v1091_v35 = vpack.c.bf16 %v981_v34, %v981_v34  ;;  %v942_v36 = vpop.f32.mrb[9].mxu1  ;;  %v983_v37 = vpop.f32.mrb[13].mxu0  ;;  %v1081_v47 = vpack.c.bf16 %v940_v33, %v940_v33  ;;  %v8404_v33 = vcombine.low %v1391_v21, %v1399_v22  ;;  %v1423_v34 = vld [vmem:[#allocation10 + $0x188] sm:$0xff]  ;;  %v1590_v21 = vld [vmem:[#allocation10 + $0x6c0] sm:$0xff] }
 0x325   :  { %v1082_v38 = vpack.c.bf16 %v942_v36, %v942_v36  ;;  %v1092_v39 = vpack.c.bf16 %v983_v37, %v983_v37  ;;  %v944_v41 = vpop.f32.mrb[10].mxu1  ;;  %v985_v42 = vpop.f32.mrb[14].mxu0  ;;  %v8420_v36 = vcombine.low %v1407_v26, %v1415_v32  ;;  %v1583_v22 = vld [vmem:[#allocation10 + $0x688] sm:$0xff]  ;;  %v8594_v26 = vcombine.low %v1582_v20, %v1590_v21 }
 0x326   :  { %v945_v43 = vpop.f32.mrb[11].mxu1  ;;  %v986_v44 = vpop.f32.mrb[15].mxu0  ;;  %v1101_v48 = vand.u32 %v9857_v58, %v1091_v35  ;;  %v1153_v57 = vand.u32 %v9857_v58, %v1081_v47  ;;  %v1431_v35 = vld [vmem:[#allocation10 + $0x1c8] sm:$0xff] }
 0x327   :  { %v1104_v40 = vand.u32 %v9857_v58, %v1092_v39  ;;  %v1156_v49 = vand.u32 %v9857_v58, %v1082_v38  ;;  %v8437_v37 = vcombine.high %v1423_v34, %v1431_v35  ;;  %v1439_v38 = vld [vmem:[#allocation10 + $0x208] sm:$0xff]  ;;  %v8436_v41 = vcombine.low %v1423_v34, %v1431_v35  ;;  %v1606_v34 = vld [vmem:[#allocation10 + $0x740] sm:$0xff] }
 0x328   :  { %v1447_v39 = vld [vmem:[#allocation10 + $0x248] sm:$0xff] }
 0x329   :  { %1106 = vmatprep.subr.bf16.mxu1 %v1104_v40  ;;  %v8453_v42 = vcombine.high %v1439_v38, %v1447_v39  ;;  %v1455_v43 = vld [vmem:[#allocation10 + $0x288] sm:$0xff]  ;;  %v8452_v45 = vcombine.low %v1439_v38, %v1447_v39 }
 0x32a   :  { %1107 = vmatpush1.bf16.msra.mxu1 %v1101_v48  ;;  %v1463_v44 = vld [vmem:[#allocation10 + $0x2c8] sm:$0xff] }
 0x32b   :  { %1158 = vmatprep.subr.bf16.mxu1 %v1156_v49  ;;  %v8469_v46 = vcombine.high %v1455_v43, %v1463_v44  ;;  %v1471_v40 = vld [vmem:[#allocation10 + $0x308] sm:$0xff]  ;;  %v8468_v48 = vcombine.low %v1455_v43, %v1463_v44  ;;  %v1622_v43 = vld [vmem:[#allocation10 + $0x7c0] sm:$0xff] }
 0x32c   :  { %v1479_v47 = vld [vmem:[#allocation10 + $0x348] sm:$0xff] }
 0x32d   :  { %8378 = vmatmul.mubr.msk.bf16.vlgmr.msra.gmra.mrb[16].mxu1 %vm10278_vm15, %v9864_v54  ;;  %v8485_v49 = vcombine.high %v1471_v40, %v1479_v47  ;;  %v8484_v62 = vcombine.low %v1471_v40, %v1479_v47  ;;  %v1599_v35 = vld [vmem:[#allocation10 + $0x708] sm:$0xff] }
 0x32e   :  { %1159 = vmatpush1.bf16.msra.mxu1 %v1153_v57  ;;  %1190 = vmatprep.mubr.bf16.mxu1 %v9616_v31  ;;  %v1487_v57 = vld [vmem:[#allocation10 + $0x388] sm:$0xff] }
 0x32f   :  { %v1615_v44 = vld [vmem:[#allocation10 + $0x788] sm:$0xff] }
 0x339   :  { %8379 = vmatmul.mubr.msk.bf16.vlgmr.msra.gmra.mrb[16].mxu1 %vm10278_vm15, %v9876_v63 }
 0x33a   :  { %1252 = vmatprep.mubr.bf16.mxu1 %v9616_v31 }
 0x343   :  { %v1022_v51 = vpop.f32.mrb[12].mxu1  ;;  %v1063_v52 = vpop.f32.mrb[16].mxu0 }
 0x344   :  { %v1209_v53 = vpack.c.bf16 %v1022_v51, %v1022_v51  ;;  %v1024_v55 = vpop.f32.mrb[13].mxu1  ;;  %v1065_v56 = vpop.f32.mrb[17].mxu0  ;;  %v1275_v11 = vpack.c.bf16 %v1063_v52, %v1063_v52  ;;  %v8501_v51 = vcombine.high %v1487_v57, %v1495_v61  ;;  %v1503_v52 = vld [vmem:[#allocation10 + $0x408] sm:$0xff] }
 0x345   :  { %v1210_v1 = vpack.c.bf16 %v1024_v55, %v1024_v55  ;;  %v1276_v2 = vpack.c.bf16 %v1065_v56, %v1065_v56  ;;  %v1026_v3 = vpop.f32.mrb[14].mxu1  ;;  %v1067_v4 = vpop.f32.mrb[18].mxu0  ;;  %v8500_v55 = vcombine.low %v1487_v57, %v1495_v61  ;;  %v1384_v57 = vld [vmem:[#allocation10 + $0x50] sm:$0xff]  ;;  %v1377_v61 = vld [vmem:[#allocation10 + $0x18] sm:$0xff] }
 0x346   :  { %v1027_v5 = vpop.f32.mrb[15].mxu1  ;;  %v1068_v6 = vpop.f32.mrb[19].mxu0  ;;  %v1215_v10 = vand.u32 %v1209_v53, %v9857_v58  ;;  %v1281_v18 = vand.u32 %v1275_v11, %v9857_v58  ;;  %v1511_v53 = vld [vmem:[#allocation10 + $0x448] sm:$0xff] }
 0x347   :  { %v1218_v9 = vand.u32 %v1210_v1, %v9857_v58  ;;  %v1284_v14 = vand.u32 %v1276_v2, %v9857_v58  ;;  %v8517_v56 = vcombine.high %v1503_v52, %v1511_v53  ;;  %v1519_v1 = vld [vmem:[#allocation10 + $0x488] sm:$0xff]  ;;  %v8516_v3 = vcombine.low %v1503_v52, %v1511_v53 }
 0x348   :  { %v1527_v2 = vld [vmem:[#allocation10 + $0x4c8] sm:$0xff] }
 0x349   :  { %1220 = vmatprep.subr.bf16.mxu1 %v1218_v9  ;;  %v8533_v4 = vcombine.high %v1519_v1, %v1527_v2  ;;  %v1535_v5 = vld [vmem:[#allocation10 + $0x508] sm:$0xff]  ;;  %v8532_v7 = vcombine.low %v1519_v1, %v1527_v2  ;;  %v9916_v1 = vsub.s32 1, %v9787_v59 }
 0x34a   :  { %1221 = vmatpush1.bf16.msra.mxu1 %v1215_v10  ;;  %v1543_v6 = vld [vmem:[#allocation10 + $0x548] sm:$0xff] }
 0x34b   :  { %1286 = vmatprep.subr.bf16.mxu1 %v1284_v14  ;;  %v8549_v8 = vcombine.high %v1535_v5, %v1543_v6  ;;  %v1551_v9 = vld [vmem:[#allocation10 + $0x588] sm:$0xff]  ;;  %v8548_v11 = vcombine.low %v1535_v5, %v1543_v6 }
 0x34c   :  { %v1559_v10 = vld [vmem:[#allocation10 + $0x5c8] sm:$0xff] }
 0x34d   :  { %8382 = vmatmul.mubr.msk.bf16.vlgmr.msra.gmra.mrb[16].mxu1 %vm10278_vm15, %v9893_v15  ;;  %v8565_v12 = vcombine.high %v1551_v9, %v1559_v10  ;;  %v1575_v14 = vld [vmem:[#allocation10 + $0x648] sm:$0xff] }
 0x34e   :  { %1287 = vmatpush1.bf16.msra.mxu1 %v1281_v18  ;;  %1318 = vmatprep.mubr.bf16.mxu1 %v9616_v31  ;;  %v8581_v18 = vcombine.high %v1567_v13, %v1575_v14  ;;  %v8580_v19 = vcombine.low %v1567_v13, %v1575_v14 }
 0x34f   :  { %2953 = vmatprep.subr.bf16.mxu1 %v8389_v17  ;;  %v8564_v17 = vcombine.low %v1551_v9, %v1559_v10 }
 0x359   :  { %8385 = vmatmul.mubr.msk.bf16.vlgmr.msra.gmra.mrb[16].mxu1 %vm10278_vm15, %v9908_v23 }
 0x35a   :  { %2954 = vmatpush1.bf16.msra.mxu1 %v8388_v24  ;;  %v8595_v24 = vcombine.high %v1582_v20, %v1590_v21 }
 0x35b   :  { %2955 = vmatprep.subr.bf16.mxu1 %v8405_v25  ;;  %v1591_v25 = vld [vmem:[#allocation10 + $0x6c8] sm:$0xff] }
 0x35c   :  { %v8596_v32 = vcombine.low %v1583_v22, %v1591_v25  ;;  %2936 = vmatprep.subr.bf16.mxu0 %v8595_v24 }
 0x35d   :  { %2937 = vmatpush1.bf16.msra.mxu0 %v8594_v26 }
 0x35e   :  { %2956 = vmatpush1.bf16.msra.mxu1 %v8404_v33  ;;  %v8597_v33 = vcombine.high %v1583_v22, %v1591_v25 }
 0x35f   :  { %2957 = vmatprep.subr.bf16.mxu1 %v8421_v28  ;;  %v1598_v28 = vld [vmem:[#allocation10 + $0x700] sm:$0xff] }
 0x360   :  { %v8610_v38 = vcombine.low %v1598_v28, %v1606_v34 }
 0x362   :  { %2958 = vmatpush1.bf16.msra.mxu1 %v8420_v36  ;;  %v8611_v36 = vcombine.high %v1598_v28, %v1606_v34  ;;  %v1392_v28 = vld [vmem:[#allocation10 + $0x90] sm:$0xff] }
 0x363   :  { %2959 = vmatprep.subr.bf16.mxu1 %v8437_v37  ;;  %v1607_v37 = vld [vmem:[#allocation10 + $0x748] sm:$0xff] }
 0x364   :  { %v8612_v39 = vcombine.low %v1599_v35, %v1607_v37  ;;  %2938 = vmatprep.subr.bf16.mxu0 %v8611_v36  ;;  %v1393_v36 = vld [vmem:[#allocation10 + $0x98] sm:$0xff] }
 0x365   :  { %2939 = vmatpush1.bf16.msra.mxu0 %v8610_v38 }
 0x366   :  { %2960 = vmatpush1.bf16.msra.mxu1 %v8436_v41  ;;  %v8613_v41 = vcombine.high %v1599_v35, %v1607_v37  ;;  %v1400_v35 = vld [vmem:[#allocation10 + $0xd0] sm:$0xff]  ;;  %v1401_v37 = vld [vmem:[#allocation10 + $0xd8] sm:$0xff] }
 0x367   :  { %2961 = vmatprep.subr.bf16.mxu1 %v8453_v42  ;;  %v1614_v42 = vld [vmem:[#allocation10 + $0x780] sm:$0xff] }
 0x368   :  { %v8626_v40 = vcombine.low %v1614_v42, %v1622_v43 }
 0x36a   :  { %2962 = vmatpush1.bf16.msra.mxu1 %v8452_v45  ;;  %v8627_v45 = vcombine.high %v1614_v42, %v1622_v43  ;;  %v8409_v42 = vcombine.high %v1393_v36, %v1401_v37  ;;  %v1416_v43 = vld [vmem:[#allocation10 + $0x150] sm:$0xff] }
 0x36b   :  { %2963 = vmatprep.subr.bf16.mxu1 %v8469_v46  ;;  %v1623_v46 = vld [vmem:[#allocation10 + $0x7c8] sm:$0xff] }
 0x36c   :  { %v8628_v47 = vcombine.low %v1615_v44, %v1623_v46  ;;  %2940 = vmatprep.subr.bf16.mxu0 %v8627_v45  ;;  %v1417_v45 = vld [vmem:[#allocation10 + $0x158] sm:$0xff] }
 0x36d   :  { %2941 = vmatpush1.bf16.msra.mxu0 %v8626_v40  ;;  %v8408_v40 = vcombine.low %v1393_v36, %v1401_v37  ;;  %v1497_v36 = vld [vmem:[#allocation10 + $0x3d8] sm:$0xff] }
 0x36e   :  { %2964 = vmatpush1.bf16.msra.mxu1 %v8468_v48  ;;  %v8629_v48 = vcombine.high %v1615_v44, %v1623_v46  ;;  %v1409_v44 = vld [vmem:[#allocation10 + $0x118] sm:$0xff]  ;;  %v8406_v46 = vcombine.low %v1392_v28, %v1400_v35 }
 0x36f   :  { %2965 = vmatprep.subr.bf16.mxu1 %v8485_v49  ;;  %v1376_v49 = vld [vmem:[#allocation10 + $0x10] sm:$0xff] }
 0x370   :  { %v8390_v52 = vcombine.low %v1376_v49, %v1384_v57 }
 0x372   :  { %2966 = vmatpush1.bf16.msra.mxu1 %v8484_v62  ;;  %v8391_v62 = vcombine.high %v1376_v49, %v1384_v57  ;;  %v1424_v49 = vld [vmem:[#allocation10 + $0x190] sm:$0xff] }
 0x373   :  { %2967 = vmatprep.subr.bf16.mxu1 %v8501_v51  ;;  %v1385_v51 = vld [vmem:[#allocation10 + $0x58] sm:$0xff]  ;;  %v1432_v57 = vld [vmem:[#allocation10 + $0x1d0] sm:$0xff] }
 0x374   :  { %v8392_v53 = vcombine.low %v1377_v61, %v1385_v51  ;;  %2996 = vmatprep.subr.bf16.mxu0 %v8391_v62  ;;  %v1433_v62 = vld [vmem:[#allocation10 + $0x1d8] sm:$0xff] }
 0x376   :  { %2968 = vmatpush1.bf16.msra.mxu1 %v8500_v55  ;;  %v8393_v55 = vcombine.high %v1377_v61, %v1385_v51  ;;  %v1425_v61 = vld [vmem:[#allocation10 + $0x198] sm:$0xff] }
 0x377   :  { %2969 = vmatprep.subr.bf16.mxu1 %v8517_v56  ;;  %v1333_v56 = vld [vmem:[%s10271_s5] sm:$0x3] }
 0x378   :  { %v1338_v2 = vrot.slane %v1333_v56, %v9790_v60 }
 0x37a   :  { %2970 = vmatpush1.bf16.msra.mxu1 %v8516_v3  ;;  %v1342_v3 = vrot.slane %v1333_v56, %v9916_v1  ;;  %v1440_v56 = vld [vmem:[#allocation10 + $0x210] sm:$0xff] }
 0x37b   :  { %2971 = vmatprep.subr.bf16.mxu1 %v8533_v4 }
 0x37e   :  { %2972 = vmatpush1.bf16.msra.mxu1 %v8532_v7 }
 0x37f   :  { %2973 = vmatprep.subr.bf16.mxu1 %v8549_v8 }
 0x382   :  { %2974 = vmatpush1.bf16.msra.mxu1 %v8548_v11 }
 0x383   :  { %2975 = vmatprep.subr.bf16.mxu1 %v8565_v12 }
 0x386   :  { %2976 = vmatpush1.bf16.msra.mxu1 %v8564_v17 }
 0x387   :  { %2977 = vmatprep.subr.bf16.mxu1 %v8581_v18 }
 0x38a   :  { %2978 = vmatpush1.bf16.msra.mxu1 %v8580_v19 }
 0x38b   :  { %2979 = vmatprep.subr.bf16.mxu1 %v8597_v33 }
 0x38e   :  { %2980 = vmatpush1.bf16.msra.mxu1 %v8596_v32 }
 0x38f   :  { %2981 = vmatprep.subr.bf16.mxu1 %v8613_v41  ;;  %v8407_v41 = vcombine.high %v1392_v28, %v1400_v35  ;;  %v1496_v28 = vld [vmem:[#allocation10 + $0x3d0] sm:$0xff]  ;;  %v1489_v35 = vld [vmem:[#allocation10 + $0x398] sm:$0xff] }
 0x392   :  { %2982 = vmatpush1.bf16.msra.mxu1 %v8612_v39  ;;  %v1408_v39 = vld [vmem:[#allocation10 + $0x110] sm:$0xff] }
 0x393   :  { %2983 = vmatprep.subr.bf16.mxu1 %v8629_v48  ;;  %v8425_v48 = vcombine.high %v1409_v44, %v1417_v45  ;;  %v8422_v51 = vcombine.low %v1408_v39, %v1416_v43 }
 0x396   :  { %2984 = vmatpush1.bf16.msra.mxu1 %v8628_v47  ;;  %v8423_v47 = vcombine.high %v1408_v39, %v1416_v43  ;;  %v1504_v43 = vld [vmem:[#allocation10 + $0x410] sm:$0xff] }
 0x397   :  { %3039 = vmatprep.subr.bf16.mxu1 %v8393_v55  ;;  %v8424_v55 = vcombine.low %v1409_v44, %v1417_v45  ;;  %v1512_v44 = vld [vmem:[#allocation10 + $0x450] sm:$0xff]  ;;  %v1505_v45 = vld [vmem:[#allocation10 + $0x418] sm:$0xff] }
 0x42c   :  { %v1320_v4 = vpop.f32.mrb[16].mxu1 }
 0x42d   :  { %v1345_v5 = vadd.f32 %v1338_v2, %v1320_v4  ;;  %v1322_v6 = vpop.f32.mrb[17].mxu1  ;;  %v1449_v4 = vld [vmem:[#allocation10 + $0x258] sm:$0xff] }
 0x42e   :  { %v1346_v7 = vadd.f32 %v1342_v3, %v1322_v6  ;;  %v1324_v8 = vpop.f32.mrb[18].mxu1  ;;  %v8440_v6 = vcombine.low %v1425_v61, %v1433_v62 }
 0x42f   :  { %v1349_v9 = vmax.f32 %v1345_v5, 0.0  ;;  %v1347_v10 = vadd.f32 %v1338_v2, %v1324_v8  ;;  %v1326_v11 = vpop.f32.mrb[19].mxu1  ;;  %v1448_v2 = vld [vmem:[#allocation10 + $0x250] sm:$0xff]  ;;  %v8438_v5 = vcombine.low %v1424_v49, %v1432_v57 }
 0x430   :  { %v1350_v12 = vmax.f32 %v1346_v7, 0.0  ;;  %v1348_v13 = vadd.f32 %v1342_v3, %v1326_v11  ;;  %v1441_v3 = vld [vmem:[#allocation10 + $0x218] sm:$0xff]  ;;  %v8455_v7 = vcombine.high %v1440_v56, %v1448_v2 }
 0x431   :  { %v1351_v14 = vmax.f32 %v1347_v10, 0.0  ;;  %v1358_v18 = vrot.slane %v1349_v9, 1  ;;  %v8457_v8 = vcombine.high %v1441_v3, %v1449_v4  ;;  %v1464_v10 = vld [vmem:[#allocation10 + $0x2d0] sm:$0xff]  ;;  %v1457_v11 = vld [vmem:[#allocation10 + $0x298] sm:$0xff] }
 0x432   :  { %v1352_v17 = vmax.f32 %v1348_v13, 0.0  ;;  %v1361_v20 = vrot.slane %v1350_v12, 1  ;;  %v8454_v13 = vcombine.low %v1440_v56, %v1448_v2  ;;  %v1536_v2 = vld [vmem:[#allocation10 + $0x510] sm:$0xff] }
 0x433   :  { %v1359_v19 = vrot.slane %v1351_v14, 1 }
 0x434   :  { %v1362_v21 = vrot.slane %v1352_v17, 1 }
 0x435   :  { %v1360_v22 = vsel %vm10277_vm12, %v1358_v18, %v1359_v19  ;;  %v1370_v24 = vmax.f32 %v1351_v14, %v1359_v19  ;;  %v8456_v14 = vcombine.low %v1441_v3, %v1449_v4  ;;  %v1472_v19 = vld [vmem:[#allocation10 + $0x310] sm:$0xff]  ;;  %v1537_v4 = vld [vmem:[#allocation10 + $0x518] sm:$0xff] }
 0x436   :  { %v1368_v25 = vmax.f32 %v1349_v9, %v1360_v22  ;;  %v1363_v26 = vsel %vm10277_vm12, %v1361_v20, %v1362_v21  ;;  %v1371_v32 = vmax.f32 %v1352_v17, %v1362_v21  ;;  %v1456_v9 = vld [vmem:[#allocation10 + $0x290] sm:$0xff]  ;;  %v1473_v21 = vld [vmem:[#allocation10 + $0x318] sm:$0xff] }
 0x437   :  { %v1369_v33 = vmax.f32 %v1350_v12, %v1363_v26  ;;  %v1465_v12 = vld [vmem:[#allocation10 + $0x2d8] sm:$0xff]  ;;  %v8471_v17 = vcombine.high %v1456_v9, %v1464_v10  ;;  %v1480_v20 = vld [vmem:[#allocation10 + $0x350] sm:$0xff] }
 0x438   :  { %v9922_v34 = vpack.c.bf16 %v1370_v24, %v1368_v25  ;;  %v8473_v18 = vcombine.high %v1457_v11, %v1465_v12  ;;  %v1481_v22 = vld [vmem:[#allocation10 + $0x358] sm:$0xff]  ;;  %v8470_v24 = vcombine.low %v1456_v9, %v1464_v10  ;;  %v8472_v25 = vcombine.low %v1457_v11, %v1465_v12  ;;  %v1544_v3 = vld [vmem:[#allocation10 + $0x550] sm:$0xff] }
 0x439   :  { %v9924_v38 = vpack.c.bf16 %v1371_v32, %v1369_v33  ;;  %v8487_v26 = vcombine.high %v1472_v19, %v1480_v20  ;;  %v8489_v32 = vcombine.high %v1473_v21, %v1481_v22  ;;  %v1488_v33 = vld [vmem:[#allocation10 + $0x390] sm:$0xff]  ;;  %v8486_v37 = vcombine.low %v1472_v19, %v1480_v20  ;;  %v1553_v12 = vld [vmem:[#allocation10 + $0x598] sm:$0xff] }
 0x43a   :  { %v8488_v39 = vcombine.low %v1473_v21, %v1481_v22  ;;  %v1552_v10 = vld [vmem:[#allocation10 + $0x590] sm:$0xff]  ;;  %v1569_v22 = vld [vmem:[#allocation10 + $0x618] sm:$0xff] }
 0x43b   :  { %2942 = vmatprep.mubr.bf16.mxu0 %v9924_v38  ;;  %2985 = vmatprep.mubr.bf16.mxu1 %v9924_v38  ;;  %v1560_v11 = vld [vmem:[#allocation10 + $0x5d0] sm:$0xff] }
 0x43c   :  { %2943 = vmatmul.mubr.bf16.vlgmr.msra.gmra.mrb[20].mxu0 %v9922_v34  ;;  %2986 = vmatmul.mubr.bf16.vlgmr.msra.gmra.mrb[20].mxu1 %v9922_v34  ;;  %v1568_v20 = vld [vmem:[#allocation10 + $0x610] sm:$0xff] }
 0x43d   :  { %2997 = vmatpush1.bf16.msra.mxu0 %v8390_v52  ;;  %3040 = vmatpush1.bf16.msra.mxu1 %v8392_v53  ;;  %v8439_v52 = vcombine.high %v1424_v49, %v1432_v57  ;;  %v8441_v53 = vcombine.high %v1425_v61, %v1433_v62  ;;  %v1520_v57 = vld [vmem:[#allocation10 + $0x490] sm:$0xff]  ;;  %v1521_v62 = vld [vmem:[#allocation10 + $0x498] sm:$0xff] }
 0x43e   :  { %3028 = vmatprep.mubr.bf16.mxu0 %v9924_v38  ;;  %3071 = vmatprep.mubr.bf16.mxu1 %v9924_v38  ;;  %v1528_v61 = vld [vmem:[#allocation10 + $0x4d0] sm:$0xff] }
 0x43f   :  { %2998 = vmatprep.subr.bf16.mxu0 %v8407_v41  ;;  %3041 = vmatprep.subr.bf16.mxu1 %v8409_v42  ;;  %v8503_v41 = vcombine.high %v1488_v33, %v1496_v28  ;;  %v8505_v42 = vcombine.high %v1489_v35, %v1497_v36  ;;  %v1576_v21 = vld [vmem:[#allocation10 + $0x650] sm:$0xff] }
 0x441   :  { %2999 = vmatpush1.bf16.msra.mxu0 %v8406_v46  ;;  %3042 = vmatpush1.bf16.msra.mxu1 %v8408_v40  ;;  %v1513_v46 = vld [vmem:[#allocation10 + $0x458] sm:$0xff]  ;;  %v8502_v40 = vcombine.low %v1488_v33, %v1496_v28  ;;  %v1584_v28 = vld [vmem:[#allocation10 + $0x690] sm:$0xff] }
 0x442   :  { %3000 = vmatprep.subr.bf16.mxu0 %v8423_v47  ;;  %3043 = vmatprep.subr.bf16.mxu1 %v8425_v48  ;;  %v8504_v47 = vcombine.low %v1489_v35, %v1497_v36  ;;  %v8519_v48 = vcombine.high %v1504_v43, %v1512_v44  ;;  %v8521_v49 = vcombine.high %v1505_v45, %v1513_v46  ;;  %v1592_v35 = vld [vmem:[#allocation10 + $0x6d0] sm:$0xff]  ;;  %v1585_v36 = vld [vmem:[#allocation10 + $0x698] sm:$0xff] }
 0x445   :  { %3001 = vmatpush1.bf16.msra.mxu0 %v8422_v51  ;;  %3044 = vmatpush1.bf16.msra.mxu1 %v8424_v55  ;;  %v1529_v51 = vld [vmem:[#allocation10 + $0x4d8] sm:$0xff]  ;;  %v8518_v55 = vcombine.low %v1504_v43, %v1512_v44  ;;  %v1600_v44 = vld [vmem:[#allocation10 + $0x710] sm:$0xff] }
 0x446   :  { %3002 = vmatprep.subr.bf16.mxu0 %v8439_v52  ;;  %3045 = vmatprep.subr.bf16.mxu1 %v8441_v53  ;;  %v8520_v52 = vcombine.low %v1505_v45, %v1513_v46  ;;  %v8535_v53 = vcombine.high %v1520_v57, %v1528_v61  ;;  %v8537_v56 = vcombine.high %v1521_v62, %v1529_v51  ;;  %v1608_v45 = vld [vmem:[#allocation10 + $0x750] sm:$0xff]  ;;  %v1601_v46 = vld [vmem:[#allocation10 + $0x718] sm:$0xff] }
 0x449   :  { %3003 = vmatpush1.bf16.msra.mxu0 %v8438_v5  ;;  %3046 = vmatpush1.bf16.msra.mxu1 %v8440_v6  ;;  %v1545_v5 = vld [vmem:[#allocation10 + $0x558] sm:$0xff]  ;;  %v8534_v6 = vcombine.low %v1520_v57, %v1528_v61  ;;  %v1616_v61 = vld [vmem:[#allocation10 + $0x790] sm:$0xff] }
 0x44a   :  { %3004 = vmatprep.subr.bf16.mxu0 %v8455_v7  ;;  %3047 = vmatprep.subr.bf16.mxu1 %v8457_v8  ;;  %v8536_v7 = vcombine.low %v1521_v62, %v1529_v51  ;;  %v8551_v8 = vcombine.high %v1536_v2, %v1544_v3  ;;  %v8553_v9 = vcombine.high %v1537_v4, %v1545_v5  ;;  %v1624_v62 = vld [vmem:[#allocation10 + $0x7d0] sm:$0xff]  ;;  %v1617_v51 = vld [vmem:[#allocation10 + $0x798] sm:$0xff] }
 0x44d   :  { %3005 = vmatpush1.bf16.msra.mxu0 %v8454_v13  ;;  %3048 = vmatpush1.bf16.msra.mxu1 %v8456_v14  ;;  %v1561_v13 = vld [vmem:[#allocation10 + $0x5d8] sm:$0xff]  ;;  %v8550_v14 = vcombine.low %v1536_v2, %v1544_v3  ;;  %v1378_v3 = vld [vmem:[#allocation10 + $0x20] sm:$0xff] }
 0x44e   :  { %3006 = vmatprep.subr.bf16.mxu0 %v8471_v17  ;;  %3049 = vmatprep.subr.bf16.mxu1 %v8473_v18  ;;  %v8552_v17 = vcombine.low %v1537_v4, %v1545_v5  ;;  %v8567_v18 = vcombine.high %v1552_v10, %v1560_v11  ;;  %v8569_v19 = vcombine.high %v1553_v12, %v1561_v13  ;;  %v1386_v4 = vld [vmem:[#allocation10 + $0x60] sm:$0xff]  ;;  %v1379_v5 = vld [vmem:[#allocation10 + $0x28] sm:$0xff] }
 0x451   :  { %3007 = vmatpush1.bf16.msra.mxu0 %v8470_v24  ;;  %3050 = vmatpush1.bf16.msra.mxu1 %v8472_v25  ;;  %v1577_v24 = vld [vmem:[#allocation10 + $0x658] sm:$0xff]  ;;  %v8566_v25 = vcombine.low %v1552_v10, %v1560_v11  ;;  %v1394_v11 = vld [vmem:[#allocation10 + $0xa0] sm:$0xff] }
 0x452   :  { %3008 = vmatprep.subr.bf16.mxu0 %v8487_v26  ;;  %3051 = vmatprep.subr.bf16.mxu1 %v8489_v32  ;;  %v8568_v26 = vcombine.low %v1553_v12, %v1561_v13  ;;  %v8583_v32 = vcombine.high %v1568_v20, %v1576_v21  ;;  %v8585_v33 = vcombine.high %v1569_v22, %v1577_v24  ;;  %v1402_v12 = vld [vmem:[#allocation10 + $0xe0] sm:$0xff]  ;;  %v1395_v13 = vld [vmem:[#allocation10 + $0xa8] sm:$0xff] }
 0x455   :  { %3009 = vmatpush1.bf16.msra.mxu0 %v8486_v37  ;;  %3052 = vmatpush1.bf16.msra.mxu1 %v8488_v39  ;;  %v1593_v37 = vld [vmem:[#allocation10 + $0x6d8] sm:$0xff]  ;;  %v8582_v39 = vcombine.low %v1568_v20, %v1576_v21  ;;  %v1410_v21 = vld [vmem:[#allocation10 + $0x120] sm:$0xff] }
 0x456   :  { %3010 = vmatprep.subr.bf16.mxu0 %v8503_v41  ;;  %3053 = vmatprep.subr.bf16.mxu1 %v8505_v42  ;;  %v8584_v41 = vcombine.low %v1569_v22, %v1577_v24  ;;  %v8599_v42 = vcombine.high %v1584_v28, %v1592_v35  ;;  %v8601_v43 = vcombine.high %v1585_v36, %v1593_v37  ;;  %v1418_v22 = vld [vmem:[#allocation10 + $0x160] sm:$0xff]  ;;  %v1411_v24 = vld [vmem:[#allocation10 + $0x128] sm:$0xff] }
 0x459   :  { %3011 = vmatpush1.bf16.msra.mxu0 %v8502_v40  ;;  %3054 = vmatpush1.bf16.msra.mxu1 %v8504_v47  ;;  %v1609_v40 = vld [vmem:[#allocation10 + $0x758] sm:$0xff]  ;;  %v8598_v47 = vcombine.low %v1584_v28, %v1592_v35  ;;  %v1426_v35 = vld [vmem:[#allocation10 + $0x1a0] sm:$0xff] }
 0x45a   :  { %3012 = vmatprep.subr.bf16.mxu0 %v8519_v48  ;;  %3055 = vmatprep.subr.bf16.mxu1 %v8521_v49  ;;  %v8600_v48 = vcombine.low %v1585_v36, %v1593_v37  ;;  %v8615_v49 = vcombine.high %v1600_v44, %v1608_v45  ;;  %v8617_v57 = vcombine.high %v1601_v46, %v1609_v40  ;;  %v1434_v36 = vld [vmem:[#allocation10 + $0x1e0] sm:$0xff]  ;;  %v1427_v37 = vld [vmem:[#allocation10 + $0x1a8] sm:$0xff] }
 0x45d   :  { %3013 = vmatpush1.bf16.msra.mxu0 %v8518_v55  ;;  %3056 = vmatpush1.bf16.msra.mxu1 %v8520_v52  ;;  %v1625_v55 = vld [vmem:[#allocation10 + $0x7d8] sm:$0xff]  ;;  %v8614_v52 = vcombine.low %v1600_v44, %v1608_v45  ;;  %v1442_v45 = vld [vmem:[#allocation10 + $0x220] sm:$0xff] }
 0x45e   :  { %3014 = vmatprep.subr.bf16.mxu0 %v8535_v53  ;;  %3057 = vmatprep.subr.bf16.mxu1 %v8537_v56  ;;  %v8616_v53 = vcombine.low %v1601_v46, %v1609_v40  ;;  %v8631_v56 = vcombine.high %v1616_v61, %v1624_v62  ;;  %v8633_v2 = vcombine.high %v1617_v51, %v1625_v55  ;;  %v1450_v46 = vld [vmem:[#allocation10 + $0x260] sm:$0xff]  ;;  %v1443_v40 = vld [vmem:[#allocation10 + $0x228] sm:$0xff] }
 0x461   :  { %3015 = vmatpush1.bf16.msra.mxu0 %v8534_v6  ;;  %3058 = vmatpush1.bf16.msra.mxu1 %v8536_v7  ;;  %v1387_v6 = vld [vmem:[#allocation10 + $0x68] sm:$0xff]  ;;  %v8630_v7 = vcombine.low %v1616_v61, %v1624_v62  ;;  %v1458_v62 = vld [vmem:[#allocation10 + $0x2a0] sm:$0xff] }
 0x462   :  { %3016 = vmatprep.subr.bf16.mxu0 %v8551_v8  ;;  %3059 = vmatprep.subr.bf16.mxu1 %v8553_v9  ;;  %v8632_v8 = vcombine.low %v1617_v51, %v1625_v55  ;;  %v8395_v9 = vcombine.high %v1378_v3, %v1386_v4  ;;  %v8397_v10 = vcombine.high %v1379_v5, %v1387_v6  ;;  %v1466_v51 = vld [vmem:[#allocation10 + $0x2e0] sm:$0xff]  ;;  %v1459_v55 = vld [vmem:[#allocation10 + $0x2a8] sm:$0xff] }
 0x465   :  { %3017 = vmatpush1.bf16.msra.mxu0 %v8550_v14  ;;  %3060 = vmatpush1.bf16.msra.mxu1 %v8552_v17  ;;  %v1403_v14 = vld [vmem:[#allocation10 + $0xe8] sm:$0xff]  ;;  %v8394_v17 = vcombine.low %v1378_v3, %v1386_v4  ;;  %v1474_v4 = vld [vmem:[#allocation10 + $0x320] sm:$0xff] }
 0x466   :  { %3018 = vmatprep.subr.bf16.mxu0 %v8567_v18  ;;  %3061 = vmatprep.subr.bf16.mxu1 %v8569_v19  ;;  %v8396_v18 = vcombine.low %v1379_v5, %v1387_v6  ;;  %v8411_v19 = vcombine.high %v1394_v11, %v1402_v12  ;;  %v8413_v20 = vcombine.high %v1395_v13, %v1403_v14  ;;  %v1482_v5 = vld [vmem:[#allocation10 + $0x360] sm:$0xff]  ;;  %v1475_v6 = vld [vmem:[#allocation10 + $0x328] sm:$0xff] }
 0x469   :  { %3019 = vmatpush1.bf16.msra.mxu0 %v8566_v25  ;;  %3062 = vmatpush1.bf16.msra.mxu1 %v8568_v26  ;;  %v1419_v25 = vld [vmem:[#allocation10 + $0x168] sm:$0xff]  ;;  %v8410_v26 = vcombine.low %v1394_v11, %v1402_v12  ;;  %v1490_v12 = vld [vmem:[#allocation10 + $0x3a0] sm:$0xff] }
 0x46a   :  { %3020 = vmatprep.subr.bf16.mxu0 %v8583_v32  ;;  %3063 = vmatprep.subr.bf16.mxu1 %v8585_v33  ;;  %v8412_v32 = vcombine.low %v1395_v13, %v1403_v14  ;;  %v8427_v33 = vcombine.high %v1410_v21, %v1418_v22  ;;  %v8429_v28 = vcombine.high %v1411_v24, %v1419_v25  ;;  %v1498_v13 = vld [vmem:[#allocation10 + $0x3e0] sm:$0xff]  ;;  %v1491_v14 = vld [vmem:[#allocation10 + $0x3a8] sm:$0xff] }
 0x46d   :  { %3021 = vmatpush1.bf16.msra.mxu0 %v8582_v39  ;;  %3064 = vmatpush1.bf16.msra.mxu1 %v8584_v41  ;;  %v1435_v39 = vld [vmem:[#allocation10 + $0x1e8] sm:$0xff]  ;;  %v8426_v41 = vcombine.low %v1410_v21, %v1418_v22  ;;  %v1506_v22 = vld [vmem:[#allocation10 + $0x420] sm:$0xff] }
 0x46e   :  { %3022 = vmatprep.subr.bf16.mxu0 %v8599_v42  ;;  %3065 = vmatprep.subr.bf16.mxu1 %v8601_v43  ;;  %v8428_v42 = vcombine.low %v1411_v24, %v1419_v25  ;;  %v8443_v43 = vcombine.high %v1426_v35, %v1434_v36  ;;  %v8445_v44 = vcombine.high %v1427_v37, %v1435_v39  ;;  %v1514_v24 = vld [vmem:[#allocation10 + $0x460] sm:$0xff]  ;;  %v1507_v25 = vld [vmem:[#allocation10 + $0x428] sm:$0xff] }
 0x471   :  { %3023 = vmatpush1.bf16.msra.mxu0 %v8598_v47  ;;  %3066 = vmatpush1.bf16.msra.mxu1 %v8600_v48  ;;  %v1451_v47 = vld [vmem:[#allocation10 + $0x268] sm:$0xff]  ;;  %v8442_v48 = vcombine.low %v1426_v35, %v1434_v36  ;;  %v1522_v36 = vld [vmem:[#allocation10 + $0x4a0] sm:$0xff] }
 0x472   :  { %3024 = vmatprep.subr.bf16.mxu0 %v8615_v49  ;;  %3067 = vmatprep.subr.bf16.mxu1 %v8617_v57  ;;  %v8444_v49 = vcombine.low %v1427_v37, %v1435_v39  ;;  %v8459_v57 = vcombine.high %v1442_v45, %v1450_v46  ;;  %v8461_v61 = vcombine.high %v1443_v40, %v1451_v47  ;;  %v1530_v37 = vld [vmem:[#allocation10 + $0x4e0] sm:$0xff]  ;;  %v1523_v39 = vld [vmem:[#allocation10 + $0x4a8] sm:$0xff] }
 0x475   :  { %3025 = vmatpush1.bf16.msra.mxu0 %v8614_v52  ;;  %3068 = vmatpush1.bf16.msra.mxu1 %v8616_v53  ;;  %v1467_v52 = vld [vmem:[#allocation10 + $0x2e8] sm:$0xff]  ;;  %v8458_v53 = vcombine.low %v1442_v45, %v1450_v46  ;;  %v1538_v46 = vld [vmem:[#allocation10 + $0x520] sm:$0xff] }
 0x476   :  { %3026 = vmatprep.subr.bf16.mxu0 %v8631_v56  ;;  %3069 = vmatprep.subr.bf16.mxu1 %v8633_v2  ;;  %v8460_v56 = vcombine.low %v1443_v40, %v1451_v47  ;;  %v8475_v2 = vcombine.high %v1458_v62, %v1466_v51  ;;  %v8477_v3 = vcombine.high %v1459_v55, %v1467_v52  ;;  %v1546_v40 = vld [vmem:[#allocation10 + $0x560] sm:$0xff]  ;;  %v1539_v47 = vld [vmem:[#allocation10 + $0x528] sm:$0xff] }
 0x479   :  { %3027 = vmatpush1.bf16.msra.mxu0 %v8630_v7  ;;  %3070 = vmatpush1.bf16.msra.mxu1 %v8632_v8  ;;  %v1483_v7 = vld [vmem:[#allocation10 + $0x368] sm:$0xff]  ;;  %v8474_v8 = vcombine.low %v1458_v62, %v1466_v51  ;;  %v1554_v51 = vld [vmem:[#allocation10 + $0x5a0] sm:$0xff] }
 0x47a   :  { %3082 = vmatprep.subr.bf16.mxu0 %v8395_v9  ;;  %3125 = vmatprep.subr.bf16.mxu1 %v8397_v10  ;;  %v8476_v9 = vcombine.low %v1459_v55, %v1467_v52  ;;  %v8491_v10 = vcombine.high %v1474_v4, %v1482_v5  ;;  %v8493_v11 = vcombine.high %v1475_v6, %v1483_v7  ;;  %v1562_v55 = vld [vmem:[#allocation10 + $0x5e0] sm:$0xff]  ;;  %v1555_v52 = vld [vmem:[#allocation10 + $0x5a8] sm:$0xff] }
 0x47c   :  { %3029 = vmatmul.mubr.bf16.vlgmr.msra.gmra.mrb[24].mxu0 %v9922_v34  ;;  %3072 = vmatmul.mubr.bf16.vlgmr.msra.gmra.mrb[24].mxu1 %v9922_v34 }
 0x47d   :  { %3083 = vmatpush1.bf16.msra.mxu0 %v8394_v17  ;;  %3114 = vmatprep.mubr.bf16.mxu0 %v9924_v38  ;;  %v1499_v17 = vld [vmem:[#allocation10 + $0x3e8] sm:$0xff] }
 0x47e   :  { %3126 = vmatpush1.bf16.msra.mxu1 %v8396_v18  ;;  %3157 = vmatprep.mubr.bf16.mxu1 %v9924_v38  ;;  %v8490_v18 = vcombine.low %v1474_v4, %v1482_v5  ;;  %v8509_v21 = vcombine.high %v1491_v14, %v1499_v17  ;;  %v1570_v5 = vld [vmem:[#allocation10 + $0x620] sm:$0xff] }
 0x47f   :  { %3084 = vmatprep.subr.bf16.mxu0 %v8411_v19  ;;  %3127 = vmatprep.subr.bf16.mxu1 %v8413_v20  ;;  %v8492_v19 = vcombine.low %v1475_v6, %v1483_v7  ;;  %v8507_v20 = vcombine.high %v1490_v12, %v1498_v13  ;;  %v1578_v6 = vld [vmem:[#allocation10 + $0x660] sm:$0xff]  ;;  %v1571_v7 = vld [vmem:[#allocation10 + $0x628] sm:$0xff] }
 0x481   :  { %3085 = vmatpush1.bf16.msra.mxu0 %v8410_v26  ;;  %v1515_v26 = vld [vmem:[#allocation10 + $0x468] sm:$0xff] }
 0x482   :  { %3128 = vmatpush1.bf16.msra.mxu1 %v8412_v32  ;;  %3086 = vmatprep.subr.bf16.mxu0 %v8427_v33  ;;  %v8506_v32 = vcombine.low %v1490_v12, %v1498_v13  ;;  %v8508_v33 = vcombine.low %v1491_v14, %v1499_v17  ;;  %v8525_v35 = vcombine.high %v1507_v25, %v1515_v26  ;;  %v1586_v13 = vld [vmem:[#allocation10 + $0x6a0] sm:$0xff]  ;;  %v1587_v17 = vld [vmem:[#allocation10 + $0x6a8] sm:$0xff] }
 0x483   :  { %3129 = vmatprep.subr.bf16.mxu1 %v8429_v28  ;;  %v8523_v28 = vcombine.high %v1506_v22, %v1514_v24  ;;  %v1594_v14 = vld [vmem:[#allocation10 + $0x6e0] sm:$0xff] }
 0x485   :  { %3087 = vmatpush1.bf16.msra.mxu0 %v8426_v41  ;;  %v1531_v41 = vld [vmem:[#allocation10 + $0x4e8] sm:$0xff] }
 0x486   :  { %3130 = vmatpush1.bf16.msra.mxu1 %v8428_v42  ;;  %3088 = vmatprep.subr.bf16.mxu0 %v8443_v43  ;;  %v8522_v42 = vcombine.low %v1506_v22, %v1514_v24  ;;  %v8524_v43 = vcombine.low %v1507_v25, %v1515_v26  ;;  %v8541_v45 = vcombine.high %v1523_v39, %v1531_v41  ;;  %v1602_v24 = vld [vmem:[#allocation10 + $0x720] sm:$0xff]  ;;  %v1603_v26 = vld [vmem:[#allocation10 + $0x728] sm:$0xff] }
 0x487   :  { %3131 = vmatprep.subr.bf16.mxu1 %v8445_v44  ;;  %v8539_v44 = vcombine.high %v1522_v36, %v1530_v37  ;;  %v1610_v25 = vld [vmem:[#allocation10 + $0x760] sm:$0xff] }
 0x489   :  { %3089 = vmatpush1.bf16.msra.mxu0 %v8442_v48  ;;  %v1547_v48 = vld [vmem:[#allocation10 + $0x568] sm:$0xff] }
 0x48a   :  { %3132 = vmatpush1.bf16.msra.mxu1 %v8444_v49  ;;  %3090 = vmatprep.subr.bf16.mxu0 %v8459_v57  ;;  %v8538_v49 = vcombine.low %v1522_v36, %v1530_v37  ;;  %v8540_v57 = vcombine.low %v1523_v39, %v1531_v41  ;;  %v8557_v62 = vcombine.high %v1539_v47, %v1547_v48  ;;  %v1618_v37 = vld [vmem:[#allocation10 + $0x7a0] sm:$0xff]  ;;  %v1619_v41 = vld [vmem:[#allocation10 + $0x7a8] sm:$0xff] }
 0x48b   :  { %3133 = vmatprep.subr.bf16.mxu1 %v8461_v61  ;;  %v8555_v61 = vcombine.high %v1538_v46, %v1546_v40  ;;  %v1626_v39 = vld [vmem:[#allocation10 + $0x7e0] sm:$0xff] }
 0x48d   :  { %3091 = vmatpush1.bf16.msra.mxu0 %v8458_v53  ;;  %v1563_v53 = vld [vmem:[#allocation10 + $0x5e8] sm:$0xff] }
 0x48e   :  { %3134 = vmatpush1.bf16.msra.mxu1 %v8460_v56  ;;  %3092 = vmatprep.subr.bf16.mxu0 %v8475_v2  ;;  %v8554_v56 = vcombine.low %v1538_v46, %v1546_v40  ;;  %v8556_v2 = vcombine.low %v1539_v47, %v1547_v48  ;;  %v8573_v4 = vcombine.high %v1555_v52, %v1563_v53  ;;  %v1380_v40 = vld [vmem:[#allocation10 + $0x30] sm:$0xff]  ;;  %v1381_v48 = vld [vmem:[#allocation10 + $0x38] sm:$0xff] }
 0x48f   :  { %3135 = vmatprep.subr.bf16.mxu1 %v8477_v3  ;;  %v8571_v3 = vcombine.high %v1554_v51, %v1562_v55  ;;  %v1388_v47 = vld [vmem:[#allocation10 + $0x70] sm:$0xff] }
 0x491   :  { %3093 = vmatpush1.bf16.msra.mxu0 %v8474_v8  ;;  %v1579_v8 = vld [vmem:[#allocation10 + $0x668] sm:$0xff] }
 0x492   :  { %3136 = vmatpush1.bf16.msra.mxu1 %v8476_v9  ;;  %3094 = vmatprep.subr.bf16.mxu0 %v8491_v10  ;;  %v8570_v9 = vcombine.low %v1554_v51, %v1562_v55  ;;  %v8572_v10 = vcombine.low %v1555_v52, %v1563_v53  ;;  %v8589_v12 = vcombine.high %v1571_v7, %v1579_v8  ;;  %v1396_v55 = vld [vmem:[#allocation10 + $0xb0] sm:$0xff] }
 0x493   :  { %3137 = vmatprep.subr.bf16.mxu1 %v8493_v11  ;;  %v8587_v11 = vcombine.high %v1570_v5, %v1578_v6  ;;  %v1404_v52 = vld [vmem:[#allocation10 + $0xf0] sm:$0xff]  ;;  %v8398_v53 = vcombine.low %v1380_v40, %v1388_v47 }
 0x495   :  { %3095 = vmatpush1.bf16.msra.mxu0 %v8490_v18  ;;  %v1595_v18 = vld [vmem:[#allocation10 + $0x6e8] sm:$0xff] }
 0x496   :  { %3138 = vmatpush1.bf16.msra.mxu1 %v8492_v19  ;;  %3096 = vmatprep.subr.bf16.mxu0 %v8507_v20  ;;  %v8586_v19 = vcombine.low %v1570_v5, %v1578_v6  ;;  %v8588_v20 = vcombine.low %v1571_v7, %v1579_v8  ;;  %v8605_v22 = vcombine.high %v1587_v17, %v1595_v18  ;;  %v1412_v5 = vld [vmem:[#allocation10 + $0x130] sm:$0xff]  ;;  %v1413_v8 = vld [vmem:[#allocation10 + $0x138] sm:$0xff] }
 0x497   :  { %3139 = vmatprep.subr.bf16.mxu1 %v8509_v21  ;;  %v8603_v21 = vcombine.high %v1586_v13, %v1594_v14  ;;  %v1420_v6 = vld [vmem:[#allocation10 + $0x170] sm:$0xff] }
 0x499   :  { %3097 = vmatpush1.bf16.msra.mxu0 %v8506_v32  ;;  %v1611_v32 = vld [vmem:[#allocation10 + $0x768] sm:$0xff] }
 0x49a   :  { %3140 = vmatpush1.bf16.msra.mxu1 %v8508_v33  ;;  %3098 = vmatprep.subr.bf16.mxu0 %v8523_v28  ;;  %v8602_v33 = vcombine.low %v1586_v13, %v1594_v14  ;;  %v8604_v28 = vcombine.low %v1587_v17, %v1595_v18  ;;  %v8621_v36 = vcombine.high %v1603_v26, %v1611_v32  ;;  %v1428_v14 = vld [vmem:[#allocation10 + $0x1b0] sm:$0xff]  ;;  %v1429_v18 = vld [vmem:[#allocation10 + $0x1b8] sm:$0xff] }
 0x49b   :  { %3141 = vmatprep.subr.bf16.mxu1 %v8525_v35  ;;  %v8619_v35 = vcombine.high %v1602_v24, %v1610_v25  ;;  %v1436_v17 = vld [vmem:[#allocation10 + $0x1f0] sm:$0xff] }
 0x49d   :  { %3099 = vmatpush1.bf16.msra.mxu0 %v8522_v42  ;;  %v1627_v42 = vld [vmem:[#allocation10 + $0x7e8] sm:$0xff] }
 0x49e   :  { %3142 = vmatpush1.bf16.msra.mxu1 %v8524_v43  ;;  %3100 = vmatprep.subr.bf16.mxu0 %v8539_v44  ;;  %v8618_v43 = vcombine.low %v1602_v24, %v1610_v25  ;;  %v8620_v44 = vcombine.low %v1603_v26, %v1611_v32  ;;  %v8637_v46 = vcombine.high %v1619_v41, %v1627_v42  ;;  %v1444_v25 = vld [vmem:[#allocation10 + $0x230] sm:$0xff]  ;;  %v1445_v32 = vld [vmem:[#allocation10 + $0x238] sm:$0xff] }
 0x49f   :  { %3143 = vmatprep.subr.bf16.mxu1 %v8541_v45  ;;  %v8635_v45 = vcombine.high %v1618_v37, %v1626_v39  ;;  %v1452_v26 = vld [vmem:[#allocation10 + $0x270] sm:$0xff] }
 0x4a1   :  { %3101 = vmatpush1.bf16.msra.mxu0 %v8538_v49  ;;  %v1389_v49 = vld [vmem:[#allocation10 + $0x78] sm:$0xff] }
 0x4a2   :  { %3144 = vmatpush1.bf16.msra.mxu1 %v8540_v57  ;;  %3102 = vmatprep.subr.bf16.mxu0 %v8555_v61  ;;  %v8634_v57 = vcombine.low %v1618_v37, %v1626_v39  ;;  %v8636_v61 = vcombine.low %v1619_v41, %v1627_v42  ;;  %v8401_v51 = vcombine.high %v1381_v48, %v1389_v49  ;;  %v1460_v37 = vld [vmem:[#allocation10 + $0x2b0] sm:$0xff]  ;;  %v1461_v41 = vld [vmem:[#allocation10 + $0x2b8] sm:$0xff] }
 0x4a3   :  { %3145 = vmatprep.subr.bf16.mxu1 %v8557_v62  ;;  %v8399_v62 = vcombine.high %v1380_v40, %v1388_v47  ;;  %v1468_v39 = vld [vmem:[#allocation10 + $0x2f0] sm:$0xff]  ;;  %v1469_v42 = vld [vmem:[#allocation10 + $0x2f8] sm:$0xff] }
 0x4a4   :  { %v1476_v40 = vld [vmem:[#allocation10 + $0x330] sm:$0xff] }
 0x4a5   :  { %3103 = vmatpush1.bf16.msra.mxu0 %v8554_v56  ;;  %v1397_v56 = vld [vmem:[#allocation10 + $0xb8] sm:$0xff]  ;;  %v1484_v47 = vld [vmem:[#allocation10 + $0x370] sm:$0xff] }
 0x4a6   :  { %3146 = vmatpush1.bf16.msra.mxu1 %v8556_v2  ;;  %3104 = vmatprep.subr.bf16.mxu0 %v8571_v3  ;;  %v1405_v2 = vld [vmem:[#allocation10 + $0xf8] sm:$0xff]  ;;  %v8400_v3 = vcombine.low %v1381_v48, %v1389_v49 }
 0x4a7   :  { %3147 = vmatprep.subr.bf16.mxu1 %v8573_v4  ;;  %v8415_v4 = vcombine.high %v1396_v55, %v1404_v52  ;;  %v8417_v7 = vcombine.high %v1397_v56, %v1405_v2  ;;  %v1477_v48 = vld [vmem:[#allocation10 + $0x338] sm:$0xff] }
 0x4a8   :  { %v1485_v49 = vld [vmem:[#allocation10 + $0x378] sm:$0xff] }
 0x4a9   :  { %3105 = vmatpush1.bf16.msra.mxu0 %v8570_v9  ;;  %v1421_v9 = vld [vmem:[#allocation10 + $0x178] sm:$0xff] }
 0x4aa   :  { %3148 = vmatpush1.bf16.msra.mxu1 %v8572_v10  ;;  %3106 = vmatprep.subr.bf16.mxu0 %v8587_v11  ;;  %v8414_v10 = vcombine.low %v1396_v55, %v1404_v52  ;;  %v8416_v11 = vcombine.low %v1397_v56, %v1405_v2  ;;  %v8433_v13 = vcombine.high %v1413_v8, %v1421_v9  ;;  %v1492_v55 = vld [vmem:[#allocation10 + $0x3b0] sm:$0xff]  ;;  %v1501_v56 = vld [vmem:[#allocation10 + $0x3f8] sm:$0xff] }
 0x4ab   :  { %3149 = vmatprep.subr.bf16.mxu1 %v8589_v12  ;;  %v8431_v12 = vcombine.high %v1412_v5, %v1420_v6  ;;  %v1500_v52 = vld [vmem:[#allocation10 + $0x3f0] sm:$0xff]  ;;  %v8494_v2 = vcombine.low %v1476_v40, %v1484_v47 }
 0x4ad   :  { %3107 = vmatpush1.bf16.msra.mxu0 %v8586_v19  ;;  %v1437_v19 = vld [vmem:[#allocation10 + $0x1f8] sm:$0xff] }
 0x4ae   :  { %3150 = vmatpush1.bf16.msra.mxu1 %v8588_v20  ;;  %3108 = vmatprep.subr.bf16.mxu0 %v8603_v21  ;;  %v8430_v20 = vcombine.low %v1412_v5, %v1420_v6  ;;  %v8432_v21 = vcombine.low %v1413_v8, %v1421_v9  ;;  %v8449_v24 = vcombine.high %v1429_v18, %v1437_v19  ;;  %v1508_v6 = vld [vmem:[#allocation10 + $0x430] sm:$0xff]  ;;  %v1509_v8 = vld [vmem:[#allocation10 + $0x438] sm:$0xff] }
 0x4af   :  { %3151 = vmatprep.subr.bf16.mxu1 %v8605_v22  ;;  %v8447_v22 = vcombine.high %v1428_v14, %v1436_v17  ;;  %v1517_v9 = vld [vmem:[#allocation10 + $0x478] sm:$0xff] }
 0x4b1   :  { %3109 = vmatpush1.bf16.msra.mxu0 %v8602_v33  ;;  %v1453_v33 = vld [vmem:[#allocation10 + $0x278] sm:$0xff] }
 0x4b2   :  { %3152 = vmatpush1.bf16.msra.mxu1 %v8604_v28  ;;  %3110 = vmatprep.subr.bf16.mxu0 %v8619_v35  ;;  %v8448_v28 = vcombine.low %v1429_v18, %v1437_v19  ;;  %v8463_v35 = vcombine.high %v1444_v25, %v1452_v26  ;;  %v1525_v18 = vld [vmem:[#allocation10 + $0x4b8] sm:$0xff] }
 0x4b3   :  { %3153 = vmatprep.subr.bf16.mxu1 %v8621_v36  ;;  %v8465_v36 = vcombine.high %v1445_v32, %v1453_v33  ;;  %v1533_v19 = vld [vmem:[#allocation10 + $0x4f8] sm:$0xff] }
 0x4b5   :  { %3111 = vmatpush1.bf16.msra.mxu0 %v8618_v43  ;;  %v8462_v43 = vcombine.low %v1444_v25, %v1452_v26  ;;  %v1540_v25 = vld [vmem:[#allocation10 + $0x530] sm:$0xff] }
 0x4b6   :  { %3154 = vmatpush1.bf16.msra.mxu1 %v8620_v44  ;;  %3112 = vmatprep.subr.bf16.mxu0 %v8635_v45  ;;  %v8464_v44 = vcombine.low %v1445_v32, %v1453_v33  ;;  %v8479_v45 = vcombine.high %v1460_v37, %v1468_v39  ;;  %v1548_v26 = vld [vmem:[#allocation10 + $0x570] sm:$0xff]  ;;  %v1541_v32 = vld [vmem:[#allocation10 + $0x538] sm:$0xff] }
 0x4b7   :  { %3155 = vmatprep.subr.bf16.mxu1 %v8637_v46  ;;  %v8481_v46 = vcombine.high %v1461_v41, %v1469_v42  ;;  %v1549_v33 = vld [vmem:[#allocation10 + $0x578] sm:$0xff] }
 0x4b9   :  { %3113 = vmatpush1.bf16.msra.mxu0 %v8634_v57  ;;  %v8478_v57 = vcombine.low %v1460_v37, %v1468_v39  ;;  %v1556_v37 = vld [vmem:[#allocation10 + $0x5b0] sm:$0xff] }
 0x4ba   :  { %3156 = vmatpush1.bf16.msra.mxu1 %v8636_v61  ;;  %3168 = vmatprep.subr.bf16.mxu0 %v8399_v62  ;;  %v8480_v61 = vcombine.low %v1461_v41, %v1469_v42  ;;  %v8495_v62 = vcombine.high %v1476_v40, %v1484_v47  ;;  %v1564_v39 = vld [vmem:[#allocation10 + $0x5f0] sm:$0xff]  ;;  %v1557_v41 = vld [vmem:[#allocation10 + $0x5b8] sm:$0xff] }
 0x4bb   :  { %3211 = vmatprep.subr.bf16.mxu1 %v8401_v51  ;;  %v8497_v51 = vcombine.high %v1477_v48, %v1485_v49  ;;  %v1565_v42 = vld [vmem:[#allocation10 + $0x5f8] sm:$0xff]  ;;  %v1572_v40 = vld [vmem:[#allocation10 + $0x630] sm:$0xff] }
 0x4bc   :  { %3115 = vmatmul.mubr.bf16.vlgmr.msra.gmra.mrb[28].mxu0 %v9922_v34  ;;  %v1580_v47 = vld [vmem:[#allocation10 + $0x670] sm:$0xff] }
 0x4bd   :  { %3158 = vmatmul.mubr.bf16.vlgmr.msra.gmra.mrb[28].mxu1 %v9922_v34  ;;  %3169 = vmatpush1.bf16.msra.mxu0 %v8398_v53  ;;  %v1493_v53 = vld [vmem:[#allocation10 + $0x3b8] sm:$0xff] }
 0x4be   :  { %3200 = vmatprep.mubr.bf16.mxu0 %v9924_v38  ;;  %3212 = vmatpush1.bf16.msra.mxu1 %v8400_v3  ;;  %v8496_v3 = vcombine.low %v1477_v48, %v1485_v49  ;;  %v8513_v5 = vcombine.high %v1493_v53, %v1501_v56  ;;  %v1573_v48 = vld [vmem:[#allocation10 + $0x638] sm:$0xff] }
 0x4bf   :  { %3243 = vmatprep.mubr.bf16.mxu1 %v9924_v38  ;;  %3170 = vmatprep.subr.bf16.mxu0 %v8415_v4  ;;  %v8446_v38 = vcombine.low %v1428_v14, %v1436_v17  ;;  %v8511_v4 = vcombine.high %v1492_v55, %v1500_v52  ;;  %v1524_v14 = vld [vmem:[#allocation10 + $0x4b0] sm:$0xff]  ;;  %v1581_v49 = vld [vmem:[#allocation10 + $0x678] sm:$0xff] }
 0x4c0   :  { %3213 = vmatprep.subr.bf16.mxu1 %v8417_v7  ;;  %v1516_v7 = vld [vmem:[#allocation10 + $0x470] sm:$0xff] }
 0x4c1   :  { %3171 = vmatpush1.bf16.msra.mxu0 %v8414_v10  ;;  %v8510_v10 = vcombine.low %v1492_v55, %v1500_v52  ;;  %v1532_v17 = vld [vmem:[#allocation10 + $0x4f0] sm:$0xff] }
 0x4c2   :  { %3214 = vmatpush1.bf16.msra.mxu1 %v8416_v11  ;;  %3172 = vmatprep.subr.bf16.mxu0 %v8431_v12  ;;  %v8512_v11 = vcombine.low %v1493_v53, %v1501_v56  ;;  %v8527_v12 = vcombine.high %v1508_v6, %v1516_v7  ;;  %v1588_v55 = vld [vmem:[#allocation10 + $0x6b0] sm:$0xff]  ;;  %v1589_v53 = vld [vmem:[#allocation10 + $0x6b8] sm:$0xff] }
 0x4c3   :  { %3215 = vmatprep.subr.bf16.mxu1 %v8433_v13  ;;  %v8529_v13 = vcombine.high %v1509_v8, %v1517_v9  ;;  %v1596_v52 = vld [vmem:[#allocation10 + $0x6f0] sm:$0xff]  ;;  %v1597_v56 = vld [vmem:[#allocation10 + $0x6f8] sm:$0xff] }
 0x4c5   :  { %3173 = vmatpush1.bf16.msra.mxu0 %v8430_v20  ;;  %v8526_v20 = vcombine.low %v1508_v6, %v1516_v7  ;;  %v1604_v6 = vld [vmem:[#allocation10 + $0x730] sm:$0xff] }
 0x4c6   :  { %3216 = vmatpush1.bf16.msra.mxu1 %v8432_v21  ;;  %3174 = vmatprep.subr.bf16.mxu0 %v8447_v22  ;;  %v8528_v21 = vcombine.low %v1509_v8, %v1517_v9  ;;  %v8543_v22 = vcombine.high %v1524_v14, %v1532_v17  ;;  %v1612_v7 = vld [vmem:[#allocation10 + $0x770] sm:$0xff]  ;;  %v1605_v8 = vld [vmem:[#allocation10 + $0x738] sm:$0xff] }
 0x4c7   :  { %3217 = vmatprep.subr.bf16.mxu1 %v8449_v24  ;;  %v8545_v24 = vcombine.high %v1525_v18, %v1533_v19  ;;  %v1613_v9 = vld [vmem:[#allocation10 + $0x778] sm:$0xff] }
 0x4c9   :  { %3175 = vmatpush1.bf16.msra.mxu0 %v8446_v38  ;;  %v8542_v38 = vcombine.low %v1524_v14, %v1532_v17  ;;  %v1620_v14 = vld [vmem:[#allocation10 + $0x7b0] sm:$0xff] }
 0x4ca   :  { %3218 = vmatpush1.bf16.msra.mxu1 %v8448_v28  ;;  %3176 = vmatprep.subr.bf16.mxu0 %v8463_v35  ;;  %v8544_v28 = vcombine.low %v1525_v18, %v1533_v19  ;;  %v8559_v35 = vcombine.high %v1540_v25, %v1548_v26  ;;  %v1628_v17 = vld [vmem:[#allocation10 + $0x7f0] sm:$0xff]  ;;  %v1621_v18 = vld [vmem:[#allocation10 + $0x7b8] sm:$0xff] }
 0x4cb   :  { %3219 = vmatprep.subr.bf16.mxu1 %v8465_v36  ;;  %v8561_v36 = vcombine.high %v1541_v32, %v1549_v33  ;;  %v1629_v19 = vld [vmem:[#allocation10 + $0x7f8] sm:$0xff] }
 0x4cd   :  { %3177 = vmatpush1.bf16.msra.mxu0 %v8462_v43  ;;  %v8558_v43 = vcombine.low %v1540_v25, %v1548_v26  ;;  %v8638_v25 = vcombine.low %v1620_v14, %v1628_v17  ;;  %v8640_v26 = vcombine.low %v1621_v18, %v1629_v19 }
 0x4ce   :  { %3220 = vmatpush1.bf16.msra.mxu1 %v8464_v44  ;;  %3178 = vmatprep.subr.bf16.mxu0 %v8479_v45  ;;  %v8560_v44 = vcombine.low %v1541_v32, %v1549_v33  ;;  %v8575_v45 = vcombine.high %v1556_v37, %v1564_v39 }
 0x4cf   :  { %3221 = vmatprep.subr.bf16.mxu1 %v8481_v46  ;;  %v8577_v46 = vcombine.high %v1557_v41, %v1565_v42 }
 0x4d1   :  { %3179 = vmatpush1.bf16.msra.mxu0 %v8478_v57  ;;  %v8574_v57 = vcombine.low %v1556_v37, %v1564_v39 }
 0x4d2   :  { %3222 = vmatpush1.bf16.msra.mxu1 %v8480_v61  ;;  %3180 = vmatprep.subr.bf16.mxu0 %v8495_v62  ;;  %v8576_v61 = vcombine.low %v1557_v41, %v1565_v42  ;;  %v8591_v62 = vcombine.high %v1572_v40, %v1580_v47 }
 0x4d3   :  { %3223 = vmatprep.subr.bf16.mxu1 %v8497_v51  ;;  %v8593_v51 = vcombine.high %v1573_v48, %v1581_v49 }
 0x4d5   :  { %3181 = vmatpush1.bf16.msra.mxu0 %v8494_v2  ;;  %v8590_v2 = vcombine.low %v1572_v40, %v1580_v47  ;;  %v3285_v47 = vsel %vm10277_vm12, 4294967295, %v9617_v30 }
 0x4d6   :  { %3224 = vmatpush1.bf16.msra.mxu1 %v8496_v3  ;;  %3182 = vmatprep.subr.bf16.mxu0 %v8511_v4  ;;  %v8592_v3 = vcombine.low %v1573_v48, %v1581_v49  ;;  %v8607_v4 = vcombine.high %v1588_v55, %v1596_v52 }
 0x4d7   :  { %3225 = vmatprep.subr.bf16.mxu1 %v8513_v5  ;;  %v8609_v5 = vcombine.high %v1589_v53, %v1597_v56 }
 0x4d9   :  { %3183 = vmatpush1.bf16.msra.mxu0 %v8510_v10  ;;  %v8606_v10 = vcombine.low %v1588_v55, %v1596_v52 }
 0x4da   :  { %3226 = vmatpush1.bf16.msra.mxu1 %v8512_v11  ;;  %3184 = vmatprep.subr.bf16.mxu0 %v8527_v12  ;;  %v8608_v11 = vcombine.low %v1589_v53, %v1597_v56  ;;  %v8623_v12 = vcombine.high %v1604_v6, %v1612_v7  ;;  %v9946_v53 = vsel %vm3284_vm13, %v3285_v47, 0 }
 0x4db   :  { %3227 = vmatprep.subr.bf16.mxu1 %v8529_v13  ;;  %v8625_v13 = vcombine.high %v1605_v8, %v1613_v9 }
 0x4dd   :  { %3185 = vmatpush1.bf16.msra.mxu0 %v8526_v20  ;;  %v8622_v20 = vcombine.low %v1604_v6, %v1612_v7 }
 0x4de   :  { %3228 = vmatpush1.bf16.msra.mxu1 %v8528_v21  ;;  %3186 = vmatprep.subr.bf16.mxu0 %v8543_v22  ;;  %v8624_v21 = vcombine.low %v1605_v8, %v1613_v9  ;;  %v8639_v22 = vcombine.high %v1620_v14, %v1628_v17  ;;  %v9363_v17 = vld [vmem:[#allocation11 + $0x40] sm:$0xff]  }
 0x4df   :  { %3229 = vmatprep.subr.bf16.mxu1 %v8545_v24  ;;  %v8641_v24 = vcombine.high %v1621_v18, %v1629_v19  ;;  %v9364_v18 = vld [vmem:[#allocation11] sm:$0xff]   ;;  %v9366_v19 = vld [vmem:[#allocation11 + $0x8] sm:$0xff]  }
 0x4e1   :  { %3187 = vmatpush1.bf16.msra.mxu0 %v8542_v38 }
 0x4e2   :  { %3230 = vmatpush1.bf16.msra.mxu1 %v8544_v28  ;;  %3188 = vmatprep.subr.bf16.mxu0 %v8559_v35 }
 0x4e3   :  { %3231 = vmatprep.subr.bf16.mxu1 %v8561_v36 }
 0x4e5   :  { %3189 = vmatpush1.bf16.msra.mxu0 %v8558_v43 }
 0x4e6   :  { %3232 = vmatpush1.bf16.msra.mxu1 %v8560_v44  ;;  %3190 = vmatprep.subr.bf16.mxu0 %v8575_v45 }
 0x4e7   :  { %3233 = vmatprep.subr.bf16.mxu1 %v8577_v46 }
 0x4e9   :  { %3191 = vmatpush1.bf16.msra.mxu0 %v8574_v57 }
 0x4ea   :  { %3234 = vmatpush1.bf16.msra.mxu1 %v8576_v61  ;;  %3192 = vmatprep.subr.bf16.mxu0 %v8591_v62 }
 0x4eb   :  { %3235 = vmatprep.subr.bf16.mxu1 %v8593_v51 }
 0x4ed   :  { %3193 = vmatpush1.bf16.msra.mxu0 %v8590_v2 }
 0x4ee   :  { %3236 = vmatpush1.bf16.msra.mxu1 %v8592_v3  ;;  %3194 = vmatprep.subr.bf16.mxu0 %v8607_v4  ;;  %v9951_v3 = vadd.s32 16, %v9787_v59  ;;  %v9954_v4 = vadd.s32 24, %v9787_v59 }
 0x4ef   :  { %3237 = vmatprep.subr.bf16.mxu1 %v8609_v5 }
 0x4f0   :  { %vm3267_vm13 = vcmp.eq.s32.totalorder %v9951_v3, %v9849_v29  ;;  %vm3268_vm12 = vcmp.eq.s32.totalorder %v9954_v4, %v9849_v29  ;;  %vm3256_vm15 = vcmp.eq.s32.totalorder %v9951_v3, %v9843_v27 }
 0x4f1   :  { %3195 = vmatpush1.bf16.msra.mxu0 %v8606_v10  ;;  %v8644_v9 = vsel %vm3267_vm13, 1.0, %v9614_v0  ;;  %v8645_v10 = vsel %vm3268_vm12, 1.0, %v9614_v0  ;;  %vm3257_vm13 = vcmp.eq.s32.totalorder %v9954_v4, %v9843_v27  ;;  %v9365_v27 = vld [vmem:[#allocation11 + $0x48] sm:$0xff]   ;;  %vm3529_vm12 = vcmp.eq.s32.totalorder %v9954_v4, %v9882_v50 }
 0x4f2   :  { %3238 = vmatpush1.bf16.msra.mxu1 %v8608_v11  ;;  %3196 = vmatprep.subr.bf16.mxu0 %v8623_v12  ;;  %v9973_v29 = vpack.c.bf16 %v8645_v10, %v8644_v9  ;;  %v8642_v12 = vsel %vm3256_vm15, 1.0, %v9614_v0  ;;  %vm3528_vm15 = vcmp.eq.s32.totalorder %v9951_v3, %v9882_v50  ;;  %v8655_v47 = vsel %vm3529_vm12, 1.0, %v9614_v0  ;;  %v9372_v50 = vld [vmem:[#allocation11 + $0x20] sm:$0xff]  }
 0x4f3   :  { %3239 = vmatprep.subr.bf16.mxu1 %v8625_v13  ;;  %v8643_v13 = vsel %vm3257_vm13, 1.0, %v9614_v0  ;;  %vm3678_vm13 = vcmp.eq.s32.totalorder %v9951_v3, %v9896_v16  ;;  %v9373_v3 = vld [vmem:[#allocation11 + $0x68] sm:$0xff]  }
 0x4f4   :  { %v9990_v14 = vpack.c.bf16 %v8643_v13, %v8642_v12 }
 0x4f5   :  { %3197 = vmatpush1.bf16.msra.mxu0 %v8622_v20  ;;  %v9367_v20 = vld [vmem:[#allocation11 + $0x50] sm:$0xff]  }
 0x4f6   :  { %3240 = vmatpush1.bf16.msra.mxu1 %v8624_v21  ;;  %3198 = vmatprep.subr.bf16.mxu0 %v8639_v22  ;;  %v9368_v21 = vld [vmem:[#allocation11 + $0x10] sm:$0xff]   ;;  %v9369_v22 = vld [vmem:[#allocation11 + $0x58] sm:$0xff]  }
 0x4f7   :  { %3241 = vmatprep.subr.bf16.mxu1 %v8641_v24  ;;  %v9370_v24 = vld [vmem:[#allocation11 + $0x18] sm:$0xff]  }
 0x4f9   :  { %3199 = vmatpush1.bf16.msra.mxu0 %v8638_v25  ;;  %v9371_v25 = vld [vmem:[#allocation11 + $0x60] sm:$0xff]  }
 0x4fa   :  { %3242 = vmatpush1.bf16.msra.mxu1 %v8640_v26 }
 0x4fc   :  { %3201 = vmatmul.mubr.bf16.vlgmr.msra.gmra.mrb[32].mxu0 %v9922_v34 }
 0x4fd   :  { %3244 = vmatmul.mubr.bf16.vlgmr.msra.gmra.mrb[32].mxu1 %v9922_v34  ;;  %3384 = vmatprep.mubr.bf16.mxu0 %v9616_v31 }
 0x4fe   :  { %3331 = vmatprep.mubr.bf16.mxu1 %v9616_v31 }
 0x50f   :  { %v2944_v32 = vpop.f32.mrb[20].mxu0  ;;  %v2987_v33 = vpop.f32.mrb[20].mxu1 }
 0x510   :  { %v2946_v38 = vpop.f32.mrb[21].mxu0  ;;  %v2989_v28 = vpop.f32.mrb[21].mxu1 }
 0x511   :  { %v2948_v35 = vpop.f32.mrb[22].mxu0  ;;  %v2991_v36 = vpop.f32.mrb[22].mxu1 }
 0x512   :  { %v3263_v37 = vpack.c.bf16 %v2948_v35, %v2944_v32  ;;  %v3265_v39 = vpack.c.bf16 %v2991_v36, %v2987_v33  ;;  %v2950_v41 = vpop.f32.mrb[23].mxu0  ;;  %v2993_v42 = vpop.f32.mrb[23].mxu1 }
 0x513   :  { %v3264_v43 = vpack.c.bf16 %v2950_v41, %v2946_v38  ;;  %v3266_v44 = vpack.c.bf16 %v2993_v42, %v2989_v28 }
 0x514   :  { %v3411_v7 = vand.u32 %v9946_v53, %v3263_v37  ;;  %v3417_v11 = vand.u32 %v9946_v53, %v3265_v39 }
 0x515   :  { %v3414_v6 = vand.u32 %v9946_v53, %v3264_v43  ;;  %v3420_v8 = vand.u32 %v9946_v53, %v3266_v44 }
 0x54f   :  { %v3030_v45 = vpop.f32.mrb[24].mxu0  ;;  %v3073_v46 = vpop.f32.mrb[24].mxu1 }
 0x550   :  { %v3032_v40 = vpop.f32.mrb[25].mxu0  ;;  %v3075_v34 = vpop.f32.mrb[25].mxu1 }
 0x551   :  { %v3034_v48 = vpop.f32.mrb[26].mxu0  ;;  %v3077_v49 = vpop.f32.mrb[26].mxu1 }
 0x552   :  { %v3274_v57 = vpack.c.bf16 %v3034_v48, %v3030_v45  ;;  %v3276_v61 = vpack.c.bf16 %v3077_v49, %v3073_v46  ;;  %v3036_v62 = vpop.f32.mrb[27].mxu0  ;;  %v3079_v51 = vpop.f32.mrb[27].mxu1 }
 0x553   :  { %v3275_v55 = vpack.c.bf16 %v3036_v62, %v3032_v40  ;;  %v3277_v52 = vpack.c.bf16 %v3079_v51, %v3075_v34  ;;  %v8654_v34 = vsel %vm3528_vm15, 1.0, %v9614_v0  ;;  %vm3679_vm15 = vcmp.eq.s32.totalorder %v9954_v4, %v9896_v16 }
 0x554   :  { %v3288_v30 = vand.u32 %v9946_v53, %v3274_v57  ;;  %v3294_v5 = vand.u32 %v9946_v53, %v3276_v61  ;;  %v10014_v48 = vpack.c.bf16 %v8655_v47, %v8654_v34  ;;  %v8661_v12 = vsel %vm3679_vm15, 1.0, %v9614_v0 }
 0x555   :  { %v3291_v56 = vand.u32 %v9946_v53, %v3275_v55  ;;  %v3297_v2 = vand.u32 %v9946_v53, %v3277_v52 }
 0x557   :  { %3299 = vmatprep.subr.bf16.mxu1 %v3291_v56  ;;  %3352 = vmatprep.subr.bf16.mxu0 %v3297_v2 }
 0x558   :  { %3300 = vmatpush1.bf16.msra.mxu1 %v3288_v30  ;;  %3353 = vmatpush1.bf16.msra.mxu0 %v3294_v5 }
 0x559   :  { %3422 = vmatprep.subr.bf16.mxu0 %v3414_v6  ;;  %9097 = vmatprep.subr.bf16.mxu1 %v9363_v17  ;;  %v9374_v17 = vld [vmem:[#allocation11 + $0x28] sm:$0xff]  }
 0x55b   :  { %8648 = vmatmul.mubr.msk.bf16.vlgmr.msra.gmra.mrb[36].mxu0 %vm3278_vm14, %v9864_v54  ;;  %8646 = vmatmul.mubr.msk.bf16.vlgmr.msra.gmra.mrb[36].mxu1 %vm3278_vm14, %v9864_v54 }
 0x55c   :  { %3423 = vmatpush1.bf16.msra.mxu0 %v3411_v7  ;;  %3394 = vmatprep.mubr.bf16.mxu0 %v9616_v31 }
 0x55d   :  { %3475 = vmatprep.subr.bf16.mxu0 %v3420_v8  ;;  %3341 = vmatprep.mubr.bf16.mxu1 %v9616_v31 }
 0x55e   :  { %9098 = vmatpush3.bf16.msra.mxu1 %v9364_v18 }
 0x55f   :  { %9099 = vmatprep.subr.bf16.mxu1 %v9365_v27 }
 0x562   :  { %9100 = vmatpush3.bf16.msra.mxu1 %v9366_v19  ;;  %v9375_v19 = vld [vmem:[#allocation11 + $0x70] sm:$0xff]  }
 0x563   :  { %8649 = vmatmul.mubr.msk.bf16.gmra.mrb[40].mxu0 %vm3278_vm14, %v9973_v29  ;;  %8647 = vmatmul.mubr.msk.bf16.gmra.mrb[40].mxu1 %vm3278_vm14, %v9973_v29 }
 0x564   :  { %3454 = vmatprep.mubr.bf16.mxu0 %v9616_v31  ;;  %9101 = vmatprep.subr.bf16.mxu1 %v9367_v20  ;;  %v9376_v20 = vld [vmem:[#allocation11 + $0x30] sm:$0xff]  }
 0x566   :  { %9102 = vmatpush3.bf16.msra.mxu1 %v9368_v21  ;;  %v9377_v21 = vld [vmem:[#allocation11 + $0x78] sm:$0xff]  }
 0x567   :  { %9103 = vmatprep.subr.bf16.mxu1 %v9369_v22 }
 0x56a   :  { %9104 = vmatpush3.bf16.msra.mxu1 %v9370_v24  ;;  %v9378_v24 = vld [vmem:[#allocation11 + $0x38] sm:$0xff]  }
 0x56b   :  { %8650 = vmatmul.mubr.msk.bf16.vlgmr.msra.gmra.mrb[44].mxu0 %vm3278_vm14, %v9876_v63  ;;  %9105 = vmatprep.subr.bf16.mxu1 %v9371_v25 }
 0x56c   :  { %3476 = vmatpush1.bf16.msra.mxu0 %v3417_v11  ;;  %3464 = vmatprep.mubr.bf16.mxu0 %v9616_v31  ;;  %v8660_v11 = vsel %vm3678_vm13, 1.0, %v9614_v0 }
 0x56d   :  { %v10038_v13 = vpack.c.bf16 %v8661_v12, %v8660_v11  ;;  %v9381_v11 = vld [vmem:[#allocation11 + $0xc8] sm:$0xff]  }
 0x56e   :  { %9106 = vmatpush3.bf16.msra.mxu1 %v9372_v50 }
 0x56f   :  { %9107 = vmatprep.subr.bf16.mxu1 %v9373_v3 }
 0x572   :  { %9108 = vmatpush3.bf16.msra.mxu1 %v9374_v17 }
 0x573   :  { %8651 = vmatmul.mubr.msk.bf16.gmra.mrb[48].mxu0 %vm3278_vm14, %v9990_v14  ;;  %9109 = vmatprep.subr.bf16.mxu1 %v9375_v19 }
 0x574   :  { %3507 = vmatprep.mubr.bf16.mxu0 %v9616_v31 }
 0x576   :  { %9110 = vmatpush3.bf16.msra.mxu1 %v9376_v20 }
 0x577   :  { %9111 = vmatprep.subr.bf16.mxu1 %v9377_v21  ;;  %v9383_v21 = vld [vmem:[#allocation11 + $0xd0] sm:$0xff]  }
 0x57a   :  { %9112 = vmatpush3.bf16.msra.mxu1 %v9378_v24 }
 0x57b   :  { %8652 = vmatmul.mubr.msk.bf16.vlgmr.msra.gmra.mrb[36].mxu0 %vm3278_vm14, %v9876_v63 }
 0x57c   :  { %3517 = vmatprep.mubr.bf16.mxu0 %v9616_v31 }
 0x583   :  { %8653 = vmatmul.mubr.msk.bf16.gmra.mrb[40].mxu0 %vm3278_vm14, %v9990_v14 }
 0x584   :  { %3588 = vmatprep.mubr.bf16.mxu0 %v9616_v31 }
 0x58f   :  { %v3116_v26 = vpop.f32.mrb[28].mxu0 }
 0x590   :  { %v3159_v32 = vpop.f32.mrb[28].mxu1  ;;  %v3118_v33 = vpop.f32.mrb[29].mxu0 }
 0x591   :  { %v3161_v38 = vpop.f32.mrb[29].mxu1  ;;  %v3120_v28 = vpop.f32.mrb[30].mxu0 }
 0x592   :  { %v3535_v35 = vpack.c.bf16 %v3120_v28, %v3116_v26  ;;  %v3163_v36 = vpop.f32.mrb[30].mxu1  ;;  %v3122_v37 = vpop.f32.mrb[31].mxu0 }
 0x593   :  { %v3537_v39 = vpack.c.bf16 %v3163_v36, %v3159_v32  ;;  %v3536_v41 = vpack.c.bf16 %v3122_v37, %v3118_v33  ;;  %v3165_v42 = vpop.f32.mrb[31].mxu1  ;;  %v9379_v32 = vld [vmem:[#allocation11 + $0xc0] sm:$0xff]  }
 0x594   :  { %v3538_v43 = vpack.c.bf16 %v3165_v42, %v3161_v38  ;;  %v3545_v45 = vand.u32 %v3535_v35, %v9946_v53  ;;  %9125 = vmatprep.subr.bf16.mxu1 %v9379_v32  ;;  %v3828_v38 = vld [vmem:[%s10273_s7] sm:$0xf] }
 0x595   :  { %v3548_v44 = vand.u32 %v3536_v41, %v9946_v53  ;;  %v3551_v40 = vand.u32 %v3537_v39, %v9946_v53  ;;  %v3833_v28 = vrot.slane %v3828_v38, %v9790_v60  ;;  %v3837_v36 = vrot.slane %v3828_v38, %v9916_v1 }
 0x596   :  { %v3554_v46 = vand.u32 %v3538_v43, %v9946_v53 }
 0x597   :  { %3556 = vmatprep.subr.bf16.mxu0 %v3548_v44 }
 0x598   :  { %3557 = vmatpush1.bf16.msra.mxu0 %v3545_v45 }
 0x599   :  { %3609 = vmatprep.subr.bf16.mxu0 %v3554_v46 }
 0x59b   :  { %8656 = vmatmul.mubr.msk.bf16.vlgmr.msra.gmra.mrb[44].mxu0 %vm3278_vm14, %v9893_v15 }
 0x59c   :  { %3610 = vmatpush1.bf16.msra.mxu0 %v3551_v40  ;;  %3598 = vmatprep.mubr.bf16.mxu0 %v9616_v31 }
 0x5a3   :  { %8657 = vmatmul.mubr.msk.bf16.gmra.mrb[48].mxu0 %vm3278_vm14, %v10014_v48 }
 0x5a4   :  { %3641 = vmatprep.mubr.bf16.mxu0 %v9616_v31 }
 0x5ab   :  { %8658 = vmatmul.mubr.msk.bf16.vlgmr.msra.gmra.mrb[36].mxu0 %vm3278_vm14, %v9893_v15 }
 0x5ac   :  { %3651 = vmatprep.mubr.bf16.mxu0 %v9616_v31 }
 0x5b3   :  { %8659 = vmatmul.mubr.msk.bf16.gmra.mrb[40].mxu0 %vm3278_vm14, %v10014_v48 }
 0x5b4   :  { %3738 = vmatprep.mubr.bf16.mxu0 %v9616_v31 }
 0x5cf   :  { %v3202_v49 = vpop.f32.mrb[32].mxu0 }
 0x5d0   :  { %v3245_v57 = vpop.f32.mrb[32].mxu1  ;;  %v3204_v61 = vpop.f32.mrb[33].mxu0 }
 0x5d1   :  { %v3247_v62 = vpop.f32.mrb[33].mxu1  ;;  %v3206_v51 = vpop.f32.mrb[34].mxu0 }
 0x5d2   :  { %v3685_v55 = vpack.c.bf16 %v3206_v51, %v3202_v49  ;;  %v3249_v52 = vpop.f32.mrb[34].mxu1  ;;  %v3208_v56 = vpop.f32.mrb[35].mxu0 }
 0x5d3   :  { %v3687_v2 = vpack.c.bf16 %v3249_v52, %v3245_v57  ;;  %v3686_v30 = vpack.c.bf16 %v3208_v56, %v3204_v61  ;;  %v3251_v5 = vpop.f32.mrb[35].mxu1  ;;  %v3840_v56 = vsub.s32 2, %v9787_v59 }
 0x5d4   :  { %v3688_v6 = vpack.c.bf16 %v3251_v5, %v3247_v62  ;;  %v3695_v8 = vand.u32 %v3685_v55, %v9946_v53 }
 0x5d5   :  { %v3698_v7 = vand.u32 %v3686_v30, %v9946_v53  ;;  %v3701_v10 = vand.u32 %v3687_v2, %v9946_v53 }
 0x5d6   :  { %v3704_v9 = vand.u32 %v3688_v6, %v9946_v53  ;;  %v9380_v6 = vld [vmem:[#allocation11 + $0x80] sm:$0xff]  }
 0x5d7   :  { %3706 = vmatprep.subr.bf16.mxu0 %v3698_v7  ;;  %v3844_v7 = vsub.s32 3, %v9787_v59 }
 0x5d8   :  { %3707 = vmatpush1.bf16.msra.mxu0 %v3695_v8 }
 0x5d9   :  { %3759 = vmatprep.subr.bf16.mxu0 %v3704_v9 }
 0x5db   :  { %8662 = vmatmul.mubr.msk.bf16.vlgmr.msra.gmra.mrb[44].mxu0 %vm3278_vm14, %v9908_v23 }
 0x5dc   :  { %3760 = vmatpush1.bf16.msra.mxu0 %v3701_v10  ;;  %3748 = vmatprep.mubr.bf16.mxu0 %v9616_v31 }
 0x5e3   :  { %8663 = vmatmul.mubr.msk.bf16.gmra.mrb[48].mxu0 %vm3278_vm14, %v10038_v13 }
 0x5e4   :  { %3791 = vmatprep.mubr.bf16.mxu0 %v9616_v31 }
 0x5eb   :  { %8664 = vmatmul.mubr.msk.bf16.vlgmr.msra.gmra.mrb[36].mxu0 %vm3278_vm14, %v9908_v23 }
 0x5ec   :  { %3801 = vmatprep.mubr.bf16.mxu0 %v9616_v31 }
 0x5f3   :  { %8665 = vmatmul.mubr.msk.bf16.gmra.mrb[40].mxu0 %vm3278_vm14, %v10038_v13 }
 0x5f4   :  { %4572 = vmatprep.mubr.bf16.mxu0 %v9616_v31 }
 0x62e   :  { %v3333_v16 = vpop.f32.mrb[36].mxu1 }
 0x62f   :  { %v3335_v4 = vpop.f32.mrb[37].mxu1 }
 0x630   :  { %v3337_v18 = vpop.f32.mrb[38].mxu1 }
 0x631   :  { %v3339_v27 = vpop.f32.mrb[39].mxu1 }
 0x636   :  { %v3343_v22 = vpop.f32.mrb[40].mxu1 }
 0x637   :  { %v3345_v25 = vpop.f32.mrb[41].mxu1 }
 0x638   :  { %v3347_v26 = vpop.f32.mrb[42].mxu1 }
 0x639   :  { %v3349_v33 = vpop.f32.mrb[43].mxu1 }
 0x6ae   :  { %v3740_v35 = vpop.f32.mrb[44].mxu0 }
 0x6af   :  { %v9223_v37 = vadd.f32 %v3740_v35, %v3333_v16  ;;  %v3742_v39 = vpop.f32.mrb[45].mxu0 }
 0x6b0   :  { %v9224_v41 = vadd.f32 %v3742_v39, %v3335_v4  ;;  %v3744_v42 = vpop.f32.mrb[46].mxu0  ;;  %v3841_v4 = vrot.slane %v3828_v38, %v3840_v56 }
 0x6b1   :  { %v3850_v43 = vadd.f32 %v9223_v37, %v3833_v28  ;;  %v9225_v44 = vadd.f32 %v3744_v42, %v3337_v18  ;;  %v3746_v45 = vpop.f32.mrb[47].mxu0  ;;  %v3845_v18 = vrot.slane %v3828_v38, %v3844_v7  ;;  %v9385_v38 = vld [vmem:[#allocation11 + $0xd8] sm:$0xff]  }
 0x6b2   :  { %v3851_v46 = vadd.f32 %v9224_v41, %v3837_v36  ;;  %v9226_v40 = vadd.f32 %v3746_v45, %v3339_v27  ;;  %v9382_v27 = vld [vmem:[#allocation11 + $0x88] sm:$0xff]  }
 0x6b3   :  { %v3854_v34 = vadd.f32 %v9225_v44, %v3833_v28  ;;  %v3866_v50 = vmax.f32 %v3850_v43, 0.0  ;;  %v4260_v43 = vld [vmem:[#allocation2 + $0x1] sm:$0x1] }
 0x6b4   :  { %v3855_v47 = vadd.f32 %v9226_v40, %v3837_v36  ;;  %v3867_v57 = vmax.f32 %v3851_v46, 0.0 }
 0x6b5   :  { %v3870_v49 = vmax.f32 %v3854_v34, 0.0  ;;  %v9386_v34 = vld [vmem:[#allocation11 + $0x98] sm:$0xff]  }
 0x6b6   :  { %v3871_v61 = vmax.f32 %v3855_v47, 0.0  ;;  %v3750_v62 = vpop.f32.mrb[48].mxu0 }
 0x6b7   :  { %v3882_v51 = vpack.c.bf16 %v3870_v49, %v3866_v50  ;;  %v9227_v55 = vadd.f32 %v3750_v62, %v3343_v22  ;;  %v3752_v52 = vpop.f32.mrb[49].mxu0  ;;  %v9387_v50 = vld [vmem:[#allocation11 + $0xe0] sm:$0xff]   ;;  %v8699_v49 = vmul.f32 -1.442695, %v4260_v43 }
 0x6b8   :  { %v9228_v2 = vadd.f32 %v3752_v52, %v3345_v25  ;;  %v3754_v30 = vpop.f32.mrb[50].mxu0  ;;  %v3883_v5 = vpack.c.bf16 %v3871_v61, %v3867_v57  ;;  %v4330_v43 = vld [vmem:[#allocation7 + $0x60] sm:$0xff] }
 0x6b9   :  { %v3858_v8 = vadd.f32 %v9227_v55, %v3833_v28  ;;  %v9229_v9 = vadd.f32 %v3754_v30, %v3347_v26  ;;  %v3756_v10 = vpop.f32.mrb[51].mxu0  ;;  %9431 = vpow2.f32 %v8699_v49 }
 0x6ba   :  { %v3859_v12 = vadd.f32 %v9228_v2, %v3837_v36  ;;  %v9230_v16 = vadd.f32 %v3756_v10, %v3349_v33  ;;  %4185 = vmatprep.mubr.bf16.mxu1 %v3883_v5  ;;  %v9388_v2 = vld [vmem:[#allocation11 + $0xa0] sm:$0xff]  }
 0x6bb   :  { %v3862_v3 = vadd.f32 %v9229_v9, %v3833_v28  ;;  %4186 = vmatmul.mubr.bf16.vlgmr.msra.gmra.mrb[44].mxu1 %v3882_v51  ;;  %v3874_v19 = vmax.f32 %v3858_v8, 0.0 }
 0x6bc   :  { %v3863_v17 = vadd.f32 %v9230_v16, %v3837_v36  ;;  %9126 = vmatpush3.bf16.msra.mxu1 %v9380_v6  ;;  %v3875_v22 = vmax.f32 %v3859_v12, 0.0  ;;  %v9384_v36 = vld [vmem:[#allocation11 + $0x90] sm:$0xff]   ;;  %v9389_v6 = vld [vmem:[#allocation11 + $0xe8] sm:$0xff]  }
 0x6bd   :  { %v3878_v20 = vmax.f32 %v3862_v3, 0.0  ;;  %9127 = vmatprep.subr.bf16.mxu1 %v9381_v11  ;;  %v9390_v16 = vld [vmem:[#allocation11 + $0xa8] sm:$0xff]  }
 0x6be   :  { %v3879_v24 = vmax.f32 %v3863_v17, 0.0  ;;  %v3793_v25 = vpop.f32.mrb[36].mxu0  ;;  %v9391_v17 = vld [vmem:[#allocation11 + $0xf0] sm:$0xff]  }
 0x6bf   :  { %v3852_v26 = vadd.f32 %v3841_v4, %v3793_v25  ;;  %v3795_v32 = vpop.f32.mrb[37].mxu0  ;;  %v3886_v33 = vpack.c.bf16 %v3878_v20, %v3874_v19  ;;  %v9392_v19 = vld [vmem:[#allocation11 + $0xb0] sm:$0xff]   ;;  %v9393_v20 = vld [vmem:[#allocation11 + $0xf8] sm:$0xff]  }
 0x6c0   :  { %v3853_v28 = vadd.f32 %v3845_v18, %v3795_v32  ;;  %9128 = vmatpush3.bf16.msra.mxu1 %v9382_v27  ;;  %v3797_v35 = vpop.f32.mrb[38].mxu0  ;;  %v3887_v37 = vpack.c.bf16 %v3879_v24, %v3875_v22  ;;  %v9394_v22 = vld [vmem:[#allocation11 + $0xb8] sm:$0xff]  }
 0x6c1   :  { %v3856_v39 = vadd.f32 %v3841_v4, %v3797_v35  ;;  %v3799_v41 = vpop.f32.mrb[39].mxu0  ;;  %9129 = vmatprep.subr.bf16.mxu1 %v9383_v21  ;;  %v3868_v44 = vmax.f32 %v3852_v26, 0.0  ;;  %v4321_v35 = vld [vmem:[#allocation7 + $0x18] sm:$0xff] }
 0x6c2   :  { %v3857_v42 = vadd.f32 %v3845_v18, %v3799_v41  ;;  %4193 = vmatprep.mubr.bf16.mxu1 %v3887_v37  ;;  %v3869_v46 = vmax.f32 %v3853_v28, 0.0  ;;  %v4322_v28 = vld [vmem:[#allocation7 + $0x20] sm:$0xff] }
 0x6c3   :  { %v3872_v45 = vmax.f32 %v3856_v39, 0.0  ;;  %4194 = vmatmul.mubr.bf16.gmra.mrb[48].mxu1 %v3886_v33  ;;  %v9432_v21 = vpop.eup %9431  ;;  %v4318_v33 = vld [vmem:[#allocation7] sm:$0xff] }
 0x6c4   :  { %v3873_v40 = vmax.f32 %v3857_v42, 0.0  ;;  %9130 = vmatpush3.bf16.msra.mxu1 %v9384_v36  ;;  %v4264_v24 = vadd.f32 1.0, %v9432_v21  ;;  %v8702_v37 = vcombine.high %v4318_v33, %v4322_v28  ;;  %v4325_v36 = vld [vmem:[#allocation7 + $0x38] sm:$0xff]  ;;  %v8701_v39 = vcombine.low %v4318_v33, %v4322_v28  ;;  %v4326_v42 = vld [vmem:[#allocation7 + $0x40] sm:$0xff] }
 0x6c5   :  { %v3884_v47 = vpack.c.bf16 %v3872_v45, %v3868_v44  ;;  %9131 = vmatprep.subr.bf16.mxu1 %v9385_v38  ;;  %v8707_v41 = vcombine.low %v4321_v35, %v4325_v36  ;;  %v8708_v38 = vcombine.high %v4321_v35, %v4325_v36  ;;  %v4329_v44 = vld [vmem:[#allocation7 + $0x58] sm:$0xff] }
 0x6c6   :  { %v3885_v57 = vpack.c.bf16 %v3873_v40, %v3869_v46  ;;  %v3803_v61 = vpop.f32.mrb[40].mxu0  ;;  %9433 = vrcp.f32 %v4264_v24  ;;  %v4333_v45 = vld [vmem:[#allocation7 + $0x78] sm:$0xff]  ;;  %v8709_v46 = vcombine.low %v4326_v42, %v4330_v43 }
 0x6c7   :  { %v3860_v62 = vadd.f32 %v3841_v4, %v3803_v61  ;;  %v3805_v51 = vpop.f32.mrb[41].mxu0  ;;  %4540 = vmatprep.subr.bf16.mxu0 %v8708_v38  ;;  %v8715_v40 = vcombine.low %v4329_v44, %v4333_v45 }
 0x6c8   :  { %v3861_v55 = vadd.f32 %v3845_v18, %v3805_v51  ;;  %9132 = vmatpush3.bf16.msra.mxu1 %v9386_v34  ;;  %v3807_v52 = vpop.f32.mrb[42].mxu0  ;;  %4234 = vmatprep.mubr.bf16.mxu1 %v3885_v57  ;;  %v8716_v34 = vcombine.high %v4329_v44, %v4333_v45 }
 0x6c9   :  { %v3864_v30 = vadd.f32 %v3841_v4, %v3807_v52  ;;  %v3809_v5 = vpop.f32.mrb[43].mxu0  ;;  %9133 = vmatprep.subr.bf16.mxu1 %v9387_v50  ;;  %v3876_v9 = vmax.f32 %v3860_v62, 0.0  ;;  %v4269_v4 = vld [vmem:[#allocation5 + $0x8] sm:$0xff]  ;;  %4541 = vmatpush1.bf16.msra.mxu0 %v8707_v41  ;;  %v4323_v50 = vld [vmem:[#allocation7 + $0x28] sm:$0xff] }
 0x6ca   :  { %v3865_v8 = vadd.f32 %v3845_v18, %v3809_v5  ;;  %v3877_v11 = vmax.f32 %v3861_v55, 0.0  ;;  %v4270_v18 = vpack.c.bf16 %v4269_v4, %v4269_v4  ;;  %4542 = vmatprep.subr.bf16.mxu0 %v8716_v34 }
 0x6cb   :  { %v3880_v10 = vmax.f32 %v3864_v30, 0.0 }
 0x6cc   :  { %v3881_v12 = vmax.f32 %v3865_v8, 0.0  ;;  %9134 = vmatpush3.bf16.msra.mxu1 %v9388_v2  ;;  %v4275_v25 = vsel %vm133_vm1, %v4270_v18, 0 }
 0x6cd   :  { %v3888_v3 = vpack.c.bf16 %v3880_v10, %v3876_v9  ;;  %9135 = vmatprep.subr.bf16.mxu1 %v9389_v6  ;;  %4543 = vmatpush1.bf16.msra.mxu0 %v8715_v40 }
 0x6ce   :  { %v3889_v27 = vpack.c.bf16 %v3881_v12, %v3877_v11  ;;  %v8666_v11 = vld [vmem:[%s10275_s9] ss:$0 sm:$0xff] }
 0x6d0   :  { %9136 = vmatpush3.bf16.msra.mxu1 %v9390_v16  ;;  %v9434_v26 = vpop.eup %9433 }
 0x6d1   :  { %9137 = vmatprep.subr.bf16.mxu1 %v9391_v17  ;;  %v4267_v32 = vpack.c.bf16 %v9434_v26, %v9434_v26 }
 0x6d4   :  { %9138 = vmatpush3.bf16.msra.mxu1 %v9392_v19 }
 0x6d5   :  { %9139 = vmatprep.subr.bf16.mxu1 %v9393_v20 }
 0x6d8   :  { %9140 = vmatpush3.bf16.msra.mxu1 %v9394_v22 }
 0x6d9   :  { %9217 = vmatprep.subr.bf16.mxu1 %v9614_v0 }
 0x6db   :  { %4235 = vmatmul.mubr.bf16.vlgmr.msra.gmra.mrb[52].mxu1 %v3884_v47  ;;  %v4319_v47 = vld [vmem:[#allocation7 + $0x8] sm:$0xff] }
 0x6dc   :  { %4242 = vmatprep.mubr.bf16.mxu1 %v3889_v27  ;;  %9218 = vmatpush3.bf16.msra.mxu1 %v4275_v25  ;;  %v8704_v49 = vcombine.high %v4319_v47, %v4323_v50  ;;  %v8703_v57 = vcombine.low %v4319_v47, %v4323_v50  ;;  %v4320_v47 = vld [vmem:[#allocation7 + $0x10] sm:$0xff] }
 0x6dd   :  { %4417 = vmatprep.subr.bf16.mxu1 %v8702_v37  ;;  %v4324_v50 = vld [vmem:[#allocation7 + $0x30] sm:$0xff] }
 0x6e3   :  { %4243 = vmatmul.mubr.bf16.gmra.mrb[56].mxu1 %v3888_v3 }
 0x6e4   :  { %9219 = vmatprep.mubr.msk.bf16.mxu1 %vm9615_vm0, %v9614_v0  ;;  %v8710_v0 = vcombine.high %v4326_v42, %v4330_v43  ;;  %v4327_v42 = vld [vmem:[#allocation7 + $0x48] sm:$0xff]  ;;  %vm10279_vm0 = vcmask 56320  }
 0x6e5   :  { %v4331_v43 = vld [vmem:[#allocation7 + $0x68] sm:$0xff]  ;;  %vm10280_vm1 = vmmov %vm10279_vm0 }
 0x6e6   :  { %v8712_v40 = vcombine.high %v4327_v42, %v4331_v43 }
 0x6eb   :  { %9220 = vmatmul.mubr.msk.bf16.vlgmr.msra.gmra.mrb[60].mxu1 %vm129_vm2, %v4267_v32  ;;  %vm10281_vm2 = vmmov %vm10279_vm0 }
 0x6ec   :  { %4449 = vmatprep.mubr.bf16.mxu1 %v9616_v31  ;;  %4418 = vmatpush1.bf16.msra.mxu1 %v8701_v39 }
 0x6ed   :  { %4419 = vmatprep.subr.bf16.mxu1 %v8710_v0 }
 0x6f0   :  { %4420 = vmatpush1.bf16.msra.mxu1 %v8709_v46 }
 0x6f1   :  { %4458 = vmatprep.subr.bf16.mxu1 %v8704_v49 }
 0x78e   :  { %v9113_v61 = vpop.f32.mrb[44].mxu1 }
 0x78f   :  { %v9114_v62 = vpop.f32.mrb[45].mxu1 }
 0x790   :  { %v9115_v51 = vadd.f32 %v9114_v62, %v9113_v61  ;;  %v9116_v55 = vpop.f32.mrb[46].mxu1  ;;  %v8711_v61 = vcombine.low %v4327_v42, %v4331_v43  ;;  %v8706_v62 = vcombine.high %v4320_v47, %v4324_v50 }
 0x791   :  { %v9117_v52 = vpop.f32.mrb[47].mxu1 }
 0x792   :  { %v9118_v2 = vadd.f32 %v9117_v52, %v9116_v55  ;;  %v4188_v3 = vadd.f32 %v9115_v51, %v8666_v11  ;;  %v4328_v51 = vld [vmem:[#allocation7 + $0x50] sm:$0xff]  ;;  %v8705_v52 = vcombine.low %v4320_v47, %v4324_v50 }
 0x793   :  { %v4332_v55 = vld [vmem:[#allocation7 + $0x70] sm:$0xff] }
 0x794   :  { %v4191_v20 = vadd.f32 %v9118_v2, %v8666_v11  ;;  %v8714_v2 = vcombine.high %v4328_v51, %v4332_v55 }
 0x796   :  { %v9119_v30 = vpop.f32.mrb[48].mxu1 }
 0x797   :  { %v9120_v5 = vpop.f32.mrb[49].mxu1 }
 0x798   :  { %v9121_v6 = vadd.f32 %v9120_v5, %v9119_v30  ;;  %v9122_v8 = vpop.f32.mrb[50].mxu1  ;;  %v8713_v30 = vcombine.low %v4328_v51, %v4332_v55  ;;  %v4639_v5 = vld [vmem:[#allocation8 + $0x20] sm:$0xff]  ;;  %v4680_v55 = vld [vmem:[#allocation8 + $0x168] sm:$0xff] }
 0x799   :  { %v9123_v9 = vpop.f32.mrb[51].mxu1 }
 0x79a   :  { %v9124_v10 = vadd.f32 %v9123_v9, %v9122_v8  ;;  %v4196_v32 = vadd.f32 %v9121_v6, %v8666_v11  ;;  %v4636_v6 = vld [vmem:[#allocation8 + $0x8] sm:$0xff] }
 0x79b   :  { %v4640_v9 = vld [vmem:[#allocation8 + $0x28] sm:$0xff] }
 0x79c   :  { %v4199_v37 = vadd.f32 %v9124_v10, %v8666_v11  ;;  %v8724_v11 = vcombine.low %v4636_v6, %v4640_v9 }
 0x7ae   :  { %v9141_v12 = vpop.f32.mrb[52].mxu1 }
 0x7af   :  { %v9142_v16 = vpop.f32.mrb[53].mxu1 }
 0x7b0   :  { %v9143_v17 = vadd.f32 %v9142_v16, %v9141_v12  ;;  %v9144_v27 = vpop.f32.mrb[54].mxu1  ;;  %v8725_v12 = vcombine.high %v4636_v6, %v4640_v9  ;;  %v4643_v16 = vld [vmem:[#allocation8 + $0x40] sm:$0xff]  ;;  %v4684_v6 = vld [vmem:[#allocation8 + $0x188] sm:$0xff] }
 0x7b1   :  { %v9145_v19 = vpop.f32.mrb[55].mxu1 }
 0x7b2   :  { %v4237_v4 = vadd.f32 %v9143_v17, %v4188_v3  ;;  %v9146_v21 = vadd.f32 %v9145_v19, %v9144_v27  ;;  %5060 = vmatprep.subr.bf16.mxu0 %v8725_v12  ;;  %v4647_v3 = vld [vmem:[#allocation8 + $0x60] sm:$0xff]  ;;  %v4644_v17 = vld [vmem:[#allocation8 + $0x48] sm:$0xff] }
 0x7b3   :  { %v8731_v27 = vcombine.high %v4643_v16, %v4647_v3  ;;  %v4648_v19 = vld [vmem:[#allocation8 + $0x68] sm:$0xff]  ;;  %v4695_v12 = vld [vmem:[#allocation8 + $0x1e0] sm:$0xff] }
 0x7b4   :  { %v4251_v22 = vmax.f32 %v4237_v4, 0.0  ;;  %v4240_v18 = vadd.f32 %v9146_v21, %v4191_v20  ;;  %v8730_v20 = vcombine.low %v4643_v16, %v4647_v3  ;;  %v8732_v4 = vcombine.low %v4644_v17, %v4648_v19 }
 0x7b5   :  { %v8733_v21 = vcombine.high %v4644_v17, %v4648_v19  ;;  %v4696_v19 = vld [vmem:[#allocation8 + $0x1e8] sm:$0xff] }
 0x7b6   :  { %4255 = vst [vmem:[#allocation13] sm:$0xff] %v4251_v22  ;;  %v4252_v24 = vmax.f32 %v4240_v18, 0.0  ;;  %v9147_v25 = vpop.f32.mrb[56].mxu1  ;;  %v4651_v22 = vld [vmem:[#allocation8 + $0x80] sm:$0xff] }
 0x7b7   :  { %v9148_v26 = vpop.f32.mrb[57].mxu1  ;;  %v4655_v18 = vld [vmem:[#allocation8 + $0xa0] sm:$0xff] }
 0x7b8   :  { %4256 = vst [vmem:[#allocation13 + $0x8] sm:$0xff] %v4252_v24  ;;  %v9149_v33 = vadd.f32 %v9148_v26, %v9147_v25  ;;  %v9150_v28 = vpop.f32.mrb[58].mxu1  ;;  %v4652_v24 = vld [vmem:[#allocation8 + $0x88] sm:$0xff]  ;;  %v8739_v25 = vcombine.high %v4651_v22, %v4655_v18 }
 0x7b9   :  { %v9151_v35 = vpop.f32.mrb[59].mxu1  ;;  %v4656_v26 = vld [vmem:[#allocation8 + $0xa8] sm:$0xff] }
 0x7ba   :  { %v4245_v36 = vadd.f32 %v9149_v33, %v4196_v32  ;;  %v9152_v39 = vadd.f32 %v9151_v35, %v9150_v28  ;;  %v8738_v32 = vcombine.low %v4651_v22, %v4655_v18  ;;  %v8740_v33 = vcombine.low %v4652_v24, %v4656_v26  ;;  %v4659_v35 = vld [vmem:[#allocation8 + $0xc0] sm:$0xff]  ;;  %v10081_v22 = vld [vmem:[#allocation8 + $0x18] sm:$0xff] }
 0x7bb   :  { %v8741_v28 = vcombine.high %v4652_v24, %v4656_v26  ;;  %v10083_v18 = vld [vmem:[#allocation8 + $0x38] sm:$0xff] }
 0x7bc   :  { %v4253_v41 = vmax.f32 %v4245_v36, 0.0  ;;  %v4248_v38 = vadd.f32 %v9152_v39, %v4199_v37  ;;  %v4663_v37 = vld [vmem:[#allocation8 + $0xe0] sm:$0xff]  ;;  %v4660_v36 = vld [vmem:[#allocation8 + $0xc8] sm:$0xff]  ;;  %v8728_v26 = vcombine.low %v10081_v22, %v10083_v18 }
 0x7bd   :  { %v8747_v39 = vcombine.high %v4659_v35, %v4663_v37 }
 0x7be   :  { %4257 = vst [vmem:[#allocation13 + $0x10] sm:$0xff] %v4253_v41  ;;  %v4254_v44 = vmax.f32 %v4248_v38, 0.0  ;;  %v4311_v0 = vpop.f32.mrb[60].mxu1  ;;  %v4664_v41 = vld [vmem:[#allocation8 + $0xe8] sm:$0xff]  ;;  %v8746_v38 = vcombine.low %v4659_v35, %v4663_v37 }
 0x7bf   :  { %v4317_v45 = vpack.c.bf16 %v4311_v0, %v4311_v0  ;;  %v9221_v46 = vpop.f32.mrb[61].mxu1  ;;  %v8748_v42 = vcombine.low %v4660_v36, %v4664_v41  ;;  %v8749_v43 = vcombine.high %v4660_v36, %v4664_v41  ;;  %v4671_v0 = vld [vmem:[#allocation8 + $0x120] sm:$0xff] }
 0x7c0   :  { %4258 = vst [vmem:[#allocation13 + $0x18] sm:$0xff] %v4254_v44  ;;  %v4314_v34 = vpop.f32.mrb[62].mxu1  ;;  %v4667_v44 = vld [vmem:[#allocation8 + $0x100] sm:$0xff] }
 0x7c1   :  { %v9222_v49 = vpop.f32.mrb[63].mxu1  ;;  %8717 = vmatmul.mubr.msk.bf16.vlgmr.msra.gmra.mrb[64].mxu1 %vm274_vm3, %v4317_v45  ;;  %8720 = vmatmul.mubr.msk.bf16.vlgmr.msra.gmra.mrb[52].mxu0 %vm274_vm3, %v4317_v45  ;;  %v8755_v46 = vcombine.high %v4667_v44, %v4671_v0  ;;  %v8754_v34 = vcombine.low %v4667_v44, %v4671_v0 }
 0x7c2   :  { %4459 = vmatpush1.bf16.msra.mxu1 %v8703_v57  ;;  %4490 = vmatprep.mubr.bf16.mxu1 %v9616_v31  ;;  %v4635_v57 = vld [vmem:[#allocation8] sm:$0xff] }
 0x7c3   :  { %4460 = vmatprep.subr.bf16.mxu1 %v8712_v40  ;;  %5092 = vmatprep.mubr.bf16.mxu0 %v9616_v31  ;;  %v8723_v8 = vcombine.high %v4635_v57, %v4639_v5  ;;  %v8722_v10 = vcombine.low %v4635_v57, %v4639_v5  ;;  %v4672_v40 = vld [vmem:[#allocation8 + $0x128] sm:$0xff]  ;;  %v4675_v49 = vld [vmem:[#allocation8 + $0x140] sm:$0xff] }
 0x7c4   :  { %5061 = vmatpush1.bf16.msra.mxu0 %v8724_v11  ;;  %v4683_v57 = vld [vmem:[#allocation8 + $0x180] sm:$0xff] }
 0x7c5   :  { %5062 = vmatprep.subr.bf16.mxu0 %v8733_v21  ;;  %v4687_v5 = vld [vmem:[#allocation8 + $0x1a0] sm:$0xff]  ;;  %v10079_v21 = vld [vmem:[#allocation8 + $0x30] sm:$0xff] }
 0x7c6   :  { %4461 = vmatpush1.bf16.msra.mxu1 %v8711_v61  ;;  %v4679_v61 = vld [vmem:[#allocation8 + $0x160] sm:$0xff]  ;;  %v8771_v9 = vcombine.high %v4683_v57, %v4687_v5 }
 0x7c7   :  { %4499 = vmatprep.subr.bf16.mxu1 %v8706_v62  ;;  %v4676_v62 = vld [vmem:[#allocation8 + $0x148] sm:$0xff]  ;;  %v8763_v51 = vcombine.high %v4675_v49, %v4679_v61  ;;  %v4691_v11 = vld [vmem:[#allocation8 + $0x1c0] sm:$0xff] }
 0x7c8   :  { %5063 = vmatpush1.bf16.msra.mxu0 %v8732_v4  ;;  %v8779_v17 = vcombine.high %v4691_v11, %v4695_v12  ;;  %v8778_v24 = vcombine.low %v4691_v11, %v4695_v12  ;;  %v8721_v11 = vld [vmem:[%s10269_s3] ss:$0 sm:$0xff] }
 0x7c9   :  { %8718 = vmatmul.mubr.msk.bf16.vlgmr.msra.gmra.mrb[68].mxu1 %vm274_vm3, %v4317_v45  ;;  %5064 = vmatprep.subr.bf16.mxu0 %v8741_v28  ;;  %v8729_v28 = vcombine.high %v10081_v22, %v10083_v18 }
 0x7ca   :  { %4500 = vmatpush1.bf16.msra.mxu1 %v8705_v52  ;;  %4531 = vmatprep.mubr.bf16.mxu1 %v9616_v31  ;;  %v8762_v52 = vcombine.low %v4675_v49, %v4679_v61 }
 0x7cb   :  { %4501 = vmatprep.subr.bf16.mxu1 %v8714_v2  ;;  %v8764_v2 = vcombine.low %v4676_v62, %v4680_v55 }
 0x7cc   :  { %5065 = vmatpush1.bf16.msra.mxu0 %v8740_v33 }
 0x7cd   :  { %5066 = vmatprep.subr.bf16.mxu0 %v8749_v43 }
 0x7ce   :  { %4502 = vmatpush1.bf16.msra.mxu1 %v8713_v30  ;;  %v8765_v30 = vcombine.high %v4676_v62, %v4680_v55 }
 0x7cf   :  { %5019 = vmatprep.subr.bf16.mxu1 %v8723_v8  ;;  %v8770_v8 = vcombine.low %v4683_v57, %v4687_v5 }
 0x7d0   :  { %5067 = vmatpush1.bf16.msra.mxu0 %v8748_v42 }
 0x7d1   :  { %8719 = vmatmul.mubr.msk.bf16.vlgmr.msra.gmra.mrb[72].mxu1 %vm274_vm3, %v4317_v45  ;;  %v4668_v45 = vld [vmem:[#allocation8 + $0x108] sm:$0xff]  ;;  %vm10282_vm3 = vmmov %vm10279_vm0 }
 0x7d2   :  { %5051 = vmatprep.mubr.bf16.mxu1 %v9616_v31  ;;  %5020 = vmatpush1.bf16.msra.mxu1 %v8722_v10  ;;  %v8756_v47 = vcombine.low %v4668_v45, %v4672_v40  ;;  %v8757_v50 = vcombine.high %v4668_v45, %v4672_v40  ;;  %v4688_v10 = vld [vmem:[#allocation8 + $0x1a8] sm:$0xff] }
 0x7d3   :  { %5021 = vmatprep.subr.bf16.mxu1 %v8731_v27  ;;  %v8772_v16 = vcombine.low %v4684_v6, %v4688_v10  ;;  %v8773_v3 = vcombine.high %v4684_v6, %v4688_v10  ;;  %v4692_v27 = vld [vmem:[#allocation8 + $0x1c8] sm:$0xff] }
 0x7d4   :  { %5068 = vmatprep.subr.bf16.mxu0 %v8757_v50  ;;  %v8781_v4 = vcombine.high %v4692_v27, %v4696_v19 }
 0x7d5   :  { %5069 = vmatpush1.bf16.msra.mxu0 %v8756_v47 }
 0x7d6   :  { %5022 = vmatpush1.bf16.msra.mxu1 %v8730_v20  ;;  %5070 = vmatprep.subr.bf16.mxu0 %v8765_v30  ;;  %v10077_v20 = vld [vmem:[#allocation8 + $0x10] sm:$0xff] }
 0x7d7   :  { %5023 = vmatprep.subr.bf16.mxu1 %v8739_v25  ;;  %v8726_v25 = vcombine.low %v10077_v20, %v10079_v21  ;;  %v8727_v33 = vcombine.high %v10077_v20, %v10079_v21  ;;  %v4649_v20 = vld [vmem:[#allocation8 + $0x70] sm:$0xff]  ;;  %v4650_v21 = vld [vmem:[#allocation8 + $0x78] sm:$0xff] }
 0x7d9   :  { %5071 = vmatpush1.bf16.msra.mxu0 %v8764_v2 }
 0x7da   :  { %5024 = vmatpush1.bf16.msra.mxu1 %v8738_v32  ;;  %5072 = vmatprep.subr.bf16.mxu0 %v8773_v3  ;;  %v8780_v32 = vcombine.low %v4692_v27, %v4696_v19  ;;  %v4645_v19 = vld [vmem:[#allocation8 + $0x50] sm:$0xff] }
 0x7db   :  { %5025 = vmatprep.subr.bf16.mxu1 %v8747_v39 }
 0x7dd   :  { %5073 = vmatpush1.bf16.msra.mxu0 %v8772_v16 }
 0x7de   :  { %5026 = vmatpush1.bf16.msra.mxu1 %v8746_v38  ;;  %5074 = vmatprep.subr.bf16.mxu0 %v8781_v4  ;;  %v4646_v4 = vld [vmem:[#allocation8 + $0x58] sm:$0xff] }
 0x7df   :  { %5027 = vmatprep.subr.bf16.mxu1 %v8755_v46 }
 0x7e1   :  { %5075 = vmatpush1.bf16.msra.mxu0 %v8780_v32  ;;  %v8737_v32 = vcombine.high %v4646_v4, %v4650_v21 }
 0x7e2   :  { %5028 = vmatpush1.bf16.msra.mxu1 %v8754_v34  ;;  %5142 = vmatprep.subr.bf16.mxu0 %v8729_v28  ;;  %v4657_v28 = vld [vmem:[#allocation8 + $0xb0] sm:$0xff] }
 0x7e3   :  { %5029 = vmatprep.subr.bf16.mxu1 %v8763_v51 }
 0x7e6   :  { %5030 = vmatpush1.bf16.msra.mxu1 %v8762_v52 }
 0x7e7   :  { %5031 = vmatprep.subr.bf16.mxu1 %v8771_v9 }
 0x7ea   :  { %5032 = vmatpush1.bf16.msra.mxu1 %v8770_v8 }
 0x7eb   :  { %5033 = vmatprep.subr.bf16.mxu1 %v8779_v17 }
 0x7ee   :  { %5034 = vmatpush1.bf16.msra.mxu1 %v8778_v24  ;;  %v8735_v24 = vcombine.high %v4645_v19, %v4649_v20 }
 0x7ef   :  { %5101 = vmatprep.subr.bf16.mxu1 %v8727_v33  ;;  %v4653_v33 = vld [vmem:[#allocation8 + $0x90] sm:$0xff] }
 0x894   :  { %v4451_v35 = vpop.f32.mrb[64].mxu1  ;;  %v4574_v37 = vpop.f32.mrb[52].mxu0 }
 0x895   :  { %v4584_v36 = vrot.slane %v4451_v35, %v9790_v60  ;;  %v4453_v39 = vpop.f32.mrb[65].mxu1  ;;  %v4576_v41 = vpop.f32.mrb[53].mxu0  ;;  %v4614_v5 = vrot.slane %v4574_v37, %v9790_v60  ;;  %v4654_v35 = vld [vmem:[#allocation8 + $0x98] sm:$0xff] }
 0x896   :  { %v4589_v38 = vrot.slane %v4453_v39, %v9790_v60  ;;  %v4455_v42 = vpop.f32.mrb[66].mxu1  ;;  %v4578_v43 = vpop.f32.mrb[54].mxu0  ;;  %v4619_v9 = vrot.slane %v4576_v41, %v9790_v60  ;;  %v4658_v37 = vld [vmem:[#allocation8 + $0xb8] sm:$0xff]  ;;  %v8736_v39 = vcombine.low %v4646_v4, %v4650_v21  ;;  %v8743_v41 = vcombine.high %v4653_v33, %v4657_v28 }
 0x897   :  { %v4585_v44 = vsel %vm444_vm4, %v4584_v36, 0.0  ;;  %v4456_v0 = vpop.f32.mrb[67].mxu1  ;;  %v4579_v45 = vpop.f32.mrb[55].mxu0  ;;  %v8734_v36 = vcombine.low %v4645_v19, %v4649_v20  ;;  %v4661_v42 = vld [vmem:[#allocation8 + $0xd0] sm:$0xff]  ;;  %v4694_v4 = vld [vmem:[#allocation8 + $0x1d8] sm:$0xff]  ;;  %vm10283_vm4 = vcmask 1046528  }
 0x898   :  { %v4590_v46 = vsel %vm452_vm5, %v4589_v38, %v4585_v44  ;;  %v8745_v38 = vcombine.high %v4654_v35, %v4658_v37  ;;  %v4665_v43 = vld [vmem:[#allocation8 + $0xf0] sm:$0xff]  ;;  %v4662_v44 = vld [vmem:[#allocation8 + $0xd8] sm:$0xff]  ;;  %v8742_v45 = vcombine.low %v4653_v33, %v4657_v28  ;;  %vm10284_vm5 = vmmov %vm10283_vm4 }
 0x899   :  { %v4666_v0 = vld [vmem:[#allocation8 + $0xf8] sm:$0xff]  ;;  %v4693_v19 = vld [vmem:[#allocation8 + $0x1d0] sm:$0xff] }
 0x89a   :  { %v4697_v20 = vld [vmem:[#allocation8 + $0x1f0] sm:$0xff]  ;;  %v4698_v21 = vld [vmem:[#allocation8 + $0x1f8] sm:$0xff] }
 0x89b   :  { %v8785_v33 = vcombine.high %v4694_v4, %v4698_v21  ;;  %v8782_v28 = vcombine.low %v4693_v19, %v4697_v20 }
 0x89c   :  { %v4492_v40 = vpop.f32.mrb[68].mxu1 }
 0x89d   :  { %v4594_v34 = vrot.slane %v4492_v40, %v9790_v60  ;;  %v4494_v47 = vpop.f32.mrb[69].mxu1  ;;  %v4669_v40 = vld [vmem:[#allocation8 + $0x110] sm:$0xff] }
 0x89e   :  { %v4599_v50 = vrot.slane %v4494_v47, %v9790_v60  ;;  %v4496_v49 = vpop.f32.mrb[70].mxu1  ;;  %v4670_v47 = vld [vmem:[#allocation8 + $0x118] sm:$0xff] }
 0x89f   :  { %v4595_v61 = vsel %vm460_vm6, %v4594_v34, %v4590_v46  ;;  %v4497_v62 = vpop.f32.mrb[71].mxu1  ;;  %v8744_v46 = vcombine.low %v4654_v35, %v4658_v37  ;;  %v4673_v34 = vld [vmem:[#allocation8 + $0x130] sm:$0xff]  ;;  %v8750_v49 = vcombine.low %v4661_v42, %v4665_v43  ;;  %v8784_v35 = vcombine.low %v4694_v4, %v4698_v21  ;;  %v5435_v37 = vld [vmem:[#allocation10] sm:$0xff] }
 0x8a0   :  { %v4600_v51 = vsel %vm468_vm7, %v4599_v50, %v4595_v61  ;;  %v4674_v50 = vld [vmem:[#allocation8 + $0x138] sm:$0xff]  ;;  %v8752_v61 = vcombine.low %v4662_v44, %v4666_v0  ;;  %v8759_v62 = vcombine.high %v4669_v40, %v4673_v34  ;;  %v5595_v4 = vld [vmem:[#allocation10 + $0x500] sm:$0xff] }
 0x8a1   :  { %v5603_v21 = vld [vmem:[#allocation10 + $0x540] sm:$0xff] }
 0x8a4   :  { %v4533_v55 = vpop.f32.mrb[72].mxu1 }
 0x8a5   :  { %v4604_v52 = vrot.slane %v4533_v55, %v9790_v60  ;;  %v4535_v2 = vpop.f32.mrb[73].mxu1  ;;  %v4677_v55 = vld [vmem:[#allocation8 + $0x150] sm:$0xff] }
 0x8a6   :  { %v4609_v30 = vrot.slane %v4535_v2, %v9790_v60  ;;  %v4537_v57 = vpop.f32.mrb[74].mxu1  ;;  %v4678_v2 = vld [vmem:[#allocation8 + $0x158] sm:$0xff] }
 0x8a7   :  { %v4605_v6 = vsel %vm476_vm8, %v4604_v52, %v4600_v51  ;;  %v4538_v8 = vpop.f32.mrb[75].mxu1  ;;  %v8761_v51 = vcombine.high %v4670_v47, %v4674_v50  ;;  %v4681_v52 = vld [vmem:[#allocation8 + $0x170] sm:$0xff]  ;;  %v8758_v57 = vcombine.low %v4669_v40, %v4673_v34 }
 0x8a8   :  { %v4610_v10 = vsel %vm484_vm9, %v4609_v30, %v4605_v6  ;;  %v4682_v30 = vld [vmem:[#allocation8 + $0x178] sm:$0xff]  ;;  %v8767_v6 = vcombine.high %v4677_v55, %v4681_v52 }
 0x8a9   :  { %v4615_v12 = vsel %vm492_vm10, %v4614_v5, %v4610_v10  ;;  %v8760_v5 = vcombine.low %v4670_v47, %v4674_v50  ;;  %v8769_v8 = vcombine.high %v4678_v2, %v4682_v30  ;;  %v4689_v10 = vld [vmem:[#allocation8 + $0x1b0] sm:$0xff]  ;;  %v5499_v47 = vld [vmem:[#allocation10 + $0x200] sm:$0xff] }
 0x8aa   :  { %v4620_v16 = vsel %vm500_vm11, %v4619_v9, %v4615_v12  ;;  %v4685_v9 = vld [vmem:[#allocation8 + $0x190] sm:$0xff]  ;;  %v4690_v12 = vld [vmem:[#allocation8 + $0x1b8] sm:$0xff]  ;;  %v5507_v50 = vld [vmem:[#allocation10 + $0x240] sm:$0xff] }
 0x8ab   :  { %v4628_v3 = vadd.f32 %v8721_v11, %v4620_v16  ;;  %v4686_v11 = vld [vmem:[#allocation8 + $0x198] sm:$0xff]  ;;  %v8766_v16 = vcombine.low %v4677_v55, %v4681_v52 }
 0x8ad   :  { %v4629_v17 = vmax.f32 %v4628_v3, 0.0  ;;  %v8768_v3 = vcombine.low %v4678_v2, %v4682_v30  ;;  %v5531_v2 = vld [vmem:[#allocation10 + $0x300] sm:$0xff] }
 0x8ae   :  { %v5539_v30 = vld [vmem:[#allocation10 + $0x340] sm:$0xff] }
 0x8af   :  { %v4631_v27 = vrot.slane %v4629_v17, 1 }
 0x8b1   :  { %v4633_v22 = vmax.f32 %v4629_v17, %v4631_v27  ;;  %v8775_v17 = vcombine.high %v4685_v9, %v4689_v10  ;;  %v8777_v27 = vcombine.high %v4686_v11, %v4690_v12 }
 0x8b3   :  { %v10120_v18 = vpack.c.bf16 %v4633_v22, %v4633_v22  ;;  %v8774_v22 = vcombine.low %v4685_v9, %v4689_v10 }
 0x8b5   :  { %5052 = vmatmul.mubr.bf16.vlgmr.msra.gmra.mrb[76].mxu1 %v10120_v18  ;;  %5093 = vmatmul.mubr.bf16.vlgmr.msra.gmra.mrb[56].mxu0 %v10120_v18 }
 0x8b6   :  { %5102 = vmatpush1.bf16.msra.mxu1 %v8726_v25  ;;  %5143 = vmatpush1.bf16.msra.mxu0 %v8728_v26  ;;  %v8751_v25 = vcombine.high %v4661_v42, %v4665_v43  ;;  %v8753_v26 = vcombine.high %v4662_v44, %v4666_v0  ;;  %v5459_v42 = vld [vmem:[#allocation10 + $0xc0] sm:$0xff] }
 0x8b7   :  { %5103 = vmatprep.subr.bf16.mxu1 %v8735_v24  ;;  %5144 = vmatprep.subr.bf16.mxu0 %v8737_v32  ;;  %v8776_v24 = vcombine.low %v4686_v11, %v4690_v12  ;;  %v8783_v32 = vcombine.high %v4693_v19, %v4697_v20  ;;  %v5467_v0 = vld [vmem:[#allocation10 + $0x100] sm:$0xff] }
 0x8b8   :  { %5133 = vmatprep.mubr.bf16.mxu1 %v9616_v31  ;;  %5174 = vmatprep.mubr.bf16.mxu0 %v9616_v31  ;;  %v5563_v11 = vld [vmem:[#allocation10 + $0x400] sm:$0xff] }
 0x8b9   :  { %v5571_v12 = vld [vmem:[#allocation10 + $0x440] sm:$0xff] }
 0x8ba   :  { %5104 = vmatpush1.bf16.msra.mxu1 %v8734_v36  ;;  %5145 = vmatpush1.bf16.msra.mxu0 %v8736_v39  ;;  %v5443_v36 = vld [vmem:[#allocation10 + $0x40] sm:$0xff] }
 0x8bb   :  { %5105 = vmatprep.subr.bf16.mxu1 %v8743_v41  ;;  %5146 = vmatprep.subr.bf16.mxu0 %v8745_v38  ;;  %v8790_v39 = vcombine.low %v5435_v37, %v5443_v36  ;;  %v8791_v41 = vcombine.high %v5435_v37, %v5443_v36  ;;  %v5451_v38 = vld [vmem:[#allocation10 + $0x80] sm:$0xff] }
 0x8bc   :  { %v8807_v43 = vcombine.high %v5451_v38, %v5459_v42  ;;  %v8806_v44 = vcombine.low %v5451_v38, %v5459_v42  ;;  %v5627_v37 = vld [vmem:[#allocation10 + $0x600] sm:$0xff] }
 0x8bd   :  { %v5635_v36 = vld [vmem:[#allocation10 + $0x640] sm:$0xff] }
 0x8be   :  { %5106 = vmatpush1.bf16.msra.mxu1 %v8742_v45  ;;  %5147 = vmatpush1.bf16.msra.mxu0 %v8744_v46  ;;  %v5475_v45 = vld [vmem:[#allocation10 + $0x140] sm:$0xff] }
 0x8bf   :  { %5107 = vmatprep.subr.bf16.mxu1 %v8751_v25  ;;  %5148 = vmatprep.subr.bf16.mxu0 %v8753_v26  ;;  %v8823_v46 = vcombine.high %v5467_v0, %v5475_v45  ;;  %v8822_v25 = vcombine.low %v5467_v0, %v5475_v45  ;;  %v5491_v26 = vld [vmem:[#allocation10 + $0x1c0] sm:$0xff] }
 0x8c2   :  { %5108 = vmatpush1.bf16.msra.mxu1 %v8750_v49  ;;  %5149 = vmatpush1.bf16.msra.mxu0 %v8752_v61  ;;  %v8855_v49 = vcombine.high %v5499_v47, %v5507_v50  ;;  %v8854_v61 = vcombine.low %v5499_v47, %v5507_v50 }
 0x8c3   :  { %5109 = vmatprep.subr.bf16.mxu1 %v8759_v62  ;;  %5150 = vmatprep.subr.bf16.mxu0 %v8761_v51  ;;  %v5515_v62 = vld [vmem:[#allocation10 + $0x280] sm:$0xff] }
 0x8c4   :  { %v5523_v51 = vld [vmem:[#allocation10 + $0x2c0] sm:$0xff] }
 0x8c5   :  { %v8871_v55 = vcombine.high %v5515_v62, %v5523_v51  ;;  %v8870_v52 = vcombine.low %v5515_v62, %v5523_v51 }
 0x8c6   :  { %5110 = vmatpush1.bf16.msra.mxu1 %v8758_v57  ;;  %5151 = vmatpush1.bf16.msra.mxu0 %v8760_v5  ;;  %v8887_v57 = vcombine.high %v5531_v2, %v5539_v30  ;;  %v8886_v5 = vcombine.low %v5531_v2, %v5539_v30 }
 0x8c7   :  { %5111 = vmatprep.subr.bf16.mxu1 %v8767_v6  ;;  %5152 = vmatprep.subr.bf16.mxu0 %v8769_v8  ;;  %v5547_v6 = vld [vmem:[#allocation10 + $0x380] sm:$0xff] }
 0x8c8   :  { %v5555_v8 = vld [vmem:[#allocation10 + $0x3c0] sm:$0xff] }
 0x8c9   :  { %v8903_v9 = vcombine.high %v5547_v6, %v5555_v8  ;;  %v8902_v10 = vcombine.low %v5547_v6, %v5555_v8 }
 0x8ca   :  { %5112 = vmatpush1.bf16.msra.mxu1 %v8766_v16  ;;  %5153 = vmatpush1.bf16.msra.mxu0 %v8768_v3  ;;  %v8919_v16 = vcombine.high %v5563_v11, %v5571_v12  ;;  %v8918_v3 = vcombine.low %v5563_v11, %v5571_v12 }
 0x8cb   :  { %5113 = vmatprep.subr.bf16.mxu1 %v8775_v17  ;;  %5154 = vmatprep.subr.bf16.mxu0 %v8777_v27  ;;  %v5579_v17 = vld [vmem:[#allocation10 + $0x480] sm:$0xff] }
 0x8cc   :  { %v5587_v27 = vld [vmem:[#allocation10 + $0x4c0] sm:$0xff] }
 0x8cd   :  { %v8935_v19 = vcombine.high %v5579_v17, %v5587_v27  ;;  %v8934_v20 = vcombine.low %v5579_v17, %v5587_v27 }
 0x8ce   :  { %5114 = vmatpush1.bf16.msra.mxu1 %v8774_v22  ;;  %5155 = vmatpush1.bf16.msra.mxu0 %v8776_v24  ;;  %v8951_v22 = vcombine.high %v5595_v4, %v5603_v21  ;;  %v8950_v24 = vcombine.low %v5595_v4, %v5603_v21  ;;  %v5460_v4 = vld [vmem:[#allocation10 + $0xc8] sm:$0xff] }
 0x8cf   :  { %5115 = vmatprep.subr.bf16.mxu1 %v8783_v32  ;;  %5156 = vmatprep.subr.bf16.mxu0 %v8785_v33  ;;  %v5611_v32 = vld [vmem:[#allocation10 + $0x580] sm:$0xff] }
 0x8d0   :  { %v5619_v33 = vld [vmem:[#allocation10 + $0x5c0] sm:$0xff] }
 0x8d2   :  { %5116 = vmatpush1.bf16.msra.mxu1 %v8782_v28  ;;  %5157 = vmatpush1.bf16.msra.mxu0 %v8784_v35  ;;  %v8967_v28 = vcombine.high %v5611_v32, %v5619_v33  ;;  %v8966_v35 = vcombine.low %v5611_v32, %v5619_v33  ;;  %v5476_v32 = vld [vmem:[#allocation10 + $0x148] sm:$0xff] }
 0x8d3   :  { %6971 = vmatprep.subr.bf16.mxu0 %v8791_v41  ;;  %v8982_v41 = vcombine.low %v5627_v37, %v5635_v36 }
 0x8d5   :  { %5134 = vmatmul.mubr.bf16.vlgmr.msra.gmra.mrb[80].mxu1 %v10120_v18  ;;  %5175 = vmatmul.mubr.bf16.vlgmr.msra.gmra.mrb[60].mxu0 %v10120_v18  ;;  %v5483_v18 = vld [vmem:[#allocation10 + $0x180] sm:$0xff] }
 0x8d6   :  { %5225 = vmatprep.mubr.bf16.mxu1 %v9616_v31  ;;  %6972 = vmatpush1.bf16.msra.mxu0 %v8790_v39  ;;  %v8839_v40 = vcombine.high %v5483_v18, %v5491_v26  ;;  %v8838_v34 = vcombine.low %v5483_v18, %v5491_v26  ;;  %v8983_v39 = vcombine.high %v5627_v37, %v5635_v36 }
 0x8d7   :  { %6973 = vmatprep.subr.bf16.mxu0 %v8807_v43 }
 0x8da   :  { %6974 = vmatpush1.bf16.msra.mxu0 %v8806_v44 }
 0x8db   :  { %6975 = vmatprep.subr.bf16.mxu0 %v8823_v46 }
 0x8de   :  { %6976 = vmatpush1.bf16.msra.mxu0 %v8822_v25 }
 0x8df   :  { %6977 = vmatprep.subr.bf16.mxu0 %v8839_v40 }
 0x8e2   :  { %6978 = vmatpush1.bf16.msra.mxu0 %v8838_v34 }
 0x8e3   :  { %6979 = vmatprep.subr.bf16.mxu0 %v8855_v49 }
 0x8e6   :  { %6980 = vmatpush1.bf16.msra.mxu0 %v8854_v61 }
 0x8e7   :  { %6981 = vmatprep.subr.bf16.mxu0 %v8871_v55 }
 0x8ea   :  { %6982 = vmatpush1.bf16.msra.mxu0 %v8870_v52 }
 0x8eb   :  { %6983 = vmatprep.subr.bf16.mxu0 %v8887_v57 }
 0x8ee   :  { %6984 = vmatpush1.bf16.msra.mxu0 %v8886_v5 }
 0x8ef   :  { %6985 = vmatprep.subr.bf16.mxu0 %v8903_v9 }
 0x8f2   :  { %6986 = vmatpush1.bf16.msra.mxu0 %v8902_v10 }
 0x8f3   :  { %6987 = vmatprep.subr.bf16.mxu0 %v8919_v16  ;;  %v5436_v16 = vld [vmem:[#allocation10 + $0x8] sm:$0xff] }
 0x8f6   :  { %6988 = vmatpush1.bf16.msra.mxu0 %v8918_v3  ;;  %v5444_v3 = vld [vmem:[#allocation10 + $0x48] sm:$0xff] }
 0x8f7   :  { %6989 = vmatprep.subr.bf16.mxu0 %v8935_v19  ;;  %v8793_v27 = vcombine.high %v5436_v16, %v5444_v3  ;;  %v8792_v21 = vcombine.low %v5436_v16, %v5444_v3  ;;  %v5628_v16 = vld [vmem:[#allocation10 + $0x608] sm:$0xff] }
 0x8f8   :  { %v5636_v3 = vld [vmem:[#allocation10 + $0x648] sm:$0xff] }
 0x8fa   :  { %6990 = vmatpush1.bf16.msra.mxu0 %v8934_v20  ;;  %v5452_v20 = vld [vmem:[#allocation10 + $0x88] sm:$0xff] }
 0x8fb   :  { %6991 = vmatprep.subr.bf16.mxu0 %v8951_v22  ;;  %v8809_v22 = vcombine.high %v5452_v20, %v5460_v4  ;;  %v8808_v33 = vcombine.low %v5452_v20, %v5460_v4  ;;  %v5643_v20 = vld [vmem:[#allocation10 + $0x680] sm:$0xff] }
 0x8fc   :  { %v5651_v4 = vld [vmem:[#allocation10 + $0x6c0] sm:$0xff] }
 0x8fe   :  { %6992 = vmatpush1.bf16.msra.mxu0 %v8950_v24  ;;  %v5468_v24 = vld [vmem:[#allocation10 + $0x108] sm:$0xff] }
 0x8ff   :  { %6993 = vmatprep.subr.bf16.mxu0 %v8967_v28  ;;  %v5484_v28 = vld [vmem:[#allocation10 + $0x188] sm:$0xff]  ;;  %v8824_v37 = vcombine.low %v5468_v24, %v5476_v32 }
 0x902   :  { %6994 = vmatpush1.bf16.msra.mxu0 %v8966_v35  ;;  %v5492_v35 = vld [vmem:[#allocation10 + $0x1c8] sm:$0xff] }
 0x903   :  { %6995 = vmatprep.subr.bf16.mxu0 %v8983_v39  ;;  %v8841_v36 = vcombine.high %v5484_v28, %v5492_v35  ;;  %v5500_v39 = vld [vmem:[#allocation10 + $0x208] sm:$0xff] }
 0x906   :  { %6996 = vmatpush1.bf16.msra.mxu0 %v8982_v41  ;;  %v5508_v41 = vld [vmem:[#allocation10 + $0x248] sm:$0xff] }
 0x988   :  { %v5053_v38 = vpop.f32.mrb[76].mxu1  ;;  %v5094_v42 = vpop.f32.mrb[56].mxu0 }
 0x989   :  { %v5185_v43 = vpack.c.bf16 %v5094_v42, %v5094_v42  ;;  %v5055_v44 = vpop.f32.mrb[77].mxu1  ;;  %v5096_v0 = vpop.f32.mrb[57].mxu0  ;;  %v5183_v47 = vpack.c.bf16 %v5053_v38, %v5053_v38  ;;  %v8840_v38 = vcombine.low %v5484_v28, %v5492_v35  ;;  %v8857_v42 = vcombine.high %v5500_v39, %v5508_v41  ;;  %v5659_v28 = vld [vmem:[#allocation10 + $0x700] sm:$0xff] }
 0x98a   :  { %v5184_v45 = vpack.c.bf16 %v5055_v44, %v5055_v44  ;;  %v5186_v46 = vpack.c.bf16 %v5096_v0, %v5096_v0  ;;  %v5057_v25 = vpop.f32.mrb[78].mxu1  ;;  %v5098_v18 = vpop.f32.mrb[58].mxu0  ;;  %v5524_v44 = vld [vmem:[#allocation10 + $0x2c8] sm:$0xff]  ;;  %v8856_v0 = vcombine.low %v5500_v39, %v5508_v41  ;;  %v5667_v35 = vld [vmem:[#allocation10 + $0x740] sm:$0xff] }
 0x98b   :  { %v5058_v26 = vpop.f32.mrb[79].mxu1  ;;  %v5099_v40 = vpop.f32.mrb[59].mxu0  ;;  %v5188_v50 = vand.u32 %v5185_v43, %v9857_v58  ;;  %v5237_v61 = vand.u32 %v5183_v47, %v9857_v58  ;;  %v5516_v43 = vld [vmem:[#allocation10 + $0x288] sm:$0xff]  ;;  %v9014_v41 = vcombine.low %v5659_v28, %v5667_v35 }
 0x98c   :  { %v5191_v34 = vand.u32 %v5186_v46, %v9857_v58  ;;  %v5240_v49 = vand.u32 %v5184_v45, %v9857_v58  ;;  %v8873_v45 = vcombine.high %v5516_v43, %v5524_v44  ;;  %v5532_v46 = vld [vmem:[#allocation10 + $0x308] sm:$0xff]  ;;  %v8872_v18 = vcombine.low %v5516_v43, %v5524_v44  ;;  %v5675_v43 = vld [vmem:[#allocation10 + $0x780] sm:$0xff] }
 0x98d   :  { %v5540_v25 = vld [vmem:[#allocation10 + $0x348] sm:$0xff]  ;;  %v5683_v44 = vld [vmem:[#allocation10 + $0x7c0] sm:$0xff] }
 0x98e   :  { %5193 = vmatprep.subr.bf16.mxu1 %v5191_v34  ;;  %v8889_v26 = vcombine.high %v5532_v46, %v5540_v25  ;;  %v5548_v40 = vld [vmem:[#allocation10 + $0x388] sm:$0xff]  ;;  %v8888_v47 = vcombine.low %v5532_v46, %v5540_v25  ;;  %v9030_v25 = vcombine.low %v5675_v43, %v5683_v44 }
 0x98f   :  { %5194 = vmatpush1.bf16.msra.mxu1 %v5188_v50  ;;  %v5556_v34 = vld [vmem:[#allocation10 + $0x3c8] sm:$0xff] }
 0x990   :  { %5242 = vmatprep.subr.bf16.mxu1 %v5240_v49  ;;  %v8905_v50 = vcombine.high %v5548_v40, %v5556_v34  ;;  %v5564_v49 = vld [vmem:[#allocation10 + $0x408] sm:$0xff] }
 0x991   :  { %v5668_v39 = vld [vmem:[#allocation10 + $0x748] sm:$0xff] }
 0x992   :  { %8786 = vmatmul.mubr.msk.bf16.vlgmr.msra.gmra.mrb[84].mxu1 %vm10279_vm0, %v9864_v54  ;;  %v5684_v46 = vld [vmem:[#allocation10 + $0x7c8] sm:$0xff] }
 0x993   :  { %5243 = vmatpush1.bf16.msra.mxu1 %v5237_v61  ;;  %5274 = vmatprep.mubr.bf16.mxu1 %v9616_v31  ;;  %v5572_v61 = vld [vmem:[#allocation10 + $0x448] sm:$0xff] }
 0x99e   :  { %8787 = vmatmul.mubr.msk.bf16.vlgmr.msra.gmra.mrb[84].mxu1 %vm10280_vm1, %v9876_v63 }
 0x99f   :  { %5325 = vmatprep.mubr.bf16.mxu1 %v9616_v31 }
 0x9a8   :  { %v5135_v62 = vpop.f32.mrb[80].mxu1  ;;  %v5176_v51 = vpop.f32.mrb[60].mxu0 }
 0x9a9   :  { %v5285_v55 = vpack.c.bf16 %v5135_v62, %v5135_v62  ;;  %v5137_v52 = vpop.f32.mrb[81].mxu1  ;;  %v5178_v2 = vpop.f32.mrb[61].mxu0  ;;  %v5340_v12 = vpack.c.bf16 %v5176_v51, %v5176_v51  ;;  %v8904_v62 = vcombine.low %v5548_v40, %v5556_v34  ;;  %v8921_v51 = vcombine.high %v5564_v49, %v5572_v61  ;;  %v5437_v40 = vld [vmem:[#allocation10 + $0x10] sm:$0xff] }
 0x9aa   :  { %v5286_v30 = vpack.c.bf16 %v5137_v52, %v5137_v52  ;;  %v5341_v57 = vpack.c.bf16 %v5178_v2, %v5178_v2  ;;  %v5139_v5 = vpop.f32.mrb[82].mxu1  ;;  %v5180_v6 = vpop.f32.mrb[62].mxu0  ;;  %v5588_v52 = vld [vmem:[#allocation10 + $0x4c8] sm:$0xff]  ;;  %v8920_v2 = vcombine.low %v5564_v49, %v5572_v61  ;;  %v5445_v34 = vld [vmem:[#allocation10 + $0x50] sm:$0xff]  ;;  %v5446_v49 = vld [vmem:[#allocation10 + $0x58] sm:$0xff] }
 0x9ab   :  { %v5140_v8 = vpop.f32.mrb[83].mxu1  ;;  %v5181_v9 = vpop.f32.mrb[63].mxu0  ;;  %v5288_v11 = vand.u32 %v5285_v55, %v9857_v58  ;;  %v5343_v19 = vand.u32 %v5340_v12, %v9857_v58  ;;  %v5580_v55 = vld [vmem:[#allocation10 + $0x488] sm:$0xff]  ;;  %v8794_v61 = vcombine.low %v5437_v40, %v5445_v34 }
 0x9ac   :  { %v5291_v10 = vand.u32 %v5286_v30, %v9857_v58  ;;  %v5346_v17 = vand.u32 %v5341_v57, %v9857_v58  ;;  %v8825_v58 = vcombine.high %v5468_v24, %v5476_v32  ;;  %v8937_v30 = vcombine.high %v5580_v55, %v5588_v52  ;;  %v5596_v57 = vld [vmem:[#allocation10 + $0x508] sm:$0xff] }
 0x9ad   :  { %v5604_v5 = vld [vmem:[#allocation10 + $0x548] sm:$0xff]  ;;  %v8936_v6 = vcombine.low %v5580_v55, %v5588_v52  ;;  %v8998_v32 = vcombine.low %v5643_v20, %v5651_v4  ;;  %v5395_v55 = vld [vmem:[%s10271_s5] sm:$0x3] }
 0x9ae   :  { %5293 = vmatprep.subr.bf16.mxu1 %v5291_v10  ;;  %v8953_v8 = vcombine.high %v5596_v57, %v5604_v5  ;;  %v5612_v9 = vld [vmem:[#allocation10 + $0x588] sm:$0xff]  ;;  %v5400_v52 = vrot.slane %v5395_v55, %v9790_v60 }
 0x9af   :  { %5294 = vmatpush1.bf16.msra.mxu1 %v5288_v11  ;;  %v5620_v10 = vld [vmem:[#allocation10 + $0x5c8] sm:$0xff]  ;;  %v8952_v11 = vcombine.low %v5596_v57, %v5604_v5 }
 0x9b0   :  { %5348 = vmatprep.subr.bf16.mxu1 %v5346_v17  ;;  %v8969_v12 = vcombine.high %v5612_v9, %v5620_v10  ;;  %v8968_v17 = vcombine.low %v5612_v9, %v5620_v10  ;;  %v5652_v24 = vld [vmem:[#allocation10 + $0x6c8] sm:$0xff] }
 0x9b2   :  { %8788 = vmatmul.mubr.msk.bf16.vlgmr.msra.gmra.mrb[84].mxu1 %vm10281_vm2, %v9893_v15 }
 0x9b3   :  { %5349 = vmatpush1.bf16.msra.mxu1 %v5343_v19  ;;  %5380 = vmatprep.mubr.bf16.mxu1 %v9616_v31  ;;  %v8984_v19 = vcombine.low %v5628_v16, %v5636_v3 }
 0x9b4   :  { %7014 = vmatprep.subr.bf16.mxu1 %v8793_v27  ;;  %v8985_v27 = vcombine.high %v5628_v16, %v5636_v3 }
 0x9be   :  { %8789 = vmatmul.mubr.msk.bf16.vlgmr.msra.gmra.mrb[84].mxu1 %vm10282_vm3, %v9908_v23 }
 0x9bf   :  { %7015 = vmatpush1.bf16.msra.mxu1 %v8792_v21  ;;  %v5644_v21 = vld [vmem:[#allocation10 + $0x688] sm:$0xff] }
 0x9c0   :  { %7016 = vmatprep.subr.bf16.mxu1 %v8809_v22  ;;  %v8999_v22 = vcombine.high %v5643_v20, %v5651_v4 }
 0x9c2   :  { %6997 = vmatprep.subr.bf16.mxu0 %v8999_v22 }
 0x9c3   :  { %7017 = vmatpush1.bf16.msra.mxu1 %v8808_v33  ;;  %v9000_v33 = vcombine.low %v5644_v21, %v5652_v24  ;;  %6998 = vmatpush1.bf16.msra.mxu0 %v8998_v32 }
 0x9c4   :  { %7018 = vmatprep.subr.bf16.mxu1 %v8825_v58  ;;  %v9001_v58 = vcombine.high %v5644_v21, %v5652_v24 }
 0x9c7   :  { %7019 = vmatpush1.bf16.msra.mxu1 %v8824_v37  ;;  %v5660_v37 = vld [vmem:[#allocation10 + $0x708] sm:$0xff] }
 0x9c8   :  { %7020 = vmatprep.subr.bf16.mxu1 %v8841_v36  ;;  %v9015_v36 = vcombine.high %v5659_v28, %v5667_v35  ;;  %v5453_v28 = vld [vmem:[#allocation10 + $0x90] sm:$0xff] }
 0x9ca   :  { %6999 = vmatprep.subr.bf16.mxu0 %v9015_v36  ;;  %v5454_v36 = vld [vmem:[#allocation10 + $0x98] sm:$0xff] }
 0x9cb   :  { %7021 = vmatpush1.bf16.msra.mxu1 %v8840_v38  ;;  %v9016_v38 = vcombine.low %v5660_v37, %v5668_v39  ;;  %7000 = vmatpush1.bf16.msra.mxu0 %v9014_v41 }
 0x9cc   :  { %7022 = vmatprep.subr.bf16.mxu1 %v8857_v42  ;;  %v9017_v42 = vcombine.high %v5660_v37, %v5668_v39  ;;  %v5461_v37 = vld [vmem:[#allocation10 + $0xd0] sm:$0xff]  ;;  %v5462_v39 = vld [vmem:[#allocation10 + $0xd8] sm:$0xff] }
 0x9cf   :  { %7023 = vmatpush1.bf16.msra.mxu1 %v8856_v0  ;;  %v5676_v0 = vld [vmem:[#allocation10 + $0x788] sm:$0xff] }
 0x9d0   :  { %7024 = vmatprep.subr.bf16.mxu1 %v8873_v45  ;;  %v9031_v45 = vcombine.high %v5675_v43, %v5683_v44  ;;  %v8813_v43 = vcombine.high %v5454_v36, %v5462_v39  ;;  %v5477_v44 = vld [vmem:[#allocation10 + $0x150] sm:$0xff] }
 0x9d2   :  { %7001 = vmatprep.subr.bf16.mxu0 %v9031_v45  ;;  %v5478_v45 = vld [vmem:[#allocation10 + $0x158] sm:$0xff] }
 0x9d3   :  { %7025 = vmatpush1.bf16.msra.mxu1 %v8872_v18  ;;  %v9032_v18 = vcombine.low %v5676_v0, %v5684_v46  ;;  %7002 = vmatpush1.bf16.msra.mxu0 %v9030_v25  ;;  %v8812_v25 = vcombine.low %v5454_v36, %v5462_v39  ;;  %v5558_v36 = vld [vmem:[#allocation10 + $0x3d8] sm:$0xff] }
 0x9d4   :  { %7026 = vmatprep.subr.bf16.mxu1 %v8889_v26  ;;  %v9033_v26 = vcombine.high %v5676_v0, %v5684_v46  ;;  %v5470_v0 = vld [vmem:[#allocation10 + $0x118] sm:$0xff]  ;;  %v8810_v46 = vcombine.low %v5453_v28, %v5461_v37 }
 0x9d7   :  { %7027 = vmatpush1.bf16.msra.mxu1 %v8888_v47  ;;  %v5438_v47 = vld [vmem:[#allocation10 + $0x18] sm:$0xff] }
 0x9d8   :  { %7028 = vmatprep.subr.bf16.mxu1 %v8905_v50  ;;  %v8795_v50 = vcombine.high %v5437_v40, %v5445_v34  ;;  %v5485_v40 = vld [vmem:[#allocation10 + $0x190] sm:$0xff] }
 0x9d9   :  { %v5493_v34 = vld [vmem:[#allocation10 + $0x1d0] sm:$0xff] }
 0x9da   :  { %7057 = vmatprep.subr.bf16.mxu0 %v8795_v50  ;;  %v5494_v50 = vld [vmem:[#allocation10 + $0x1d8] sm:$0xff] }
 0x9db   :  { %7029 = vmatpush1.bf16.msra.mxu1 %v8904_v62  ;;  %v8796_v62 = vcombine.low %v5438_v47, %v5446_v49 }
 0x9dc   :  { %7030 = vmatprep.subr.bf16.mxu1 %v8921_v51  ;;  %v8797_v51 = vcombine.high %v5438_v47, %v5446_v49  ;;  %v5486_v47 = vld [vmem:[#allocation10 + $0x198] sm:$0xff] }
 0x9df   :  { %7031 = vmatpush1.bf16.msra.mxu1 %v8920_v2  ;;  %v5404_v2 = vrot.slane %v5395_v55, %v9916_v1  ;;  %v5501_v55 = vld [vmem:[#allocation10 + $0x210] sm:$0xff] }
 0x9e0   :  { %7032 = vmatprep.subr.bf16.mxu1 %v8937_v30 }
 0x9e3   :  { %7033 = vmatpush1.bf16.msra.mxu1 %v8936_v6 }
 0x9e4   :  { %7034 = vmatprep.subr.bf16.mxu1 %v8953_v8 }
 0x9e7   :  { %7035 = vmatpush1.bf16.msra.mxu1 %v8952_v11 }
 0x9e8   :  { %7036 = vmatprep.subr.bf16.mxu1 %v8969_v12 }
 0x9eb   :  { %7037 = vmatpush1.bf16.msra.mxu1 %v8968_v17 }
 0x9ec   :  { %7038 = vmatprep.subr.bf16.mxu1 %v8985_v27 }
 0x9ef   :  { %7039 = vmatpush1.bf16.msra.mxu1 %v8984_v19 }
 0x9f0   :  { %7040 = vmatprep.subr.bf16.mxu1 %v9001_v58 }
 0x9f3   :  { %7041 = vmatpush1.bf16.msra.mxu1 %v9000_v33 }
 0x9f4   :  { %7042 = vmatprep.subr.bf16.mxu1 %v9017_v42  ;;  %v8811_v42 = vcombine.high %v5453_v28, %v5461_v37  ;;  %v5557_v28 = vld [vmem:[#allocation10 + $0x3d0] sm:$0xff]  ;;  %v5550_v37 = vld [vmem:[#allocation10 + $0x398] sm:$0xff] }
 0x9f7   :  { %7043 = vmatpush1.bf16.msra.mxu1 %v9016_v38  ;;  %v5469_v38 = vld [vmem:[#allocation10 + $0x110] sm:$0xff] }
 0x9f8   :  { %7044 = vmatprep.subr.bf16.mxu1 %v9033_v26  ;;  %v8829_v26 = vcombine.high %v5470_v0, %v5478_v45  ;;  %v8826_v49 = vcombine.low %v5469_v38, %v5477_v44 }
 0x9fb   :  { %7045 = vmatpush1.bf16.msra.mxu1 %v9032_v18  ;;  %v8827_v18 = vcombine.high %v5469_v38, %v5477_v44  ;;  %v5565_v44 = vld [vmem:[#allocation10 + $0x410] sm:$0xff] }
 0x9fc   :  { %7100 = vmatprep.subr.bf16.mxu1 %v8797_v51  ;;  %v8828_v51 = vcombine.low %v5470_v0, %v5478_v45  ;;  %v5573_v0 = vld [vmem:[#allocation10 + $0x450] sm:$0xff]  ;;  %v5566_v45 = vld [vmem:[#allocation10 + $0x418] sm:$0xff] }
 0xa91   :  { %v5382_v30 = vpop.f32.mrb[84].mxu1 }
 0xa92   :  { %v5407_v57 = vadd.f32 %v5400_v52, %v5382_v30  ;;  %v5384_v5 = vpop.f32.mrb[85].mxu1  ;;  %v5510_v30 = vld [vmem:[#allocation10 + $0x258] sm:$0xff] }
 0xa93   :  { %v5408_v6 = vadd.f32 %v5404_v2, %v5384_v5  ;;  %v5386_v8 = vpop.f32.mrb[86].mxu1  ;;  %v8844_v5 = vcombine.low %v5486_v47, %v5494_v50 }
 0xa94   :  { %v5411_v9 = vmax.f32 %v5407_v57, 0.0  ;;  %v5409_v10 = vadd.f32 %v5400_v52, %v5386_v8  ;;  %v5388_v11 = vpop.f32.mrb[87].mxu1  ;;  %v5509_v52 = vld [vmem:[#allocation10 + $0x250] sm:$0xff]  ;;  %v8842_v57 = vcombine.low %v5485_v40, %v5493_v34 }
 0xa95   :  { %v5412_v12 = vmax.f32 %v5408_v6, 0.0  ;;  %v5410_v16 = vadd.f32 %v5404_v2, %v5388_v11  ;;  %v5502_v2 = vld [vmem:[#allocation10 + $0x218] sm:$0xff]  ;;  %v8859_v6 = vcombine.high %v5501_v55, %v5509_v52 }
 0xa96   :  { %v5413_v3 = vmax.f32 %v5409_v10, 0.0  ;;  %v5419_v27 = vrot.slane %v5411_v9, 1  ;;  %v8861_v8 = vcombine.high %v5502_v2, %v5510_v30  ;;  %v5525_v10 = vld [vmem:[#allocation10 + $0x2d0] sm:$0xff]  ;;  %v5518_v11 = vld [vmem:[#allocation10 + $0x298] sm:$0xff] }
 0xa97   :  { %v5414_v17 = vmax.f32 %v5410_v16, 0.0  ;;  %v5422_v20 = vrot.slane %v5412_v12, 1  ;;  %v8858_v16 = vcombine.low %v5501_v55, %v5509_v52  ;;  %v5597_v52 = vld [vmem:[#allocation10 + $0x510] sm:$0xff] }
 0xa98   :  { %v5420_v19 = vrot.slane %v5413_v3, 1 }
 0xa99   :  { %v5423_v4 = vrot.slane %v5414_v17, 1 }
 0xa9a   :  { %v5421_v21 = vsel %vm10283_vm4, %v5419_v27, %v5420_v19  ;;  %v5431_v22 = vmax.f32 %v5413_v3, %v5420_v19  ;;  %v8860_v3 = vcombine.low %v5502_v2, %v5510_v30  ;;  %v5533_v19 = vld [vmem:[#allocation10 + $0x310] sm:$0xff]  ;;  %v5598_v30 = vld [vmem:[#allocation10 + $0x518] sm:$0xff] }
 0xa9b   :  { %v5429_v24 = vmax.f32 %v5411_v9, %v5421_v21  ;;  %v5424_v32 = vsel %vm10284_vm5, %v5422_v20, %v5423_v4  ;;  %v5432_v33 = vmax.f32 %v5414_v17, %v5423_v4  ;;  %v5517_v9 = vld [vmem:[#allocation10 + $0x290] sm:$0xff]  ;;  %v5534_v4 = vld [vmem:[#allocation10 + $0x318] sm:$0xff] }
 0xa9c   :  { %v5430_v58 = vmax.f32 %v5412_v12, %v5424_v32  ;;  %v5526_v12 = vld [vmem:[#allocation10 + $0x2d8] sm:$0xff]  ;;  %v8875_v17 = vcombine.high %v5517_v9, %v5525_v10  ;;  %v5541_v20 = vld [vmem:[#allocation10 + $0x350] sm:$0xff] }
 0xa9d   :  { %v10155_v35 = vpack.c.bf16 %v5431_v22, %v5429_v24  ;;  %v8877_v27 = vcombine.high %v5518_v11, %v5526_v12  ;;  %v5542_v21 = vld [vmem:[#allocation10 + $0x358] sm:$0xff]  ;;  %v8874_v22 = vcombine.low %v5517_v9, %v5525_v10  ;;  %v8876_v24 = vcombine.low %v5518_v11, %v5526_v12  ;;  %v5605_v2 = vld [vmem:[#allocation10 + $0x550] sm:$0xff] }
 0xa9e   :  { %v10157_v41 = vpack.c.bf16 %v5432_v33, %v5430_v58  ;;  %v8891_v32 = vcombine.high %v5533_v19, %v5541_v20  ;;  %v8893_v33 = vcombine.high %v5534_v4, %v5542_v21  ;;  %v5549_v58 = vld [vmem:[#allocation10 + $0x390] sm:$0xff]  ;;  %v8890_v39 = vcombine.low %v5533_v19, %v5541_v20  ;;  %v5614_v12 = vld [vmem:[#allocation10 + $0x598] sm:$0xff] }
 0xa9f   :  { %v8892_v38 = vcombine.low %v5534_v4, %v5542_v21  ;;  %v5613_v10 = vld [vmem:[#allocation10 + $0x590] sm:$0xff]  ;;  %v5630_v21 = vld [vmem:[#allocation10 + $0x618] sm:$0xff] }
 0xaa0   :  { %7003 = vmatprep.mubr.bf16.mxu0 %v10157_v41  ;;  %7046 = vmatprep.mubr.bf16.mxu1 %v10157_v41  ;;  %v5621_v11 = vld [vmem:[#allocation10 + $0x5d0] sm:$0xff] }
 0xaa1   :  { %7004 = vmatmul.mubr.bf16.vlgmr.msra.gmra.mrb[64].mxu0 %v10155_v35  ;;  %7047 = vmatmul.mubr.bf16.vlgmr.msra.gmra.mrb[88].mxu1 %v10155_v35  ;;  %v5629_v20 = vld [vmem:[#allocation10 + $0x610] sm:$0xff] }
 0xaa2   :  { %7058 = vmatpush1.bf16.msra.mxu0 %v8794_v61  ;;  %7101 = vmatpush1.bf16.msra.mxu1 %v8796_v62  ;;  %v8843_v61 = vcombine.high %v5485_v40, %v5493_v34  ;;  %v8845_v62 = vcombine.high %v5486_v47, %v5494_v50  ;;  %v5581_v34 = vld [vmem:[#allocation10 + $0x490] sm:$0xff]  ;;  %v5582_v50 = vld [vmem:[#allocation10 + $0x498] sm:$0xff] }
 0xaa3   :  { %7089 = vmatprep.mubr.bf16.mxu0 %v10157_v41  ;;  %7132 = vmatprep.mubr.bf16.mxu1 %v10157_v41  ;;  %v5589_v47 = vld [vmem:[#allocation10 + $0x4d0] sm:$0xff] }
 0xaa4   :  { %7059 = vmatprep.subr.bf16.mxu0 %v8811_v42  ;;  %7102 = vmatprep.subr.bf16.mxu1 %v8813_v43  ;;  %v8907_v42 = vcombine.high %v5549_v58, %v5557_v28  ;;  %v8909_v43 = vcombine.high %v5550_v37, %v5558_v36  ;;  %v5637_v4 = vld [vmem:[#allocation10 + $0x650] sm:$0xff] }
 0xaa6   :  { %7060 = vmatpush1.bf16.msra.mxu0 %v8810_v46  ;;  %7103 = vmatpush1.bf16.msra.mxu1 %v8812_v25  ;;  %v5574_v46 = vld [vmem:[#allocation10 + $0x458] sm:$0xff]  ;;  %v8906_v25 = vcombine.low %v5549_v58, %v5557_v28  ;;  %v5645_v28 = vld [vmem:[#allocation10 + $0x690] sm:$0xff] }
 0xaa7   :  { %7061 = vmatprep.subr.bf16.mxu0 %v8827_v18  ;;  %7104 = vmatprep.subr.bf16.mxu1 %v8829_v26  ;;  %v8908_v18 = vcombine.low %v5550_v37, %v5558_v36  ;;  %v8923_v26 = vcombine.high %v5565_v44, %v5573_v0  ;;  %v8925_v40 = vcombine.high %v5566_v45, %v5574_v46  ;;  %v5653_v37 = vld [vmem:[#allocation10 + $0x6d0] sm:$0xff]  ;;  %v5646_v36 = vld [vmem:[#allocation10 + $0x698] sm:$0xff] }
 0xaaa   :  { %7062 = vmatpush1.bf16.msra.mxu0 %v8826_v49  ;;  %7105 = vmatpush1.bf16.msra.mxu1 %v8828_v51  ;;  %v5590_v49 = vld [vmem:[#allocation10 + $0x4d8] sm:$0xff]  ;;  %v8922_v51 = vcombine.low %v5565_v44, %v5573_v0  ;;  %v5661_v0 = vld [vmem:[#allocation10 + $0x710] sm:$0xff] }
 0xaab   :  { %7063 = vmatprep.subr.bf16.mxu0 %v8843_v61  ;;  %7106 = vmatprep.subr.bf16.mxu1 %v8845_v62  ;;  %v8924_v61 = vcombine.low %v5566_v45, %v5574_v46  ;;  %v8939_v62 = vcombine.high %v5581_v34, %v5589_v47  ;;  %v8941_v55 = vcombine.high %v5582_v50, %v5590_v49  ;;  %v5669_v45 = vld [vmem:[#allocation10 + $0x750] sm:$0xff]  ;;  %v5662_v46 = vld [vmem:[#allocation10 + $0x718] sm:$0xff] }
 0xaae   :  { %7064 = vmatpush1.bf16.msra.mxu0 %v8842_v57  ;;  %7107 = vmatpush1.bf16.msra.mxu1 %v8844_v5  ;;  %v5606_v57 = vld [vmem:[#allocation10 + $0x558] sm:$0xff]  ;;  %v8938_v5 = vcombine.low %v5581_v34, %v5589_v47  ;;  %v5677_v47 = vld [vmem:[#allocation10 + $0x790] sm:$0xff] }
 0xaaf   :  { %7065 = vmatprep.subr.bf16.mxu0 %v8859_v6  ;;  %7108 = vmatprep.subr.bf16.mxu1 %v8861_v8  ;;  %v8940_v6 = vcombine.low %v5582_v50, %v5590_v49  ;;  %v8955_v8 = vcombine.high %v5597_v52, %v5605_v2  ;;  %v8957_v9 = vcombine.high %v5598_v30, %v5606_v57  ;;  %v5685_v50 = vld [vmem:[#allocation10 + $0x7d0] sm:$0xff]  ;;  %v5678_v49 = vld [vmem:[#allocation10 + $0x798] sm:$0xff] }
 0xab2   :  { %7066 = vmatpush1.bf16.msra.mxu0 %v8858_v16  ;;  %7109 = vmatpush1.bf16.msra.mxu1 %v8860_v3  ;;  %v5622_v16 = vld [vmem:[#allocation10 + $0x5d8] sm:$0xff]  ;;  %v8954_v3 = vcombine.low %v5597_v52, %v5605_v2  ;;  %v5439_v2 = vld [vmem:[#allocation10 + $0x20] sm:$0xff] }
 0xab3   :  { %7067 = vmatprep.subr.bf16.mxu0 %v8875_v17  ;;  %7110 = vmatprep.subr.bf16.mxu1 %v8877_v27  ;;  %v8956_v17 = vcombine.low %v5598_v30, %v5606_v57  ;;  %v8971_v27 = vcombine.high %v5613_v10, %v5621_v11  ;;  %v8973_v19 = vcombine.high %v5614_v12, %v5622_v16  ;;  %v5447_v30 = vld [vmem:[#allocation10 + $0x60] sm:$0xff]  ;;  %v5440_v57 = vld [vmem:[#allocation10 + $0x28] sm:$0xff] }
 0xab6   :  { %7068 = vmatpush1.bf16.msra.mxu0 %v8874_v22  ;;  %7111 = vmatpush1.bf16.msra.mxu1 %v8876_v24  ;;  %v5638_v22 = vld [vmem:[#allocation10 + $0x658] sm:$0xff]  ;;  %v8970_v24 = vcombine.low %v5613_v10, %v5621_v11  ;;  %v5455_v11 = vld [vmem:[#allocation10 + $0xa0] sm:$0xff] }
 0xab7   :  { %7069 = vmatprep.subr.bf16.mxu0 %v8891_v32  ;;  %7112 = vmatprep.subr.bf16.mxu1 %v8893_v33  ;;  %v8972_v32 = vcombine.low %v5614_v12, %v5622_v16  ;;  %v8987_v33 = vcombine.high %v5629_v20, %v5637_v4  ;;  %v8989_v58 = vcombine.high %v5630_v21, %v5638_v22  ;;  %v5463_v12 = vld [vmem:[#allocation10 + $0xe0] sm:$0xff]  ;;  %v5456_v16 = vld [vmem:[#allocation10 + $0xa8] sm:$0xff] }
 0xaba   :  { %7070 = vmatpush1.bf16.msra.mxu0 %v8890_v39  ;;  %7113 = vmatpush1.bf16.msra.mxu1 %v8892_v38  ;;  %v5654_v39 = vld [vmem:[#allocation10 + $0x6d8] sm:$0xff]  ;;  %v8986_v38 = vcombine.low %v5629_v20, %v5637_v4  ;;  %v5471_v4 = vld [vmem:[#allocation10 + $0x120] sm:$0xff] }
 0xabb   :  { %7071 = vmatprep.subr.bf16.mxu0 %v8907_v42  ;;  %7114 = vmatprep.subr.bf16.mxu1 %v8909_v43  ;;  %v8988_v42 = vcombine.low %v5630_v21, %v5638_v22  ;;  %v9003_v43 = vcombine.high %v5645_v28, %v5653_v37  ;;  %v9005_v44 = vcombine.high %v5646_v36, %v5654_v39  ;;  %v5479_v21 = vld [vmem:[#allocation10 + $0x160] sm:$0xff]  ;;  %v5472_v22 = vld [vmem:[#allocation10 + $0x128] sm:$0xff] }
 0xabe   :  { %7072 = vmatpush1.bf16.msra.mxu0 %v8906_v25  ;;  %7115 = vmatpush1.bf16.msra.mxu1 %v8908_v18  ;;  %v5670_v25 = vld [vmem:[#allocation10 + $0x758] sm:$0xff]  ;;  %v9002_v18 = vcombine.low %v5645_v28, %v5653_v37  ;;  %v5487_v37 = vld [vmem:[#allocation10 + $0x1a0] sm:$0xff] }
 0xabf   :  { %7073 = vmatprep.subr.bf16.mxu0 %v8923_v26  ;;  %7116 = vmatprep.subr.bf16.mxu1 %v8925_v40  ;;  %v9004_v26 = vcombine.low %v5646_v36, %v5654_v39  ;;  %v9019_v40 = vcombine.high %v5661_v0, %v5669_v45  ;;  %v9021_v34 = vcombine.high %v5662_v46, %v5670_v25  ;;  %v5495_v36 = vld [vmem:[#allocation10 + $0x1e0] sm:$0xff]  ;;  %v5488_v39 = vld [vmem:[#allocation10 + $0x1a8] sm:$0xff] }
 0xac2   :  { %7074 = vmatpush1.bf16.msra.mxu0 %v8922_v51  ;;  %7117 = vmatpush1.bf16.msra.mxu1 %v8924_v61  ;;  %v5686_v51 = vld [vmem:[#allocation10 + $0x7d8] sm:$0xff]  ;;  %v9018_v61 = vcombine.low %v5661_v0, %v5669_v45  ;;  %v5503_v45 = vld [vmem:[#allocation10 + $0x220] sm:$0xff] }
 0xac3   :  { %7075 = vmatprep.subr.bf16.mxu0 %v8939_v62  ;;  %7118 = vmatprep.subr.bf16.mxu1 %v8941_v55  ;;  %v9020_v62 = vcombine.low %v5662_v46, %v5670_v25  ;;  %v9035_v55 = vcombine.high %v5677_v47, %v5685_v50  ;;  %v9037_v52 = vcombine.high %v5678_v49, %v5686_v51  ;;  %v5511_v46 = vld [vmem:[#allocation10 + $0x260] sm:$0xff]  ;;  %v5504_v25 = vld [vmem:[#allocation10 + $0x228] sm:$0xff] }
 0xac6   :  { %7076 = vmatpush1.bf16.msra.mxu0 %v8938_v5  ;;  %7119 = vmatpush1.bf16.msra.mxu1 %v8940_v6  ;;  %v5448_v5 = vld [vmem:[#allocation10 + $0x68] sm:$0xff]  ;;  %v9034_v6 = vcombine.low %v5677_v47, %v5685_v50  ;;  %v5519_v50 = vld [vmem:[#allocation10 + $0x2a0] sm:$0xff] }
 0xac7   :  { %7077 = vmatprep.subr.bf16.mxu0 %v8955_v8  ;;  %7120 = vmatprep.subr.bf16.mxu1 %v8957_v9  ;;  %v9036_v8 = vcombine.low %v5678_v49, %v5686_v51  ;;  %v8799_v9 = vcombine.high %v5439_v2, %v5447_v30  ;;  %v8801_v10 = vcombine.high %v5440_v57, %v5448_v5  ;;  %v5527_v49 = vld [vmem:[#allocation10 + $0x2e0] sm:$0xff]  ;;  %v5520_v51 = vld [vmem:[#allocation10 + $0x2a8] sm:$0xff] }
 0xaca   :  { %7078 = vmatpush1.bf16.msra.mxu0 %v8954_v3  ;;  %7121 = vmatpush1.bf16.msra.mxu1 %v8956_v17  ;;  %v5464_v3 = vld [vmem:[#allocation10 + $0xe8] sm:$0xff]  ;;  %v8798_v17 = vcombine.low %v5439_v2, %v5447_v30  ;;  %v5535_v30 = vld [vmem:[#allocation10 + $0x320] sm:$0xff] }
 0xacb   :  { %7079 = vmatprep.subr.bf16.mxu0 %v8971_v27  ;;  %7122 = vmatprep.subr.bf16.mxu1 %v8973_v19  ;;  %v8800_v27 = vcombine.low %v5440_v57, %v5448_v5  ;;  %v8815_v19 = vcombine.high %v5455_v11, %v5463_v12  ;;  %v8817_v20 = vcombine.high %v5456_v16, %v5464_v3  ;;  %v5543_v57 = vld [vmem:[#allocation10 + $0x360] sm:$0xff]  ;;  %v5536_v5 = vld [vmem:[#allocation10 + $0x328] sm:$0xff] }
 0xace   :  { %7080 = vmatpush1.bf16.msra.mxu0 %v8970_v24  ;;  %7123 = vmatpush1.bf16.msra.mxu1 %v8972_v32  ;;  %v5480_v24 = vld [vmem:[#allocation10 + $0x168] sm:$0xff]  ;;  %v8814_v32 = vcombine.low %v5455_v11, %v5463_v12  ;;  %v5551_v12 = vld [vmem:[#allocation10 + $0x3a0] sm:$0xff] }
 0xacf   :  { %7081 = vmatprep.subr.bf16.mxu0 %v8987_v33  ;;  %7124 = vmatprep.subr.bf16.mxu1 %v8989_v58  ;;  %v8816_v33 = vcombine.low %v5456_v16, %v5464_v3  ;;  %v8831_v58 = vcombine.high %v5471_v4, %v5479_v21  ;;  %v8833_v28 = vcombine.high %v5472_v22, %v5480_v24  ;;  %v5559_v16 = vld [vmem:[#allocation10 + $0x3e0] sm:$0xff]  ;;  %v5552_v3 = vld [vmem:[#allocation10 + $0x3a8] sm:$0xff] }
 0xad2   :  { %7082 = vmatpush1.bf16.msra.mxu0 %v8986_v38  ;;  %7125 = vmatpush1.bf16.msra.mxu1 %v8988_v42  ;;  %v5496_v38 = vld [vmem:[#allocation10 + $0x1e8] sm:$0xff]  ;;  %v8830_v42 = vcombine.low %v5471_v4, %v5479_v21  ;;  %v5567_v21 = vld [vmem:[#allocation10 + $0x420] sm:$0xff] }
 0xad3   :  { %7083 = vmatprep.subr.bf16.mxu0 %v9003_v43  ;;  %7126 = vmatprep.subr.bf16.mxu1 %v9005_v44  ;;  %v8832_v43 = vcombine.low %v5472_v22, %v5480_v24  ;;  %v8847_v44 = vcombine.high %v5487_v37, %v5495_v36  ;;  %v8849_v0 = vcombine.high %v5488_v39, %v5496_v38  ;;  %v5575_v22 = vld [vmem:[#allocation10 + $0x460] sm:$0xff]  ;;  %v5568_v24 = vld [vmem:[#allocation10 + $0x428] sm:$0xff] }
 0xad6   :  { %7084 = vmatpush1.bf16.msra.mxu0 %v9002_v18  ;;  %7127 = vmatpush1.bf16.msra.mxu1 %v9004_v26  ;;  %v5512_v18 = vld [vmem:[#allocation10 + $0x268] sm:$0xff]  ;;  %v8846_v26 = vcombine.low %v5487_v37, %v5495_v36  ;;  %v5583_v36 = vld [vmem:[#allocation10 + $0x4a0] sm:$0xff] }
 0xad7   :  { %7085 = vmatprep.subr.bf16.mxu0 %v9019_v40  ;;  %7128 = vmatprep.subr.bf16.mxu1 %v9021_v34  ;;  %v8848_v40 = vcombine.low %v5488_v39, %v5496_v38  ;;  %v8863_v34 = vcombine.high %v5503_v45, %v5511_v46  ;;  %v8865_v47 = vcombine.high %v5504_v25, %v5512_v18  ;;  %v5591_v39 = vld [vmem:[#allocation10 + $0x4e0] sm:$0xff]  ;;  %v5584_v38 = vld [vmem:[#allocation10 + $0x4a8] sm:$0xff] }
 0xada   :  { %7086 = vmatpush1.bf16.msra.mxu0 %v9018_v61  ;;  %7129 = vmatpush1.bf16.msra.mxu1 %v9020_v62  ;;  %v5528_v61 = vld [vmem:[#allocation10 + $0x2e8] sm:$0xff]  ;;  %v8862_v62 = vcombine.low %v5503_v45, %v5511_v46  ;;  %v5599_v46 = vld [vmem:[#allocation10 + $0x520] sm:$0xff] }
 0xadb   :  { %7087 = vmatprep.subr.bf16.mxu0 %v9035_v55  ;;  %7130 = vmatprep.subr.bf16.mxu1 %v9037_v52  ;;  %v8864_v55 = vcombine.low %v5504_v25, %v5512_v18  ;;  %v8879_v52 = vcombine.high %v5519_v50, %v5527_v49  ;;  %v8881_v2 = vcombine.high %v5520_v51, %v5528_v61  ;;  %v5607_v25 = vld [vmem:[#allocation10 + $0x560] sm:$0xff]  ;;  %v5600_v18 = vld [vmem:[#allocation10 + $0x528] sm:$0xff] }
 0xade   :  { %7088 = vmatpush1.bf16.msra.mxu0 %v9034_v6  ;;  %7131 = vmatpush1.bf16.msra.mxu1 %v9036_v8  ;;  %v5544_v6 = vld [vmem:[#allocation10 + $0x368] sm:$0xff]  ;;  %v8878_v8 = vcombine.low %v5519_v50, %v5527_v49  ;;  %v5615_v49 = vld [vmem:[#allocation10 + $0x5a0] sm:$0xff] }
 0xadf   :  { %7143 = vmatprep.subr.bf16.mxu0 %v8799_v9  ;;  %7186 = vmatprep.subr.bf16.mxu1 %v8801_v10  ;;  %v8880_v9 = vcombine.low %v5520_v51, %v5528_v61  ;;  %v8895_v10 = vcombine.high %v5535_v30, %v5543_v57  ;;  %v8897_v11 = vcombine.high %v5536_v5, %v5544_v6  ;;  %v5623_v51 = vld [vmem:[#allocation10 + $0x5e0] sm:$0xff]  ;;  %v5616_v61 = vld [vmem:[#allocation10 + $0x5a8] sm:$0xff] }
 0xae1   :  { %7090 = vmatmul.mubr.bf16.vlgmr.msra.gmra.mrb[68].mxu0 %v10155_v35  ;;  %7133 = vmatmul.mubr.bf16.vlgmr.msra.gmra.mrb[92].mxu1 %v10155_v35 }
 0xae2   :  { %7144 = vmatpush1.bf16.msra.mxu0 %v8798_v17  ;;  %7175 = vmatprep.mubr.bf16.mxu0 %v10157_v41  ;;  %v5560_v17 = vld [vmem:[#allocation10 + $0x3e8] sm:$0xff] }
 0xae3   :  { %7187 = vmatpush1.bf16.msra.mxu1 %v8800_v27  ;;  %7218 = vmatprep.mubr.bf16.mxu1 %v10157_v41  ;;  %v8894_v27 = vcombine.low %v5535_v30, %v5543_v57  ;;  %v8913_v4 = vcombine.high %v5552_v3, %v5560_v17  ;;  %v5631_v57 = vld [vmem:[#allocation10 + $0x620] sm:$0xff] }
 0xae4   :  { %7145 = vmatprep.subr.bf16.mxu0 %v8815_v19  ;;  %7188 = vmatprep.subr.bf16.mxu1 %v8817_v20  ;;  %v8896_v19 = vcombine.low %v5536_v5, %v5544_v6  ;;  %v8911_v20 = vcombine.high %v5551_v12, %v5559_v16  ;;  %v5639_v5 = vld [vmem:[#allocation10 + $0x660] sm:$0xff]  ;;  %v5632_v6 = vld [vmem:[#allocation10 + $0x628] sm:$0xff] }
 0xae6   :  { %7146 = vmatpush1.bf16.msra.mxu0 %v8814_v32  ;;  %v5576_v32 = vld [vmem:[#allocation10 + $0x468] sm:$0xff] }
 0xae7   :  { %7189 = vmatpush1.bf16.msra.mxu1 %v8816_v33  ;;  %7147 = vmatprep.subr.bf16.mxu0 %v8831_v58  ;;  %v8910_v33 = vcombine.low %v5551_v12, %v5559_v16  ;;  %v8912_v58 = vcombine.low %v5552_v3, %v5560_v17  ;;  %v8929_v37 = vcombine.high %v5568_v24, %v5576_v32  ;;  %v5647_v16 = vld [vmem:[#allocation10 + $0x6a0] sm:$0xff]  ;;  %v5648_v17 = vld [vmem:[#allocation10 + $0x6a8] sm:$0xff] }
 0xae8   :  { %7190 = vmatprep.subr.bf16.mxu1 %v8833_v28  ;;  %v8927_v28 = vcombine.high %v5567_v21, %v5575_v22  ;;  %v5655_v3 = vld [vmem:[#allocation10 + $0x6e0] sm:$0xff] }
 0xaea   :  { %7148 = vmatpush1.bf16.msra.mxu0 %v8830_v42  ;;  %v5592_v42 = vld [vmem:[#allocation10 + $0x4e8] sm:$0xff] }
 0xaeb   :  { %7191 = vmatpush1.bf16.msra.mxu1 %v8832_v43  ;;  %7149 = vmatprep.subr.bf16.mxu0 %v8847_v44  ;;  %v8926_v43 = vcombine.low %v5567_v21, %v5575_v22  ;;  %v8928_v44 = vcombine.low %v5568_v24, %v5576_v32  ;;  %v8945_v45 = vcombine.high %v5584_v38, %v5592_v42  ;;  %v5663_v22 = vld [vmem:[#allocation10 + $0x720] sm:$0xff]  ;;  %v5664_v32 = vld [vmem:[#allocation10 + $0x728] sm:$0xff] }
 0xaec   :  { %7192 = vmatprep.subr.bf16.mxu1 %v8849_v0  ;;  %v8943_v0 = vcombine.high %v5583_v36, %v5591_v39  ;;  %v5671_v24 = vld [vmem:[#allocation10 + $0x760] sm:$0xff] }
 0xaee   :  { %7150 = vmatpush1.bf16.msra.mxu0 %v8846_v26  ;;  %v5608_v26 = vld [vmem:[#allocation10 + $0x568] sm:$0xff] }
 0xaef   :  { %7193 = vmatpush1.bf16.msra.mxu1 %v8848_v40  ;;  %7151 = vmatprep.subr.bf16.mxu0 %v8863_v34  ;;  %v8942_v40 = vcombine.low %v5583_v36, %v5591_v39  ;;  %v8944_v34 = vcombine.low %v5584_v38, %v5592_v42  ;;  %v8961_v50 = vcombine.high %v5600_v18, %v5608_v26  ;;  %v5679_v39 = vld [vmem:[#allocation10 + $0x7a0] sm:$0xff]  ;;  %v5680_v42 = vld [vmem:[#allocation10 + $0x7a8] sm:$0xff] }
 0xaf0   :  { %7194 = vmatprep.subr.bf16.mxu1 %v8865_v47  ;;  %v8959_v47 = vcombine.high %v5599_v46, %v5607_v25  ;;  %v5687_v38 = vld [vmem:[#allocation10 + $0x7e0] sm:$0xff] }
 0xaf2   :  { %7152 = vmatpush1.bf16.msra.mxu0 %v8862_v62  ;;  %v5624_v62 = vld [vmem:[#allocation10 + $0x5e8] sm:$0xff] }
 0xaf3   :  { %7195 = vmatpush1.bf16.msra.mxu1 %v8864_v55  ;;  %7153 = vmatprep.subr.bf16.mxu0 %v8879_v52  ;;  %v8958_v55 = vcombine.low %v5599_v46, %v5607_v25  ;;  %v8960_v52 = vcombine.low %v5600_v18, %v5608_v26  ;;  %v8977_v30 = vcombine.high %v5616_v61, %v5624_v62  ;;  %v5441_v25 = vld [vmem:[#allocation10 + $0x30] sm:$0xff]  ;;  %v5442_v26 = vld [vmem:[#allocation10 + $0x38] sm:$0xff] }
 0xaf4   :  { %7196 = vmatprep.subr.bf16.mxu1 %v8881_v2  ;;  %v8975_v2 = vcombine.high %v5615_v49, %v5623_v51  ;;  %v5449_v18 = vld [vmem:[#allocation10 + $0x70] sm:$0xff] }
 0xaf6   :  { %7154 = vmatpush1.bf16.msra.mxu0 %v8878_v8  ;;  %v5640_v8 = vld [vmem:[#allocation10 + $0x668] sm:$0xff] }
 0xaf7   :  { %7197 = vmatpush1.bf16.msra.mxu1 %v8880_v9  ;;  %7155 = vmatprep.subr.bf16.mxu0 %v8895_v10  ;;  %v8974_v9 = vcombine.low %v5615_v49, %v5623_v51  ;;  %v8976_v10 = vcombine.low %v5616_v61, %v5624_v62  ;;  %v8993_v12 = vcombine.high %v5632_v6, %v5640_v8  ;;  %v5457_v51 = vld [vmem:[#allocation10 + $0xb0] sm:$0xff] }
 0xaf8   :  { %7198 = vmatprep.subr.bf16.mxu1 %v8897_v11  ;;  %v8991_v11 = vcombine.high %v5631_v57, %v5639_v5  ;;  %v5465_v61 = vld [vmem:[#allocation10 + $0xf0] sm:$0xff]  ;;  %v8802_v62 = vcombine.low %v5441_v25, %v5449_v18 }
 0xafa   :  { %7156 = vmatpush1.bf16.msra.mxu0 %v8894_v27  ;;  %v5656_v27 = vld [vmem:[#allocation10 + $0x6e8] sm:$0xff] }
 0xafb   :  { %7199 = vmatpush1.bf16.msra.mxu1 %v8896_v19  ;;  %7157 = vmatprep.subr.bf16.mxu0 %v8911_v20  ;;  %v8990_v19 = vcombine.low %v5631_v57, %v5639_v5  ;;  %v8992_v20 = vcombine.low %v5632_v6, %v5640_v8  ;;  %v9009_v21 = vcombine.high %v5648_v17, %v5656_v27  ;;  %v5473_v57 = vld [vmem:[#allocation10 + $0x130] sm:$0xff]  ;;  %v5474_v8 = vld [vmem:[#allocation10 + $0x138] sm:$0xff] }
 0xafc   :  { %7200 = vmatprep.subr.bf16.mxu1 %v8913_v4  ;;  %v9007_v4 = vcombine.high %v5647_v16, %v5655_v3  ;;  %v5481_v5 = vld [vmem:[#allocation10 + $0x170] sm:$0xff] }
 0xafe   :  { %7158 = vmatpush1.bf16.msra.mxu0 %v8910_v33  ;;  %v5672_v33 = vld [vmem:[#allocation10 + $0x768] sm:$0xff] }
 0xaff   :  { %7201 = vmatpush1.bf16.msra.mxu1 %v8912_v58  ;;  %7159 = vmatprep.subr.bf16.mxu0 %v8927_v28  ;;  %v9006_v58 = vcombine.low %v5647_v16, %v5655_v3  ;;  %v9008_v28 = vcombine.low %v5648_v17, %v5656_v27  ;;  %v9025_v36 = vcombine.high %v5664_v32, %v5672_v33  ;;  %v5489_v3 = vld [vmem:[#allocation10 + $0x1b0] sm:$0xff]  ;;  %v5490_v27 = vld [vmem:[#allocation10 + $0x1b8] sm:$0xff] }
 0xb00   :  { %7202 = vmatprep.subr.bf16.mxu1 %v8929_v37  ;;  %v9023_v37 = vcombine.high %v5663_v22, %v5671_v24  ;;  %v5497_v17 = vld [vmem:[#allocation10 + $0x1f0] sm:$0xff] }
 0xb02   :  { %7160 = vmatpush1.bf16.msra.mxu0 %v8926_v43  ;;  %v5688_v43 = vld [vmem:[#allocation10 + $0x7e8] sm:$0xff] }
 0xb03   :  { %7203 = vmatpush1.bf16.msra.mxu1 %v8928_v44  ;;  %7161 = vmatprep.subr.bf16.mxu0 %v8943_v0  ;;  %v9022_v44 = vcombine.low %v5663_v22, %v5671_v24  ;;  %v9024_v0 = vcombine.low %v5664_v32, %v5672_v33  ;;  %v9041_v46 = vcombine.high %v5680_v42, %v5688_v43  ;;  %v5505_v24 = vld [vmem:[#allocation10 + $0x230] sm:$0xff]  ;;  %v5506_v33 = vld [vmem:[#allocation10 + $0x238] sm:$0xff] }
 0xb04   :  { %7204 = vmatprep.subr.bf16.mxu1 %v8945_v45  ;;  %v9039_v45 = vcombine.high %v5679_v39, %v5687_v38  ;;  %v5513_v32 = vld [vmem:[#allocation10 + $0x270] sm:$0xff] }
 0xb06   :  { %7162 = vmatpush1.bf16.msra.mxu0 %v8942_v40  ;;  %v5450_v40 = vld [vmem:[#allocation10 + $0x78] sm:$0xff] }
 0xb07   :  { %7205 = vmatpush1.bf16.msra.mxu1 %v8944_v34  ;;  %7163 = vmatprep.subr.bf16.mxu0 %v8959_v47  ;;  %v9038_v34 = vcombine.low %v5679_v39, %v5687_v38  ;;  %v9040_v47 = vcombine.low %v5680_v42, %v5688_v43  ;;  %v8805_v49 = vcombine.high %v5442_v26, %v5450_v40  ;;  %v5521_v39 = vld [vmem:[#allocation10 + $0x2b0] sm:$0xff]  ;;  %v5522_v42 = vld [vmem:[#allocation10 + $0x2b8] sm:$0xff] }
 0xb08   :  { %7206 = vmatprep.subr.bf16.mxu1 %v8961_v50  ;;  %v8803_v50 = vcombine.high %v5441_v25, %v5449_v18  ;;  %v5529_v38 = vld [vmem:[#allocation10 + $0x2f0] sm:$0xff]  ;;  %v5530_v43 = vld [vmem:[#allocation10 + $0x2f8] sm:$0xff] }
 0xb09   :  { %v5537_v25 = vld [vmem:[#allocation10 + $0x330] sm:$0xff] }
 0xb0a   :  { %7164 = vmatpush1.bf16.msra.mxu0 %v8958_v55  ;;  %v5458_v55 = vld [vmem:[#allocation10 + $0xb8] sm:$0xff]  ;;  %v5545_v18 = vld [vmem:[#allocation10 + $0x370] sm:$0xff] }
 0xb0b   :  { %7207 = vmatpush1.bf16.msra.mxu1 %v8960_v52  ;;  %7165 = vmatprep.subr.bf16.mxu0 %v8975_v2  ;;  %v5466_v52 = vld [vmem:[#allocation10 + $0xf8] sm:$0xff]  ;;  %v8804_v2 = vcombine.low %v5442_v26, %v5450_v40 }
 0xb0c   :  { %7208 = vmatprep.subr.bf16.mxu1 %v8977_v30  ;;  %v8819_v30 = vcombine.high %v5457_v51, %v5465_v61  ;;  %v8821_v6 = vcombine.high %v5458_v55, %v5466_v52  ;;  %v5538_v26 = vld [vmem:[#allocation10 + $0x338] sm:$0xff] }
 0xb0d   :  { %v5546_v40 = vld [vmem:[#allocation10 + $0x378] sm:$0xff] }
 0xb0e   :  { %7166 = vmatpush1.bf16.msra.mxu0 %v8974_v9  ;;  %v5482_v9 = vld [vmem:[#allocation10 + $0x178] sm:$0xff] }
 0xb0f   :  { %7209 = vmatpush1.bf16.msra.mxu1 %v8976_v10  ;;  %7167 = vmatprep.subr.bf16.mxu0 %v8991_v11  ;;  %v8818_v10 = vcombine.low %v5457_v51, %v5465_v61  ;;  %v8820_v11 = vcombine.low %v5458_v55, %v5466_v52  ;;  %v8837_v16 = vcombine.high %v5474_v8, %v5482_v9  ;;  %v5553_v51 = vld [vmem:[#allocation10 + $0x3b0] sm:$0xff]  ;;  %v5562_v55 = vld [vmem:[#allocation10 + $0x3f8] sm:$0xff] }
 0xb10   :  { %7210 = vmatprep.subr.bf16.mxu1 %v8993_v12  ;;  %v8835_v12 = vcombine.high %v5473_v57, %v5481_v5  ;;  %v5561_v61 = vld [vmem:[#allocation10 + $0x3f0] sm:$0xff]  ;;  %v8898_v52 = vcombine.low %v5537_v25, %v5545_v18 }
 0xb12   :  { %7168 = vmatpush1.bf16.msra.mxu0 %v8990_v19  ;;  %v5498_v19 = vld [vmem:[#allocation10 + $0x1f8] sm:$0xff] }
 0xb13   :  { %7211 = vmatpush1.bf16.msra.mxu1 %v8992_v20  ;;  %7169 = vmatprep.subr.bf16.mxu0 %v9007_v4  ;;  %v8834_v20 = vcombine.low %v5473_v57, %v5481_v5  ;;  %v8836_v4 = vcombine.low %v5474_v8, %v5482_v9  ;;  %v8853_v22 = vcombine.high %v5490_v27, %v5498_v19  ;;  %v5569_v5 = vld [vmem:[#allocation10 + $0x430] sm:$0xff]  ;;  %v5570_v8 = vld [vmem:[#allocation10 + $0x438] sm:$0xff] }
 0xb14   :  { %7212 = vmatprep.subr.bf16.mxu1 %v9009_v21  ;;  %v8851_v21 = vcombine.high %v5489_v3, %v5497_v17  ;;  %v5578_v9 = vld [vmem:[#allocation10 + $0x478] sm:$0xff] }
 0xb16   :  { %7170 = vmatpush1.bf16.msra.mxu0 %v9006_v58  ;;  %v5514_v58 = vld [vmem:[#allocation10 + $0x278] sm:$0xff] }
 0xb17   :  { %7213 = vmatpush1.bf16.msra.mxu1 %v9008_v28  ;;  %7171 = vmatprep.subr.bf16.mxu0 %v9023_v37  ;;  %v8852_v28 = vcombine.low %v5490_v27, %v5498_v19  ;;  %v8867_v37 = vcombine.high %v5505_v24, %v5513_v32  ;;  %v5586_v27 = vld [vmem:[#allocation10 + $0x4b8] sm:$0xff] }
 0xb18   :  { %7214 = vmatprep.subr.bf16.mxu1 %v9025_v36  ;;  %v8869_v36 = vcombine.high %v5506_v33, %v5514_v58  ;;  %v5594_v19 = vld [vmem:[#allocation10 + $0x4f8] sm:$0xff] }
 0xb1a   :  { %7172 = vmatpush1.bf16.msra.mxu0 %v9022_v44  ;;  %v8866_v44 = vcombine.low %v5505_v24, %v5513_v32  ;;  %v5601_v24 = vld [vmem:[#allocation10 + $0x530] sm:$0xff] }
 0xb1b   :  { %7215 = vmatpush1.bf16.msra.mxu1 %v9024_v0  ;;  %7173 = vmatprep.subr.bf16.mxu0 %v9039_v45  ;;  %v8868_v0 = vcombine.low %v5506_v33, %v5514_v58  ;;  %v8883_v45 = vcombine.high %v5521_v39, %v5529_v38  ;;  %v5609_v32 = vld [vmem:[#allocation10 + $0x570] sm:$0xff]  ;;  %v5602_v33 = vld [vmem:[#allocation10 + $0x538] sm:$0xff] }
 0xb1c   :  { %7216 = vmatprep.subr.bf16.mxu1 %v9041_v46  ;;  %v8885_v46 = vcombine.high %v5522_v42, %v5530_v43  ;;  %v5610_v58 = vld [vmem:[#allocation10 + $0x578] sm:$0xff] }
 0xb1e   :  { %7174 = vmatpush1.bf16.msra.mxu0 %v9038_v34  ;;  %v8882_v34 = vcombine.low %v5521_v39, %v5529_v38  ;;  %v5617_v39 = vld [vmem:[#allocation10 + $0x5b0] sm:$0xff] }
 0xb1f   :  { %7217 = vmatpush1.bf16.msra.mxu1 %v9040_v47  ;;  %7229 = vmatprep.subr.bf16.mxu0 %v8803_v50  ;;  %v8884_v47 = vcombine.low %v5522_v42, %v5530_v43  ;;  %v8899_v50 = vcombine.high %v5537_v25, %v5545_v18  ;;  %v5625_v38 = vld [vmem:[#allocation10 + $0x5f0] sm:$0xff]  ;;  %v5618_v42 = vld [vmem:[#allocation10 + $0x5b8] sm:$0xff] }
 0xb20   :  { %7272 = vmatprep.subr.bf16.mxu1 %v8805_v49  ;;  %v8901_v49 = vcombine.high %v5538_v26, %v5546_v40  ;;  %v5626_v43 = vld [vmem:[#allocation10 + $0x5f8] sm:$0xff]  ;;  %v5633_v25 = vld [vmem:[#allocation10 + $0x630] sm:$0xff] }
 0xb21   :  { %7176 = vmatmul.mubr.bf16.vlgmr.msra.gmra.mrb[72].mxu0 %v10155_v35  ;;  %v5641_v18 = vld [vmem:[#allocation10 + $0x670] sm:$0xff] }
 0xb22   :  { %7219 = vmatmul.mubr.bf16.vlgmr.msra.gmra.mrb[96].mxu1 %v10155_v35  ;;  %7230 = vmatpush1.bf16.msra.mxu0 %v8802_v62  ;;  %v5554_v62 = vld [vmem:[#allocation10 + $0x3b8] sm:$0xff] }
 0xb23   :  { %7261 = vmatprep.mubr.bf16.mxu0 %v10157_v41  ;;  %7273 = vmatpush1.bf16.msra.mxu1 %v8804_v2  ;;  %v8900_v2 = vcombine.low %v5538_v26, %v5546_v40  ;;  %v8917_v57 = vcombine.high %v5554_v62, %v5562_v55  ;;  %v5634_v26 = vld [vmem:[#allocation10 + $0x638] sm:$0xff] }
 0xb24   :  { %7304 = vmatprep.mubr.bf16.mxu1 %v10157_v41  ;;  %7231 = vmatprep.subr.bf16.mxu0 %v8819_v30  ;;  %v8850_v41 = vcombine.low %v5489_v3, %v5497_v17  ;;  %v8915_v30 = vcombine.high %v5553_v51, %v5561_v61  ;;  %v5585_v3 = vld [vmem:[#allocation10 + $0x4b0] sm:$0xff]  ;;  %v5642_v40 = vld [vmem:[#allocation10 + $0x678] sm:$0xff] }
 0xb25   :  { %7274 = vmatprep.subr.bf16.mxu1 %v8821_v6  ;;  %v5577_v6 = vld [vmem:[#allocation10 + $0x470] sm:$0xff] }
 0xb26   :  { %7232 = vmatpush1.bf16.msra.mxu0 %v8818_v10  ;;  %v8914_v10 = vcombine.low %v5553_v51, %v5561_v61  ;;  %v5593_v17 = vld [vmem:[#allocation10 + $0x4f0] sm:$0xff] }
 0xb27   :  { %7275 = vmatpush1.bf16.msra.mxu1 %v8820_v11  ;;  %7233 = vmatprep.subr.bf16.mxu0 %v8835_v12  ;;  %v8916_v11 = vcombine.low %v5554_v62, %v5562_v55  ;;  %v8931_v12 = vcombine.high %v5569_v5, %v5577_v6  ;;  %v5649_v51 = vld [vmem:[#allocation10 + $0x6b0] sm:$0xff]  ;;  %v5650_v62 = vld [vmem:[#allocation10 + $0x6b8] sm:$0xff] }
 0xb28   :  { %7276 = vmatprep.subr.bf16.mxu1 %v8837_v16  ;;  %v8933_v16 = vcombine.high %v5570_v8, %v5578_v9  ;;  %v5657_v61 = vld [vmem:[#allocation10 + $0x6f0] sm:$0xff]  ;;  %v5658_v55 = vld [vmem:[#allocation10 + $0x6f8] sm:$0xff] }
 0xb2a   :  { %7234 = vmatpush1.bf16.msra.mxu0 %v8834_v20  ;;  %v8930_v20 = vcombine.low %v5569_v5, %v5577_v6  ;;  %v5665_v5 = vld [vmem:[#allocation10 + $0x730] sm:$0xff] }
 0xb2b   :  { %7277 = vmatpush1.bf16.msra.mxu1 %v8836_v4  ;;  %7235 = vmatprep.subr.bf16.mxu0 %v8851_v21  ;;  %v8932_v4 = vcombine.low %v5570_v8, %v5578_v9  ;;  %v8947_v21 = vcombine.high %v5585_v3, %v5593_v17  ;;  %v5673_v6 = vld [vmem:[#allocation10 + $0x770] sm:$0xff]  ;;  %v5666_v8 = vld [vmem:[#allocation10 + $0x738] sm:$0xff] }
 0xb2c   :  { %7278 = vmatprep.subr.bf16.mxu1 %v8853_v22  ;;  %v8949_v22 = vcombine.high %v5586_v27, %v5594_v19  ;;  %v5674_v9 = vld [vmem:[#allocation10 + $0x778] sm:$0xff] }
 0xb2e   :  { %7236 = vmatpush1.bf16.msra.mxu0 %v8850_v41  ;;  %v8946_v41 = vcombine.low %v5585_v3, %v5593_v17  ;;  %v5681_v3 = vld [vmem:[#allocation10 + $0x7b0] sm:$0xff] }
 0xb2f   :  { %7279 = vmatpush1.bf16.msra.mxu1 %v8852_v28  ;;  %7237 = vmatprep.subr.bf16.mxu0 %v8867_v37  ;;  %v8948_v28 = vcombine.low %v5586_v27, %v5594_v19  ;;  %v8963_v37 = vcombine.high %v5601_v24, %v5609_v32  ;;  %v5689_v17 = vld [vmem:[#allocation10 + $0x7f0] sm:$0xff]  ;;  %v5682_v27 = vld [vmem:[#allocation10 + $0x7b8] sm:$0xff] }
 0xb30   :  { %7280 = vmatprep.subr.bf16.mxu1 %v8869_v36  ;;  %v8965_v36 = vcombine.high %v5602_v33, %v5610_v58  ;;  %v5690_v19 = vld [vmem:[#allocation10 + $0x7f8] sm:$0xff] }
 0xb32   :  { %7238 = vmatpush1.bf16.msra.mxu0 %v8866_v44  ;;  %v8962_v44 = vcombine.low %v5601_v24, %v5609_v32  ;;  %v9042_v24 = vcombine.low %v5681_v3, %v5689_v17  ;;  %v9044_v32 = vcombine.low %v5682_v27, %v5690_v19 }
 0xb33   :  { %7281 = vmatpush1.bf16.msra.mxu1 %v8868_v0  ;;  %7239 = vmatprep.subr.bf16.mxu0 %v8883_v45  ;;  %v8964_v0 = vcombine.low %v5602_v33, %v5610_v58  ;;  %v8979_v45 = vcombine.high %v5617_v39, %v5625_v38 }
 0xb34   :  { %7282 = vmatprep.subr.bf16.mxu1 %v8885_v46  ;;  %v8981_v46 = vcombine.high %v5618_v42, %v5626_v43 }
 0xb36   :  { %7240 = vmatpush1.bf16.msra.mxu0 %v8882_v34  ;;  %v8978_v34 = vcombine.low %v5617_v39, %v5625_v38 }
 0xb37   :  { %7283 = vmatpush1.bf16.msra.mxu1 %v8884_v47  ;;  %7241 = vmatprep.subr.bf16.mxu0 %v8899_v50  ;;  %v8980_v47 = vcombine.low %v5618_v42, %v5626_v43  ;;  %v8995_v50 = vcombine.high %v5633_v25, %v5641_v18 }
 0xb38   :  { %7284 = vmatprep.subr.bf16.mxu1 %v8901_v49  ;;  %v8997_v49 = vcombine.high %v5634_v26, %v5642_v40 }
 0xb3a   :  { %7242 = vmatpush1.bf16.msra.mxu0 %v8898_v52  ;;  %v8994_v52 = vcombine.low %v5633_v25, %v5641_v18 }
 0xb3b   :  { %7285 = vmatpush1.bf16.msra.mxu1 %v8900_v2  ;;  %7243 = vmatprep.subr.bf16.mxu0 %v8915_v30  ;;  %v8996_v2 = vcombine.low %v5634_v26, %v5642_v40  ;;  %v9011_v30 = vcombine.high %v5649_v51, %v5657_v61 }
 0xb3c   :  { %7286 = vmatprep.subr.bf16.mxu1 %v8917_v57  ;;  %v9013_v57 = vcombine.high %v5650_v62, %v5658_v55 }
 0xb3e   :  { %7244 = vmatpush1.bf16.msra.mxu0 %v8914_v10  ;;  %v9010_v10 = vcombine.low %v5649_v51, %v5657_v61 }
 0xb3f   :  { %7287 = vmatpush1.bf16.msra.mxu1 %v8916_v11  ;;  %7245 = vmatprep.subr.bf16.mxu0 %v8931_v12  ;;  %v9012_v11 = vcombine.low %v5650_v62, %v5658_v55  ;;  %v9027_v12 = vcombine.high %v5665_v5, %v5673_v6 }
 0xb40   :  { %7288 = vmatprep.subr.bf16.mxu1 %v8933_v16  ;;  %v9029_v16 = vcombine.high %v5666_v8, %v5674_v9 }
 0xb42   :  { %7246 = vmatpush1.bf16.msra.mxu0 %v8930_v20  ;;  %v9026_v20 = vcombine.low %v5665_v5, %v5673_v6  ;;  %v9395_v5 = vld [vmem:[#allocation11 + $0x40] sm:$0xff]  }
 0xb43   :  { %7289 = vmatpush1.bf16.msra.mxu1 %v8932_v4  ;;  %7247 = vmatprep.subr.bf16.mxu0 %v8947_v21  ;;  %v9028_v4 = vcombine.low %v5666_v8, %v5674_v9  ;;  %v9043_v21 = vcombine.high %v5681_v3, %v5689_v17  ;;  %v9396_v6 = vld [vmem:[#allocation11] sm:$0xff]   ;;  %v9397_v8 = vld [vmem:[#allocation11 + $0x48] sm:$0xff]  }
 0xb44   :  { %7290 = vmatprep.subr.bf16.mxu1 %v8949_v22  ;;  %v9045_v22 = vcombine.high %v5682_v27, %v5690_v19  ;;  %v9398_v9 = vld [vmem:[#allocation11 + $0x8] sm:$0xff]   ;;  %v9404_v3 = vld [vmem:[#allocation11 + $0x20] sm:$0xff]  }
 0xb45   :  { %v9405_v17 = vld [vmem:[#allocation11 + $0x68] sm:$0xff]  }
 0xb46   :  { %7248 = vmatpush1.bf16.msra.mxu0 %v8946_v41  ;;  %v9406_v27 = vld [vmem:[#allocation11 + $0x28] sm:$0xff]  }
 0xb47   :  { %7291 = vmatpush1.bf16.msra.mxu1 %v8948_v28  ;;  %7249 = vmatprep.subr.bf16.mxu0 %v8963_v37 }
 0xb48   :  { %7292 = vmatprep.subr.bf16.mxu1 %v8965_v36 }
 0xb4a   :  { %7250 = vmatpush1.bf16.msra.mxu0 %v8962_v44 }
 0xb4b   :  { %7293 = vmatpush1.bf16.msra.mxu1 %v8964_v0  ;;  %7251 = vmatprep.subr.bf16.mxu0 %v8979_v45 }
 0xb4c   :  { %7294 = vmatprep.subr.bf16.mxu1 %v8981_v46 }
 0xb4e   :  { %7252 = vmatpush1.bf16.msra.mxu0 %v8978_v34 }
 0xb4f   :  { %7295 = vmatpush1.bf16.msra.mxu1 %v8980_v47  ;;  %7253 = vmatprep.subr.bf16.mxu0 %v8995_v50 }
 0xb50   :  { %7296 = vmatprep.subr.bf16.mxu1 %v8997_v49 }
 0xb52   :  { %7254 = vmatpush1.bf16.msra.mxu0 %v8994_v52 }
 0xb53   :  { %7297 = vmatpush1.bf16.msra.mxu1 %v8996_v2  ;;  %7255 = vmatprep.subr.bf16.mxu0 %v9011_v30 }
 0xb54   :  { %7298 = vmatprep.subr.bf16.mxu1 %v9013_v57 }
 0xb56   :  { %7256 = vmatpush1.bf16.msra.mxu0 %v9010_v10  ;;  %v9399_v10 = vld [vmem:[#allocation11 + $0x50] sm:$0xff]  }
 0xb57   :  { %7299 = vmatpush1.bf16.msra.mxu1 %v9012_v11  ;;  %7257 = vmatprep.subr.bf16.mxu0 %v9027_v12  ;;  %v9401_v12 = vld [vmem:[#allocation11 + $0x58] sm:$0xff]  }
 0xb58   :  { %7300 = vmatprep.subr.bf16.mxu1 %v9029_v16  ;;  %v9403_v16 = vld [vmem:[#allocation11 + $0x60] sm:$0xff]  }
 0xb5a   :  { %7258 = vmatpush1.bf16.msra.mxu0 %v9026_v20 }
 0xb5b   :  { %7301 = vmatpush1.bf16.msra.mxu1 %v9028_v4  ;;  %7259 = vmatprep.subr.bf16.mxu0 %v9043_v21 }
 0xb5c   :  { %7302 = vmatprep.subr.bf16.mxu1 %v9045_v22 }
 0xb5e   :  { %7260 = vmatpush1.bf16.msra.mxu0 %v9042_v24 }
 0xb5f   :  { %7303 = vmatpush1.bf16.msra.mxu1 %v9044_v32 }
 0xb60   :  { %9155 = vmatprep.subr.bf16.mxu1 %v9395_v5 }
 0xb61   :  { %7262 = vmatmul.mubr.bf16.vlgmr.msra.gmra.mrb[76].mxu0 %v10155_v35 }
 0xb62   :  { %7305 = vmatmul.mubr.bf16.vlgmr.msra.gmra.mrb[100].mxu1 %v10155_v35  ;;  %7367 = vmatprep.mubr.bf16.mxu0 %v9616_v31 }
 0xb63   :  { %9156 = vmatpush3.bf16.msra.mxu1 %v9396_v6 }
 0xb64   :  { %9157 = vmatprep.subr.bf16.mxu1 %v9397_v8 }
 0xb67   :  { %9158 = vmatpush3.bf16.msra.mxu1 %v9398_v9 }
 0xb68   :  { %9159 = vmatprep.subr.bf16.mxu1 %v9399_v10 }
 0xb74   :  { %v7005_v33 = vpop.f32.mrb[64].mxu0  ;;  %v7048_v58 = vpop.f32.mrb[88].mxu1 }
 0xb75   :  { %v7007_v41 = vpop.f32.mrb[65].mxu0  ;;  %v7050_v28 = vpop.f32.mrb[89].mxu1 }
 0xb76   :  { %v7009_v37 = vpop.f32.mrb[66].mxu0  ;;  %v7052_v36 = vpop.f32.mrb[90].mxu1 }
 0xb77   :  { %v7315_v39 = vpack.c.bf16 %v7009_v37, %v7005_v33  ;;  %v7317_v38 = vpack.c.bf16 %v7052_v36, %v7048_v58  ;;  %v7011_v42 = vpop.f32.mrb[67].mxu0  ;;  %v7054_v43 = vpop.f32.mrb[91].mxu1 }
 0xb78   :  { %v7316_v44 = vpack.c.bf16 %v7011_v42, %v7007_v41  ;;  %v7318_v0 = vpack.c.bf16 %v7054_v43, %v7050_v28 }
 0xb79   :  { %v7442_v30 = vand.u32 %v7315_v39, %v9946_v53  ;;  %v7448_v11 = vand.u32 %v7317_v38, %v9946_v53 }
 0xb7a   :  { %v7445_v2 = vand.u32 %v7316_v44, %v9946_v53  ;;  %v7451_v57 = vand.u32 %v7318_v0, %v9946_v53 }
 0xbb4   :  { %v7091_v45 = vpop.f32.mrb[68].mxu0  ;;  %v7134_v46 = vpop.f32.mrb[92].mxu1 }
 0xbb5   :  { %v7093_v25 = vpop.f32.mrb[69].mxu0  ;;  %v7136_v18 = vpop.f32.mrb[93].mxu1 }
 0xbb6   :  { %v7095_v26 = vpop.f32.mrb[70].mxu0  ;;  %v7138_v35 = vpop.f32.mrb[94].mxu1 }
 0xbb7   :  { %v7319_v40 = vpack.c.bf16 %v7095_v26, %v7091_v45  ;;  %v7321_v34 = vpack.c.bf16 %v7138_v35, %v7134_v46  ;;  %v7097_v47 = vpop.f32.mrb[71].mxu0  ;;  %v7140_v50 = vpop.f32.mrb[95].mxu1 }
 0xbb8   :  { %v7320_v49 = vpack.c.bf16 %v7097_v47, %v7093_v25  ;;  %v7322_v51 = vpack.c.bf16 %v7140_v50, %v7136_v18  ;;  %v9408_v50 = vld [vmem:[#allocation11 + $0x30] sm:$0xff]  }
 0xbb9   :  { %v7324_v62 = vand.u32 %v7319_v40, %v9946_v53  ;;  %v7330_v52 = vand.u32 %v7321_v34, %v9946_v53 }
 0xbba   :  { %v7327_v61 = vand.u32 %v7320_v49, %v9946_v53  ;;  %v7333_v55 = vand.u32 %v7322_v51, %v9946_v53  ;;  %v9409_v49 = vld [vmem:[#allocation11 + $0x78] sm:$0xff]  }
 0xbbb   :  { %v9410_v51 = vld [vmem:[#allocation11 + $0x38] sm:$0xff]  }
 0xbbc   :  { %7335 = vmatprep.subr.bf16.mxu0 %v7327_v61  ;;  %v9411_v61 = vld [vmem:[#allocation11 + $0xc0] sm:$0xff]  }
 0xbbd   :  { %7336 = vmatpush1.bf16.msra.mxu0 %v7324_v62  ;;  %v7835_v62 = vld [vmem:[%s10273_s7] sm:$0xf] }
 0xbbe   :  { %7388 = vmatprep.subr.bf16.mxu0 %v7333_v55 }
 0xbc0   :  { %9046 = vmatmul.mubr.msk.bf16.vlgmr.msra.gmra.mrb[80].mxu0 %vm3278_vm14, %v9864_v54 }
 0xbc1   :  { %7389 = vmatpush1.bf16.msra.mxu0 %v7330_v52  ;;  %7377 = vmatprep.mubr.bf16.mxu0 %v9616_v31 }
 0xbc2   :  { %7453 = vmatprep.subr.bf16.mxu0 %v7445_v2 }
 0xbc8   :  { %9047 = vmatmul.mubr.msk.bf16.gmra.mrb[84].mxu0 %vm3278_vm14, %v9973_v29 }
 0xbc9   :  { %7420 = vmatprep.mubr.bf16.mxu0 %v9616_v31 }
 0xbd0   :  { %9048 = vmatmul.mubr.msk.bf16.vlgmr.msra.gmra.mrb[88].mxu0 %vm3278_vm14, %v9864_v54  ;;  %v9400_v54 = vld [vmem:[#allocation11 + $0x10] sm:$0xff]  }
 0xbd1   :  { %7454 = vmatpush1.bf16.msra.mxu0 %v7442_v30  ;;  %7430 = vmatprep.mubr.bf16.mxu0 %v9616_v31 }
 0xbd2   :  { %7506 = vmatprep.subr.bf16.mxu0 %v7451_v57  ;;  %9160 = vmatpush3.bf16.msra.mxu1 %v9400_v54 }
 0xbd3   :  { %9161 = vmatprep.subr.bf16.mxu1 %v9401_v12 }
 0xbd8   :  { %9049 = vmatmul.mubr.msk.bf16.gmra.mrb[92].mxu0 %vm3278_vm14, %v9973_v29  ;;  %v9402_v29 = vld [vmem:[#allocation11 + $0x18] sm:$0xff]  }
 0xbd9   :  { %7485 = vmatprep.mubr.bf16.mxu0 %v9616_v31  ;;  %9162 = vmatpush3.bf16.msra.mxu1 %v9402_v29 }
 0xbda   :  { %9163 = vmatprep.subr.bf16.mxu1 %v9403_v16  ;;  %v9412_v16 = vld [vmem:[#allocation11 + $0x80] sm:$0xff]  }
 0xbdd   :  { %9164 = vmatpush3.bf16.msra.mxu1 %v9404_v3 }
 0xbde   :  { %9165 = vmatprep.subr.bf16.mxu1 %v9405_v17  ;;  %v9413_v17 = vld [vmem:[#allocation11 + $0xc8] sm:$0xff]  }
 0xbe0   :  { %9050 = vmatmul.mubr.msk.bf16.vlgmr.msra.gmra.mrb[80].mxu0 %vm3278_vm14, %v9876_v63 }
 0xbe1   :  { %7507 = vmatpush1.bf16.msra.mxu0 %v7448_v11  ;;  %7495 = vmatprep.mubr.bf16.mxu0 %v9616_v31 }
 0xbe2   :  { %9166 = vmatpush3.bf16.msra.mxu1 %v9406_v27 }
 0xbe8   :  { %9051 = vmatmul.mubr.msk.bf16.gmra.mrb[84].mxu0 %vm3278_vm14, %v9990_v14 }
 0xbe9   :  { %7538 = vmatprep.mubr.bf16.mxu0 %v9616_v31 }
 0xbf0   :  { %9052 = vmatmul.mubr.msk.bf16.vlgmr.msra.gmra.mrb[88].mxu0 %vm3278_vm14, %v9876_v63 }
 0xbf1   :  { %7548 = vmatprep.mubr.bf16.mxu0 %v9616_v31 }
 0xbf4   :  { %v7177_v19 = vpop.f32.mrb[72].mxu0 }
 0xbf5   :  { %v7220_v20 = vpop.f32.mrb[96].mxu1  ;;  %v7179_v4 = vpop.f32.mrb[73].mxu0 }
 0xbf6   :  { %v7222_v21 = vpop.f32.mrb[97].mxu1  ;;  %v7181_v22 = vpop.f32.mrb[74].mxu0 }
 0xbf7   :  { %v7559_v24 = vpack.c.bf16 %v7181_v22, %v7177_v19  ;;  %v7224_v32 = vpop.f32.mrb[98].mxu1  ;;  %v7183_v33 = vpop.f32.mrb[75].mxu0 }
 0xbf8   :  { %v7561_v58 = vpack.c.bf16 %v7224_v32, %v7220_v20  ;;  %v7560_v41 = vpack.c.bf16 %v7183_v33, %v7179_v4  ;;  %v7226_v28 = vpop.f32.mrb[99].mxu1  ;;  %9053 = vmatmul.mubr.msk.bf16.gmra.mrb[92].mxu0 %vm3278_vm14, %v9990_v14  ;;  %v7848_v32 = vrot.slane %v7835_v62, %v3840_v56  ;;  %v9415_v33 = vld [vmem:[#allocation11 + $0xd0] sm:$0xff]  }
 0xbf9   :  { %v7562_v37 = vpack.c.bf16 %v7226_v28, %v7222_v21  ;;  %7607 = vmatprep.mubr.bf16.mxu0 %v9616_v31  ;;  %v7564_v36 = vand.u32 %v7559_v24, %v9946_v53  ;;  %v9414_v21 = vld [vmem:[#allocation11 + $0x88] sm:$0xff]   ;;  %v7852_v28 = vrot.slane %v7835_v62, %v3844_v7 }
 0xbfa   :  { %v7567_v63 = vand.u32 %v7560_v41, %v9946_v53  ;;  %v7570_v38 = vand.u32 %v7561_v58, %v9946_v53 }
 0xbfb   :  { %v7573_v39 = vand.u32 %v7562_v37, %v9946_v53 }
 0xbfc   :  { %7575 = vmatprep.subr.bf16.mxu0 %v7567_v63 }
 0xbfd   :  { %7576 = vmatpush1.bf16.msra.mxu0 %v7564_v36 }
 0xbfe   :  { %7628 = vmatprep.subr.bf16.mxu0 %v7573_v39  ;;  %v9416_v39 = vld [vmem:[#allocation11 + $0x90] sm:$0xff]  }
 0xc00   :  { %9054 = vmatmul.mubr.msk.bf16.vlgmr.msra.gmra.mrb[80].mxu0 %vm3278_vm14, %v9893_v15 }
 0xc01   :  { %7629 = vmatpush1.bf16.msra.mxu0 %v7570_v38  ;;  %7617 = vmatprep.mubr.bf16.mxu0 %v9616_v31 }
 0xc08   :  { %9055 = vmatmul.mubr.msk.bf16.gmra.mrb[84].mxu0 %vm3278_vm14, %v10014_v48 }
 0xc09   :  { %7660 = vmatprep.mubr.bf16.mxu0 %v9616_v31 }
 0xc10   :  { %9056 = vmatmul.mubr.msk.bf16.vlgmr.msra.gmra.mrb[88].mxu0 %vm3278_vm14, %v9893_v15 }
 0xc11   :  { %7670 = vmatprep.mubr.bf16.mxu0 %v9616_v31 }
 0xc18   :  { %9057 = vmatmul.mubr.msk.bf16.gmra.mrb[92].mxu0 %vm3278_vm14, %v10014_v48 }
 0xc19   :  { %7745 = vmatprep.mubr.bf16.mxu0 %v9616_v31 }
 0xc34   :  { %v7263_v14 = vpop.f32.mrb[76].mxu0 }
 0xc35   :  { %v7306_v42 = vpop.f32.mrb[100].mxu1  ;;  %v7265_v43 = vpop.f32.mrb[77].mxu0 }
 0xc36   :  { %v7308_v44 = vpop.f32.mrb[101].mxu1  ;;  %v7267_v0 = vpop.f32.mrb[78].mxu0 }
 0xc37   :  { %v7697_v45 = vpack.c.bf16 %v7267_v0, %v7263_v14  ;;  %v7310_v46 = vpop.f32.mrb[102].mxu1  ;;  %v7269_v25 = vpop.f32.mrb[79].mxu0 }
 0xc38   :  { %v7699_v18 = vpack.c.bf16 %v7310_v46, %v7306_v42  ;;  %v7698_v26 = vpack.c.bf16 %v7269_v25, %v7265_v43  ;;  %v7312_v35 = vpop.f32.mrb[103].mxu1  ;;  %v9417_v42 = vld [vmem:[#allocation11 + $0xd8] sm:$0xff]   ;;  %v9419_v25 = vld [vmem:[#allocation11 + $0xe0] sm:$0xff]  }
 0xc39   :  { %v7700_v40 = vpack.c.bf16 %v7312_v35, %v7308_v44  ;;  %v7702_v34 = vand.u32 %v7697_v45, %v9946_v53  ;;  %v9418_v46 = vld [vmem:[#allocation11 + $0x98] sm:$0xff]  }
 0xc3a   :  { %v7705_v15 = vand.u32 %v7698_v26, %v9946_v53  ;;  %v7708_v47 = vand.u32 %v7699_v18, %v9946_v53 }
 0xc3b   :  { %v7711_v48 = vand.u32 %v7700_v40, %v9946_v53  ;;  %v9407_v53 = vld [vmem:[#allocation11 + $0x70] sm:$0xff]  }
 0xc3c   :  { %7713 = vmatprep.subr.bf16.mxu0 %v7705_v15  ;;  %9167 = vmatprep.subr.bf16.mxu1 %v9407_v53  ;;  %v9421_v53 = vld [vmem:[#allocation11 + $0xe8] sm:$0xff]  }
 0xc3d   :  { %7714 = vmatpush1.bf16.msra.mxu0 %v7702_v34  ;;  %9168 = vmatpush3.bf16.msra.mxu1 %v9408_v50  ;;  %v9420_v34 = vld [vmem:[#allocation11 + $0xa0] sm:$0xff]  }
 0xc3e   :  { %7766 = vmatprep.subr.bf16.mxu0 %v7711_v48  ;;  %9169 = vmatprep.subr.bf16.mxu1 %v9409_v49 }
 0xc40   :  { %9058 = vmatmul.mubr.msk.bf16.vlgmr.msra.gmra.mrb[80].mxu0 %vm3278_vm14, %v9908_v23 }
 0xc41   :  { %7767 = vmatpush1.bf16.msra.mxu0 %v7708_v47  ;;  %7755 = vmatprep.mubr.bf16.mxu0 %v9616_v31 }
 0xc42   :  { %9170 = vmatpush3.bf16.msra.mxu1 %v9410_v51 }
 0xc43   :  { %9183 = vmatprep.subr.bf16.mxu1 %v9411_v61 }
 0xc48   :  { %9059 = vmatmul.mubr.msk.bf16.gmra.mrb[84].mxu0 %vm3278_vm14, %v10038_v13 }
 0xc49   :  { %7798 = vmatprep.mubr.bf16.mxu0 %v9616_v31 }
 0xc50   :  { %9060 = vmatmul.mubr.msk.bf16.vlgmr.msra.gmra.mrb[88].mxu0 %vm3278_vm14, %v9908_v23  ;;  %v7840_v23 = vrot.slane %v7835_v62, %v9790_v60 }
 0xc51   :  { %7808 = vmatprep.mubr.bf16.mxu0 %v9616_v31  ;;  %v7844_v31 = vrot.slane %v7835_v62, %v9916_v1 }
 0xc58   :  { %9061 = vmatmul.mubr.msk.bf16.gmra.mrb[92].mxu0 %vm3278_vm14, %v10038_v13 }
 0xd13   :  { %v7747_v55 = vpop.f32.mrb[80].mxu0 }
 0xd14   :  { %v7857_v13 = vadd.f32 %v7840_v23, %v7747_v55  ;;  %v7749_v52 = vpop.f32.mrb[81].mxu0 }
 0xd15   :  { %v7858_v2 = vadd.f32 %v7844_v31, %v7749_v52  ;;  %v7751_v30 = vpop.f32.mrb[82].mxu0 }
 0xd16   :  { %v7861_v57 = vadd.f32 %v7840_v23, %v7751_v30  ;;  %v7753_v5 = vpop.f32.mrb[83].mxu0  ;;  %v7873_v8 = vmax.f32 %v7857_v13, 0.0  ;;  %v9423_v13 = vld [vmem:[#allocation11 + $0xf0] sm:$0xff]  }
 0xd17   :  { %v7862_v6 = vadd.f32 %v7844_v31, %v7753_v5  ;;  %v7874_v10 = vmax.f32 %v7858_v2, 0.0  ;;  %v9424_v5 = vld [vmem:[#allocation11 + $0xb0] sm:$0xff]  }
 0xd18   :  { %v7877_v9 = vmax.f32 %v7861_v57, 0.0 }
 0xd19   :  { %v7878_v11 = vmax.f32 %v7862_v6, 0.0  ;;  %v9425_v6 = vld [vmem:[#allocation11 + $0xf8] sm:$0xff]  }
 0xd1a   :  { %v7889_v54 = vpack.c.bf16 %v7877_v9, %v7873_v8  ;;  %v9426_v8 = vld [vmem:[#allocation11 + $0xb8] sm:$0xff]  }
 0xd1b   :  { %v7890_v12 = vpack.c.bf16 %v7878_v11, %v7874_v10  ;;  %v7757_v29 = vpop.f32.mrb[84].mxu0 }
 0xd1c   :  { %v7865_v3 = vadd.f32 %v7840_v23, %v7757_v29  ;;  %v7759_v60 = vpop.f32.mrb[85].mxu0 }
 0xd1d   :  { %v7866_v1 = vadd.f32 %v7844_v31, %v7759_v60  ;;  %v7761_v27 = vpop.f32.mrb[86].mxu0  ;;  %8192 = vmatprep.mubr.bf16.mxu1 %v7890_v12 }
 0xd1e   :  { %v7869_v19 = vadd.f32 %v7840_v23, %v7761_v27  ;;  %v7763_v20 = vpop.f32.mrb[87].mxu0  ;;  %8193 = vmatmul.mubr.bf16.vlgmr.msra.gmra.mrb[104].mxu1 %v7889_v54  ;;  %v7881_v22 = vmax.f32 %v7865_v3, 0.0  ;;  %v9422_v23 = vld [vmem:[#allocation11 + $0xa8] sm:$0xff]  }
 0xd1f   :  { %v7870_v4 = vadd.f32 %v7844_v31, %v7763_v20  ;;  %9184 = vmatpush3.bf16.msra.mxu1 %v9412_v16  ;;  %v7882_v58 = vmax.f32 %v7866_v1, 0.0 }
 0xd20   :  { %v7885_v24 = vmax.f32 %v7869_v19, 0.0  ;;  %9185 = vmatprep.subr.bf16.mxu1 %v9413_v17  ;;  %v9062_v19 = vld [vmem:[%s10275_s9] ss:$0 sm:$0xff]  ;;  %s9618_s9 = smov [#allocation13]  }
 0xd21   :  { %v7886_v41 = vmax.f32 %v7870_v4, 0.0  ;;  %s8272_s26 = sshll.u32 %s9618_s9, 4  ;;  %s8273_s26 = int_to_ptr.vmem [resolvable:$true] %s8272_s26 }
 0xd22   :  { %v7893_v37 = vpack.c.bf16 %v7885_v24, %v7881_v22  ;;  %s9567_s27 = scalar_lea.vmem %s8273_s26, 1024  ;;  %p9572_p7 = scmp.lt.s32.totalorder %s8273_s26, %s8273_s26 }
 0xd23   :  { %v7894_v63 = vpack.c.bf16 %v7886_v41, %v7882_v58  ;;  %9186 = vmatpush3.bf16.msra.mxu1 %v9414_v21  ;;  %v7800_v36 = vpop.f32.mrb[88].mxu0  ;;  %p9568_p6 = scmp.ne.s32.totalorder %s8273_s26, %s9567_s27  ;;  %p9573_p8 = scmp.lt.s32.totalorder %s9567_s27, %s9567_s27 }
 0xd24   :  { %v7859_v38 = vadd.f32 %v7848_v32, %v7800_v36  ;;  %v7802_v14 = vpop.f32.mrb[89].mxu0  ;;  %9187 = vmatprep.subr.bf16.mxu1 %v9415_v33 }
 0xd25   :  { %v7860_v43 = vadd.f32 %v7852_v28, %v7802_v14  ;;  %v7804_v44 = vpop.f32.mrb[90].mxu0  ;;  %8200 = vmatprep.mubr.bf16.mxu1 %v7894_v63  ;;  %p9574_p9 = por %p9573_p8, %p9572_p7 }
 0xd26   :  { %v7863_v0 = vadd.f32 %v7848_v32, %v7804_v44  ;;  %v7806_v56 = vpop.f32.mrb[91].mxu0  ;;  %8201 = vmatmul.mubr.bf16.gmra.mrb[108].mxu1 %v7893_v37  ;;  %v7875_v59 = vmax.f32 %v7859_v38, 0.0 }
 0xd27   :  { %v7864_v45 = vadd.f32 %v7852_v28, %v7806_v56  ;;  %9188 = vmatpush3.bf16.msra.mxu1 %v9416_v39  ;;  %v7876_v18 = vmax.f32 %v7860_v43, 0.0  ;;  %p9575_p10 = pnand %p9574_p9, %p9568_p6 }
 0xd28   :  { %v7879_v7 = vmax.f32 %v7863_v0, 0.0  ;;  %9189 = vmatprep.subr.bf16.mxu1 %v9417_v42 }
 0xd29   :  { %v7880_v26 = vmax.f32 %v7864_v45, 0.0 }
 0xd2a   :  { %v7891_v35 = vpack.c.bf16 %v7879_v7, %v7875_v59 }
 0xd2b   :  { %v7892_v40 = vpack.c.bf16 %v7880_v26, %v7876_v18  ;;  %9190 = vmatpush3.bf16.msra.mxu1 %v9418_v46  ;;  %v7810_v15 = vpop.f32.mrb[92].mxu0 }
 0xd2c   :  { %v7867_v48 = vadd.f32 %v7848_v32, %v7810_v15  ;;  %v7812_v47 = vpop.f32.mrb[93].mxu0  ;;  %9191 = vmatprep.subr.bf16.mxu1 %v9419_v25 }
 0xd2d   :  { %v7868_v50 = vadd.f32 %v7852_v28, %v7812_v47  ;;  %v7814_v49 = vpop.f32.mrb[94].mxu0  ;;  %8241 = vmatprep.mubr.bf16.mxu1 %v7892_v40 }
 0xd2e   :  { %v7871_v51 = vadd.f32 %v7848_v32, %v7814_v49  ;;  %v7816_v61 = vpop.f32.mrb[95].mxu0  ;;  %v7883_v31 = vmax.f32 %v7867_v48, 0.0 }
 0xd2f   :  { %v7872_v62 = vadd.f32 %v7852_v28, %v7816_v61  ;;  %9192 = vmatpush3.bf16.msra.mxu1 %v9420_v34  ;;  %v7884_v52 = vmax.f32 %v7868_v50, 0.0 }
 0xd30   :  { %v7887_v55 = vmax.f32 %v7871_v51, 0.0  ;;  %9193 = vmatprep.subr.bf16.mxu1 %v9421_v53 }
 0xd31   :  { %v7888_v2 = vmax.f32 %v7872_v62, 0.0 }
 0xd32   :  { %v7895_v30 = vpack.c.bf16 %v7887_v55, %v7883_v31 }
 0xd33   :  { %v7896_v57 = vpack.c.bf16 %v7888_v2, %v7884_v52  ;;  %9194 = vmatpush3.bf16.msra.mxu1 %v9422_v23 }
 0xd34   :  { %9195 = vmatprep.subr.bf16.mxu1 %v9423_v13 }
 0xd37   :  { %9196 = vmatpush3.bf16.msra.mxu1 %v9424_v5 }
 0xd38   :  { %9197 = vmatprep.subr.bf16.mxu1 %v9425_v6 }
 0xd3b   :  { %9198 = vmatpush3.bf16.msra.mxu1 %v9426_v8 }
 0xd3e   :  { %8242 = vmatmul.mubr.bf16.vlgmr.msra.gmra.mrb[112].mxu1 %v7891_v35 }
 0xd3f   :  { %8249 = vmatprep.mubr.bf16.mxu1 %v7896_v57 }
 0xd46   :  { %8250 = vmatmul.mubr.bf16.gmra.mrb[116].mxu1 %v7895_v30 }
 0xdf1   :  { %v9171_v9 = vpop.f32.mrb[104].mxu1 }
 0xdf2   :  { %v9172_v10 = vpop.f32.mrb[105].mxu1 }
 0xdf3   :  { %v9173_v11 = vadd.f32 %v9172_v10, %v9171_v9  ;;  %v9174_v54 = vpop.f32.mrb[106].mxu1 }
 0xdf4   :  { %v9175_v12 = vpop.f32.mrb[107].mxu1 }
 0xdf5   :  { %v9176_v29 = vadd.f32 %v9175_v12, %v9174_v54  ;;  %v8195_v21 = vadd.f32 %v9173_v11, %v9062_v19 }
 0xdf7   :  { %v8198_v33 = vadd.f32 %v9176_v29, %v9062_v19 }
 0xdf9   :  { %v9177_v16 = vpop.f32.mrb[108].mxu1 }
 0xdfa   :  { %v9178_v3 = vpop.f32.mrb[109].mxu1 }
 0xdfb   :  { %v9179_v60 = vadd.f32 %v9178_v3, %v9177_v16  ;;  %v9180_v17 = vpop.f32.mrb[110].mxu1 }
 0xdfc   :  { %v9181_v1 = vpop.f32.mrb[111].mxu1 }
 0xdfd   :  { %v9182_v27 = vadd.f32 %v9181_v1, %v9180_v17  ;;  %v8203_v38 = vadd.f32 %v9179_v60, %v9062_v19 }
 0xdff   :  { %v8206_v44 = vadd.f32 %v9182_v27, %v9062_v19 }
 0xe11   :  { %v9199_v20 = vpop.f32.mrb[112].mxu1 }
 0xe12   :  { %v9200_v4 = vpop.f32.mrb[113].mxu1 }
 0xe13   :  { %v9201_v22 = vadd.f32 %v9200_v4, %v9199_v20  ;;  %v9202_v24 = vpop.f32.mrb[114].mxu1 }
 0xe14   :  { %v9203_v32 = vpop.f32.mrb[115].mxu1 }
 0xe15   :  { %v8244_v58 = vadd.f32 %v9201_v22, %v8195_v21  ;;  %v9204_v41 = vadd.f32 %v9203_v32, %v9202_v24 }
 0xe17   :  { %v8258_v28 = vmax.f32 %v8244_v58, 0.0  ;;  %v8247_v37 = vadd.f32 %v9204_v41, %v8198_v33 }
 0xe19   :  { %8263 = vst [vmem:[#allocation13 + $0x20] sm:$0xff] %v8258_v28  ;;  %v8259_v63 = vmax.f32 %v8247_v37, 0.0  ;;  %v9205_v36 = vpop.f32.mrb[116].mxu1 }
 0xe1a   :  { %v9206_v39 = vpop.f32.mrb[117].mxu1 }
 0xe1b   :  { %8264 = vst [vmem:[#allocation13 + $0x28] sm:$0xff] %v8259_v63  ;;  %v9207_v14 = vadd.f32 %v9206_v39, %v9205_v36  ;;  %v9208_v42 = vpop.f32.mrb[118].mxu1 }
 0xe1c   :  { %v9209_v43 = vpop.f32.mrb[119].mxu1 }
 0xe1d   :  { %v8252_v0 = vadd.f32 %v9207_v14, %v8203_v38  ;;  %v9210_v56 = vadd.f32 %v9209_v43, %v9208_v42 }
 0xe1f   :  { %v8260_v45 = vmax.f32 %v8252_v0, 0.0  ;;  %v8255_v46 = vadd.f32 %v9210_v56, %v8206_v44 }
 0xe21   :  { %8265 = vst [vmem:[#allocation13 + $0x30] sm:$0xff] %v8260_v45  ;;  %v8261_v59 = vmax.f32 %v8255_v46, 0.0 }
 0xe23   :  { %8266 = vst [vmem:[#allocation13 + $0x38] sm:$0xff] %v8261_v59 }
 0xe24   :  { %9578 = shalt.err (!%p9575_p10)
}
 0xe25   :  { %s9579_s0 = scalar_lea.hbm %s10276_s10, 1024 }
 0xe26   :  { %p9580_p11 = scmp.ne.s32.totalorder %s10276_s10, %s9579_s0  ;;  %p9583_p12 = scmp.lt.u32.totalorder %s9579_s0, %s10276_s10 }
 0xe28   :  { %p9585_p13 = pnand %p9583_p12, %p9580_p11 }
 0xe2a   :  { %9588 = shalt.err (!%p9585_p13)
}
 0xe2b   :  { %8278 = dma.vmem_to_hbm [thread:$0]  %s8273_s26, 1024, %s10276_s10, [#allocation4], %s9600_s23, %s9600_s23, %s9601_s24  }
 0xe2c   :  { %9597 = dma.done.wait [#allocation4], 1024  }
 0xe2d   :  { %9598 = vsyncadd [#allocation4], 4294966272 }
 0xe2e   :  { %8282 = vsyncpa [#allocation3], 1 }
 0xe2f   :  { %8283 = vsyncpa [#allocation6], 1 }
 0xe30   :  { %8284 = vsyncpa [#allocation9], 1 }
 0xe31   :  { %8285 = vsyncpa [#allocation12], 1 }
 0xe32   :  { %8286 = vsyncpa [#allocation4], 1 }

</bundles_post_ra>
